<compile_context>
chip_gen: v7x
topology: tpu7x:2x2x1
jax: 0.10.0
libtpu: 0.0.40
codegen_flags: <defaults>
</compile_context>

<pallas_src>
import functools
from dataclasses import dataclass

import jax
import jax.numpy as jnp
from jax import lax
from jax.experimental import pallas as pl
from jax.experimental.pallas import tpu as pltpu

BN_EPS = 1e-5
# 2048-row tiles keep live VMEM ~10 MiB: safe on v7x (64 MiB physical) and
# inside v5e/v6e scoped limits once raised to 32 MiB.
_ROW_TILE_CAP = 2048


@dataclass
class Config:
    lambda_t: float = 1.0
    lambda_r: float = 1.0


# ----------------------------------------------------------------------------
# Parameters
# ----------------------------------------------------------------------------
def init_params(key):
    ks = iter(jax.random.split(key, 24))

    def nrm(shape, scale):
        return jax.random.normal(next(ks), shape, jnp.float32) * scale

    p = {}
    # shared_mlp conv weights (stored transposed: (Cin, Cout))
    p["w1"] = nrm((3, 64), 1.0 / jnp.sqrt(3.0))
    p["g1"] = 1.0 + nrm((1, 64), 0.1); p["b1"] = nrm((1, 64), 0.1)
    p["w2"] = nrm((64, 128), 1.0 / jnp.sqrt(64.0))
    p["g2"] = 1.0 + nrm((1, 128), 0.1); p["b2"] = nrm((1, 128), 0.1)
    p["w3"] = nrm((128, 256), 1.0 / jnp.sqrt(128.0))
    p["g3"] = 1.0 + nrm((1, 256), 0.1); p["b3"] = nrm((1, 256), 0.1)
    # head_t: Linear(256,128,no bias) -> BN -> ReLU -> Linear(128,3)
    p["wt1"] = nrm((256, 128), 1.0 / jnp.sqrt(256.0))
    p["gt"] = 1.0 + nrm((1, 128), 0.1); p["bt"] = nrm((1, 128), 0.1)
    p["wt2"] = nrm((128, 3), 1.0 / jnp.sqrt(128.0)); p["bt2"] = nrm((1, 3), 0.01)
    # head_r: Linear(256,128,no bias) -> BN -> ReLU -> Linear(128,9)
    p["wr1"] = nrm((256, 128), 1.0 / jnp.sqrt(256.0))
    p["gr"] = 1.0 + nrm((1, 128), 0.1); p["br"] = nrm((1, 128), 0.1)
    p["wr2"] = nrm((128, 9), 1.0 / jnp.sqrt(128.0)); p["br2"] = nrm((1, 9), 0.01)
    return p


def _fused_head_weights(params):
    """head_t / head_r fused into one 256-wide layer + one (256,16) block layer."""
    wh1 = jnp.concatenate([params["wt1"], params["wr1"]], axis=1)   # (256, 256)
    gh = jnp.concatenate([params["gt"], params["gr"]], axis=1)      # (1, 256)
    bh = jnp.concatenate([params["bt"], params["br"]], axis=1)      # (1, 256)
    wh2 = jnp.zeros((256, 16), jnp.float32)
    wh2 = wh2.at[:128, 0:3].set(params["wt2"])
    wh2 = wh2.at[128:, 3:12].set(params["wr2"])
    bh2 = jnp.zeros((1, 16), jnp.float32)
    bh2 = bh2.at[:, 0:3].set(params["bt2"])
    bh2 = bh2.at[:, 3:12].set(params["br2"])
    return wh1, gh, bh, wh2, bh2


# ----------------------------------------------------------------------------
# Pallas kernel
# ----------------------------------------------------------------------------
def _bn_relu(z, mean, var, gamma, beta):
    return jnp.maximum((z - mean) * lax.rsqrt(var + BN_EPS) * gamma + beta, 0.0)


def _pointnet_kernel(m_count, n_points, row_tile, n_row_tiles,
                     pc_ref, w1s_ref, c1_ref,
                     w2_ref, g2_ref, b2_ref,
                     w3_ref, g3_ref, b3_ref,
                     wh1_ref, gh_ref, bh_ref, wh2_ref, bh2_ref,
                     out_ref,
                     s2, q2, s3, q3, zmax, zmin):
    phase = pl.program_id(0)
    tile = pl.program_id(1)
    last_tile = pl.num_programs(1) - 1
    inv_m = 1.0 / m_count
    R = row_tile

    @pl.when(jnp.logical_and(phase == 0, tile == 0))
    def _init():
        s2[...] = jnp.zeros_like(s2); q2[...] = jnp.zeros_like(q2)
        s3[...] = jnp.zeros_like(s3); q3[...] = jnp.zeros_like(q3)

    # Layer 1: K=3 contraction on the MXU (the vex slot has slack since the
    # K=64/128 matmuls underfill it).  Layer-1 BN is folded into w1s/c1 in the
    # wrapper (its batch stats are analytic in sum(pc) and pc^T pc).
    a1 = jnp.maximum(
        jnp.dot(pc_ref[...], w1s_ref[...], preferred_element_type=jnp.float32)
        + c1_ref[...], 0.0)                                      # (R, 64)
    z2 = jnp.dot(a1.astype(jnp.bfloat16), w2_ref[...],
                 preferred_element_type=jnp.float32)             # (R, 128)

    @pl.when(phase == 0)
    def _stats2():
        # (8, C) sublane partials; cross-sublane collapse deferred to use site.
        z2p = z2.reshape(R // 8, 8, 128)
        s2[...] += jnp.sum(z2p, axis=0)
        q2[...] += jnp.sum(z2p * z2p, axis=0)

    @pl.when(phase == 1)
    def _layer3():
        mean2 = jnp.sum(s2[...], axis=0, keepdims=True) * inv_m
        var2 = jnp.sum(q2[...], axis=0, keepdims=True) * inv_m - mean2 * mean2
        a2 = _bn_relu(z2, mean2, var2, g2_ref[...], b2_ref[...])
        z3 = jnp.dot(a2.astype(jnp.bfloat16), w3_ref[...],
                     preferred_element_type=jnp.float32)         # (R, 256)
        z3p = z3.reshape(R // 8, 8, 256)
        s3[...] += jnp.sum(z3p, axis=0)
        q3[...] += jnp.sum(z3p * z3p, axis=0)

        # Per-batch max/min of the *pre-BN* layer-3 activations.  The global
        # max-pool commutes with BN+ReLU through monotonicity (see _heads).
        if row_tile >= n_points:
            # Tile spans k whole batches -> each batch is written exactly once.
            k = row_tile // n_points
            z3b = z3.reshape(k, n_points, 256)
            tmax = jnp.max(z3b, axis=1)                          # (k, 256)
            tmin = jnp.min(z3b, axis=1)
            if n_row_tiles == 1:
                zmax[...] = tmax
                zmin[...] = tmin
            else:
                b0 = tile * k
                zmax[pl.ds(b0, k), :] = tmax
                zmin[pl.ds(b0, k), :] = tmin
        else:
            # Several tiles per batch: dynamic single-row running update
            # (no iota/where merge, no init pass; first tile overwrites).
            tiles_per_batch = n_points // row_tile
            b_idx = tile // tiles_per_batch
            is_first = (tile % tiles_per_batch) == 0
            tmax = jnp.max(z3, axis=0, keepdims=True)
            tmin = jnp.min(z3, axis=0, keepdims=True)
            cur_max = zmax[pl.ds(b_idx, 1), :]
            cur_min = zmin[pl.ds(b_idx, 1), :]
            zmax[pl.ds(b_idx, 1), :] = jnp.where(is_first, tmax,
                                                 jnp.maximum(cur_max, tmax))
            zmin[pl.ds(b_idx, 1), :] = jnp.where(is_first, tmin,
                                                 jnp.minimum(cur_min, tmin))

    @pl.when(jnp.logical_and(phase == 1, tile == last_tile))
    def _heads():
        # Finalize layer-3 BN + ReLU + AdaptiveMaxPool1d(1) via monotonicity:
        # max_n relu(g*zhat+b) = relu(g*((g>=0 ? zmax : zmin)-mean)*inv + b).
        mean3 = jnp.sum(s3[...], axis=0, keepdims=True) * inv_m
        var3 = jnp.sum(q3[...], axis=0, keepdims=True) * inv_m - mean3 * mean3
        inv3 = lax.rsqrt(var3 + BN_EPS)
        g3 = g3_ref[...]; b3 = b3_ref[...]
        zsel = jnp.where(g3 >= 0.0, zmax[...], zmin[...])        # (B, 256)
        f = jnp.maximum((zsel - mean3) * inv3 * g3 + b3, 0.0)

        # Fused heads: one (B,256)@(256,256) bf16 matmul, one shared BN/ReLU
        # over the batch dim, one (256,16) block matmul -> lane-packed (B,16).
        h = jnp.dot(f.astype(jnp.bfloat16), wh1_ref[...],
                    preferred_element_type=jnp.float32)
        hm = jnp.mean(h, axis=0, keepdims=True)
        hv = jnp.mean(h * h, axis=0, keepdims=True) - hm * hm
        hn = jnp.maximum((h - hm) * lax.rsqrt(hv + BN_EPS) * gh_ref[...]
                         + bh_ref[...], 0.0)
        out_ref[...] = (jnp.dot(hn, wh2_ref[...],
                                preferred_element_type=jnp.float32)
                        + bh2_ref[...])


def _pick_row_tile(batch, n, cap=_ROW_TILE_CAP):
    m = batch * n
    if m <= cap:
        return m                              # single tile spanning all batches
    if n >= cap:                              # several tiles per batch
        r = cap - cap % 8
        while r >= 8:
            if n % r == 0:
                return r
            r -= 8
        raise ValueError("N must be a multiple of 8")
    k = cap // n                              # tile spans k whole batches
    while k > 1 and batch % k:
        k -= 1
    return k * n


def backbone_and_heads(params, pc):
    """shared_mlp -> maxpool -> head_t/head_r.  Returns (t_pred (B,3), r_pred (B,9))."""
    B, N, _ = pc.shape
    assert N % 8 == 0, "N must be a multiple of 8"
    M = B * N
    R = _pick_row_tile(B, N)
    n_tiles = M // R
    pcf = pc.reshape(M, 3).astype(jnp.float32)

    # Layer-1 BN batch stats are analytic (z1 = pc @ w1 is linear in pc), so
    # the whole stats-only pass is replaced by a tiny XLA reduction and the
    # scale/shift are folded into the first conv weights.
    w1 = params["w1"]
    s_pc = jnp.sum(pcf, axis=0, keepdims=True)                         # (1, 3)
    gram = jnp.dot(pcf.T, pcf, precision=lax.Precision.HIGHEST)        # (3, 3)
    s1 = jnp.dot(s_pc, w1, precision=lax.Precision.HIGHEST)            # (1, 64)
    q1 = jnp.sum(w1 * jnp.dot(gram, w1, precision=lax.Precision.HIGHEST),
                 axis=0, keepdims=True)                                # (1, 64)
    mean1 = s1 / M
    var1 = q1 / M - mean1 * mean1
    scale1 = params["g1"] * lax.rsqrt(var1 + BN_EPS)
    w1s = w1 * scale1                         # conv1 weight with BN scale folded
    c1 = params["b1"] - mean1 * scale1        # folded BN shift

    wh1, gh, bh, wh2, bh2 = _fused_head_weights(params)
    wh1_bf = wh1.astype(jnp.bfloat16)
    w2_bf = params["w2"].astype(jnp.bfloat16)
    w3_bf = params["w3"].astype(jnp.bfloat16)

    def full(shape):
        # TODO(synk): these constant-index weight specs could be single-buffered
        # (pipeline_mode=pl.Buffered(1)) to shave ~0.5 MiB of VMEM.
        return pl.BlockSpec(shape, lambda p, t: (0, 0))

    kernel = functools.partial(_pointnet_kernel, float(M), N, R, n_tiles)

    # TODO(synk): the grid is sequential ("arbitrary") because training-mode BN
    # stats couple all tiles; a v7x dual-core split needs per-core partial
    # stats plus a cross-core reduce/barrier (CMEM) at the phase boundary.
    # TODO(synk): if VMEM ever limits R, stream pc transposed as (3, M) with a
    # lane-dense (3, R) block instead of the lane-padded (R, 3) block.
    out = pl.pallas_call(
        kernel,
        out_shape=jax.ShapeDtypeStruct((B, 16), jnp.float32),
        grid_spec=pltpu.PrefetchScalarGridSpec(
            num_scalar_prefetch=0,
            grid=(2, n_tiles),
            in_specs=[
                pl.BlockSpec((R, 3), lambda p, t: (t, 0)),          # pc row tile
                full((3, 64)), full((1, 64)),                       # layer 1 (BN folded)
                full((64, 128)), full((1, 128)), full((1, 128)),    # layer 2
                full((128, 256)), full((1, 256)), full((1, 256)),   # layer 3
                full((256, 256)), full((1, 256)), full((1, 256)),   # fused heads l1
                full((256, 16)), full((1, 16)),                     # fused heads l2
            ],
            out_specs=pl.BlockSpec((B, 16), lambda p, t: (0, 0)),
            scratch_shapes=[
                pltpu.VMEM((8, 128), jnp.float32), pltpu.VMEM((8, 128), jnp.float32),
                pltpu.VMEM((8, 256), jnp.float32), pltpu.VMEM((8, 256), jnp.float32),
                pltpu.VMEM((B, 256), jnp.float32), pltpu.VMEM((B, 256), jnp.float32),
            ]),
        compiler_params=pltpu.CompilerParams(
            dimension_semantics=("arbitrary", "arbitrary"),
            vmem_limit_bytes=32 * 1024 * 1024),
    )(pcf,
      w1s, c1,
      w2_bf, params["g2"], params["b2"],
      w3_bf, params["g3"], params["b3"],
      wh1_bf, gh, bh, wh2, bh2)

    return out[:, 0:3], out[:, 3:12]


# ----------------------------------------------------------------------------
# Plain-JAX pieces (no Pallas equivalent / not worth a kernel launch)
# ----------------------------------------------------------------------------
def project_to_so3(r_pred_flat):
    # SVD-based orthogonalization with det=+1 (torch.linalg.svd has no Mosaic
    # lowering; 3x3 per batch, negligible cost).
    r_mat = r_pred_flat.reshape(-1, 3, 3)
    U, _, Vt = jnp.linalg.svd(r_mat, full_matrices=False)
    UVt = U @ Vt
    det = jnp.linalg.det(UVt)
    diag = jnp.stack([jnp.ones_like(det), jnp.ones_like(det), det], axis=-1)
    D = jnp.eye(3, dtype=r_mat.dtype)[None, :, :] * diag[:, None, :]
    return U @ D @ Vt


def forward(params, config, pc, trans, rot):
    """EstPoseNet.forward: returns (loss, metrics dict)."""
    t_pred, r_pred = backbone_and_heads(params, pc)
    R_pred = project_to_so3(r_pred)
    # Losses are ~B*12 elements: plain JAX, no extra pallas_call launch.
    loss_t = jnp.mean(jnp.square(t_pred - trans))
    loss_r = jnp.mean(jnp.square(R_pred - rot.reshape(R_pred.shape)))
    loss = config.lambda_t * loss_t + config.lambda_r * loss_r
    metric = dict(loss=loss, loss_t=loss_t, loss_r=loss_r)
    return loss, metric


def est(params, pc):
    """EstPoseNet.est: returns (t_pred (B,3), R_pred (B,3,3))."""
    # TODO(synk): est() in PyTorch uses eval-mode BN (running stats); here the
    # same training-mode batch-statistic BN as forward() is reused.
    t_pred, r_pred = backbone_and_heads(params, pc)
    return t_pred, project_to_so3(r_pred)


# ----------------------------------------------------------------------------
# Pure-JAX reference mirroring the kernel math (self-check)
# ----------------------------------------------------------------------------
def _ref_bn_relu(z, gamma, beta):
    m = jnp.mean(z, axis=0, keepdims=True)
    v = jnp.mean(z * z, axis=0, keepdims=True) - m * m
    return jnp.maximum((z - m) * lax.rsqrt(v + BN_EPS) * gamma + beta, 0.0)


def _reference_backbone(params, pc):
    B, N, _ = pc.shape
    x = pc.reshape(B * N, 3).astype(jnp.float32)
    z1 = jnp.dot(x, params["w1"], precision=lax.Precision.HIGHEST)
    a1 = _ref_bn_relu(z1, params["g1"], params["b1"])
    z2 = jnp.dot(a1.astype(jnp.bfloat16), params["w2"].astype(jnp.bfloat16),
                 preferred_element_type=jnp.float32)
    a2 = _ref_bn_relu(z2, params["g2"], params["b2"])
    z3 = jnp.dot(a2.astype(jnp.bfloat16), params["w3"].astype(jnp.bfloat16),
                 preferred_element_type=jnp.float32)
    a3 = _ref_bn_relu(z3, params["g3"], params["b3"])
    f = jnp.max(a3.reshape(B, N, 256), axis=1)
    wh1, gh, bh, wh2, bh2 = _fused_head_weights(params)
    h = jnp.dot(f.astype(jnp.bfloat16), wh1.astype(jnp.bfloat16),
                preferred_element_type=jnp.float32)
    hn = _ref_bn_relu(h, gh, bh)
    out = jnp.dot(hn, wh2, precision=lax.Precision.HIGHEST,
                  preferred_element_type=jnp.float32) + bh2
    return out[:, 0:3], out[:, 3:12]


# ----------------------------------------------------------------------------
if __name__ == "__main__":
    key = jax.random.PRNGKey(0)
    k_param, k_pc, k_trans = jax.random.split(key, 3)

    B, N = 2, 128
    params = init_params(k_param)
    pc = jax.random.normal(k_pc, (B, N, 3), jnp.float32)
    trans = jax.random.normal(k_trans, (B, 3), jnp.float32) * 0.1
    rot = jnp.tile(jnp.eye(3, dtype=jnp.float32)[None], (B, 1, 1))

    cfg = Config(lambda_t=1.0, lambda_r=1.0)
    loss, metric = jax.jit(
        lambda p, pc, t, r: forward(p, cfg, pc, t, r))(params, pc, trans, rot)
    jax.block_until_ready((loss, metric))

    t_pred, R_pred = jax.jit(est)(params, pc)
    jax.block_until_ready((t_pred, R_pred))

    # Numerical sanity check of the kernel against a pure-JAX mirror.
    # atol is 1e-2 because the B=2 head BatchNorm normalizes a 2-sample batch
    # and can amplify bf16 rounding when the two hidden values nearly tie.
    t_k, r_k = jax.jit(backbone_and_heads)(params, pc)
    t_ref, r_ref = jax.jit(_reference_backbone)(params, pc)
    jax.block_until_ready((t_k, r_k, t_ref, r_ref))
    assert jnp.allclose(t_k, t_ref, rtol=5e-2, atol=1e-2), "t_pred mismatch"
    assert jnp.allclose(r_k, r_ref, rtol=5e-2, atol=1e-2), "r_pred mismatch"

    assert bool(jnp.isfinite(loss))
    assert t_pred.shape == (B, 3) and R_pred.shape == (B, 3, 3)
    print("KERNEL_OK")
</pallas_src>

<mosaic_0001>
module attributes {stable_mosaic.version = 11 : i64} {
  func.func @_pointnet_kernel(%arg0: i32, %arg1: i32, %arg2: memref<256x3xf32, #tpu.memory_space<vmem>>, %arg3: memref<3x64xf32, #tpu.memory_space<vmem>>, %arg4: memref<1x64xf32, #tpu.memory_space<vmem>>, %arg5: memref<64x128xbf16, #tpu.memory_space<vmem>>, %arg6: memref<1x128xf32, #tpu.memory_space<vmem>>, %arg7: memref<1x128xf32, #tpu.memory_space<vmem>>, %arg8: memref<128x256xbf16, #tpu.memory_space<vmem>>, %arg9: memref<1x256xf32, #tpu.memory_space<vmem>>, %arg10: memref<1x256xf32, #tpu.memory_space<vmem>>, %arg11: memref<256x256xbf16, #tpu.memory_space<vmem>>, %arg12: memref<1x256xf32, #tpu.memory_space<vmem>>, %arg13: memref<1x256xf32, #tpu.memory_space<vmem>>, %arg14: memref<256x16xf32, #tpu.memory_space<vmem>>, %arg15: memref<1x16xf32, #tpu.memory_space<vmem>>, %arg16: memref<2x16xf32, #tpu.memory_space<vmem>>, %arg17: memref<8x128xf32, #tpu.memory_space<vmem>>, %arg18: memref<8x128xf32, #tpu.memory_space<vmem>>, %arg19: memref<8x256xf32, #tpu.memory_space<vmem>>, %arg20: memref<8x256xf32, #tpu.memory_space<vmem>>, %arg21: memref<2x256xf32, #tpu.memory_space<vmem>>, %arg22: memref<2x256xf32, #tpu.memory_space<vmem>>) attributes {dimension_semantics = [#tpu.dimension_semantics<arbitrary>, #tpu.dimension_semantics<arbitrary>], iteration_bounds = array<i64: 2, 1>, scalar_prefetch = 0 : i64, scratch_operands = 6 : i64, tpu.core_type = #tpu.core_type<tc>, window_params = [{transform_indices = @transform_0, window_bounds = array<i64: 256, 3>}, {pipeline_mode = #tpu.pipeline_mode<synchronous>, transform_indices = @transform_1, window_bounds = array<i64: 3, 64>}, {pipeline_mode = #tpu.pipeline_mode<synchronous>, transform_indices = @transform_2, window_bounds = array<i64: 1, 64>}, {pipeline_mode = #tpu.pipeline_mode<synchronous>, transform_indices = @transform_3, window_bounds = array<i64: 64, 128>}, {pipeline_mode = #tpu.pipeline_mode<synchronous>, transform_indices = @transform_4, window_bounds = array<i64: 1, 128>}, {pipeline_mode = #tpu.pipeline_mode<synchronous>, transform_indices = @transform_5, window_bounds = array<i64: 1, 128>}, {pipeline_mode = #tpu.pipeline_mode<synchronous>, transform_indices = @transform_6, window_bounds = array<i64: 128, 256>}, {pipeline_mode = #tpu.pipeline_mode<synchronous>, transform_indices = @transform_7, window_bounds = array<i64: 1, 256>}, {pipeline_mode = #tpu.pipeline_mode<synchronous>, transform_indices = @transform_8, window_bounds = array<i64: 1, 256>}, {pipeline_mode = #tpu.pipeline_mode<synchronous>, transform_indices = @transform_9, window_bounds = array<i64: 256, 256>}, {pipeline_mode = #tpu.pipeline_mode<synchronous>, transform_indices = @transform_10, window_bounds = array<i64: 1, 256>}, {pipeline_mode = #tpu.pipeline_mode<synchronous>, transform_indices = @transform_11, window_bounds = array<i64: 1, 256>}, {pipeline_mode = #tpu.pipeline_mode<synchronous>, transform_indices = @transform_12, window_bounds = array<i64: 256, 16>}, {pipeline_mode = #tpu.pipeline_mode<synchronous>, transform_indices = @transform_13, window_bounds = array<i64: 1, 16>}, {pipeline_mode = #tpu.pipeline_mode<synchronous>, transform_indices = @transform_14, window_bounds = array<i64: 2, 16>}]} {
    %c0_i32 = arith.constant 0 : i32
    %0 = arith.cmpi eq, %arg0, %c0_i32 : i32
    %c0_i32_0 = arith.constant 0 : i32
    %1 = arith.cmpi eq, %arg1, %c0_i32_0 : i32
    %2 = arith.andi %0, %1 : i1
    %3 = arith.extui %2 : i1 to i32
    %c0_i32_1 = arith.constant 0 : i32
    %4 = arith.cmpi ne, %3, %c0_i32_1 : i32
    scf.if %4 {
      %cst_17 = arith.constant 0.000000e+00 : f32
      %27 = vector.broadcast %cst_17 : f32 to vector<8x128xf32>
      %c0_18 = arith.constant 0 : index
      %c0_19 = arith.constant 0 : index
      %28 = vector.load %arg17[%c0_18, %c0_19] : memref<8x128xf32, #tpu.memory_space<vmem>>, vector<8x128xf32>
      tpu.vector_store %arg17[%c0_18, %c0_19], %27 {strides = array<i32>} : memref<8x128xf32, #tpu.memory_space<vmem>>, vector<8x128xf32>,
      %cst_20 = arith.constant 0.000000e+00 : f32
      %29 = vector.broadcast %cst_20 : f32 to vector<8x128xf32>
      %c0_21 = arith.constant 0 : index
      %c0_22 = arith.constant 0 : index
      %30 = vector.load %arg18[%c0_21, %c0_22] : memref<8x128xf32, #tpu.memory_space<vmem>>, vector<8x128xf32>
      tpu.vector_store %arg18[%c0_21, %c0_22], %29 {strides = array<i32>} : memref<8x128xf32, #tpu.memory_space<vmem>>, vector<8x128xf32>,
      %cst_23 = arith.constant 0.000000e+00 : f32
      %31 = vector.broadcast %cst_23 : f32 to vector<8x256xf32>
      %c0_24 = arith.constant 0 : index
      %c0_25 = arith.constant 0 : index
      %32 = vector.load %arg19[%c0_24, %c0_25] : memref<8x256xf32, #tpu.memory_space<vmem>>, vector<8x256xf32>
      tpu.vector_store %arg19[%c0_24, %c0_25], %31 {strides = array<i32>} : memref<8x256xf32, #tpu.memory_space<vmem>>, vector<8x256xf32>,
      %cst_26 = arith.constant 0.000000e+00 : f32
      %33 = vector.broadcast %cst_26 : f32 to vector<8x256xf32>
      %c0_27 = arith.constant 0 : index
      %c0_28 = arith.constant 0 : index
      %34 = vector.load %arg20[%c0_27, %c0_28] : memref<8x256xf32, #tpu.memory_space<vmem>>, vector<8x256xf32>
      tpu.vector_store %arg20[%c0_27, %c0_28], %33 {strides = array<i32>} : memref<8x256xf32, #tpu.memory_space<vmem>>, vector<8x256xf32>,
    } else {
    }
    %c0 = arith.constant 0 : index
    %c0_2 = arith.constant 0 : index
    %5 = vector.load %arg2[%c0, %c0_2] : memref<256x3xf32, #tpu.memory_space<vmem>>, vector<256x3xf32>
    %c0_3 = arith.constant 0 : index
    %c0_4 = arith.constant 0 : index
    %6 = vector.load %arg3[%c0_3, %c0_4] : memref<3x64xf32, #tpu.memory_space<vmem>>, vector<3x64xf32>
    %cst = arith.constant dense<0.000000e+00> : vector<256x64xf32>
    %7 = tpu.matmul %5, %6, %cst {dimension_numbers = #tpu.dot_dimension_numbers<[1], [0], [0], [1], [0, 0, 1, 1], [], []>} : vector<256x3xf32>, vector<3x64xf32>, vector<256x64xf32> -> vector<256x64xf32>
    %c0_5 = arith.constant 0 : index
    %c0_6 = arith.constant 0 : index
    %8 = vector.load %arg4[%c0_5, %c0_6] : memref<1x64xf32, #tpu.memory_space<vmem>>, vector<1x64xf32>
    %9 = vector.broadcast %8 : vector<1x64xf32> to vector<256x64xf32>
    %10 = arith.addf %7, %9 : vector<256x64xf32>
    %cst_7 = arith.constant 0.000000e+00 : f32
    %11 = vector.broadcast %cst_7 : f32 to vector<256x64xf32>
    %12 = arith.maximumf %10, %11 : vector<256x64xf32>
    %13 = arith.truncf %12 : vector<256x64xf32> to vector<256x64xbf16>
    %c0_8 = arith.constant 0 : index
    %c0_9 = arith.constant 0 : index
    %14 = vector.load %arg5[%c0_8, %c0_9] : memref<64x128xbf16, #tpu.memory_space<vmem>>, vector<64x128xbf16>
    %cst_10 = arith.constant dense<0.000000e+00> : vector<256x128xf32>
    %15 = tpu.matmul %13, %14, %cst_10 {dimension_numbers = #tpu.dot_dimension_numbers<[1], [0], [0], [1], [0, 0, 1, 1], [], []>} : vector<256x64xbf16>, vector<64x128xbf16>, vector<256x128xf32> -> vector<256x128xf32>
    %c0_i32_11 = arith.constant 0 : i32
    %16 = arith.cmpi eq, %arg0, %c0_i32_11 : i32
    %17 = arith.extui %16 : i1 to i32
    %c0_i32_12 = arith.constant 0 : i32
    %18 = arith.cmpi ne, %17, %c0_i32_12 : i32
    scf.if %18 {
      %27 = vector.shape_cast %15 : vector<256x128xf32> to vector<32x8x128xf32>
      %c0_17 = arith.constant 0 : index
      %c0_18 = arith.constant 0 : index
      %28 = vector.load %arg17[%c0_17, %c0_18] : memref<8x128xf32, #tpu.memory_space<vmem>>, vector<8x128xf32>
      %cst_19 = arith.constant dense<0.000000e+00> : vector<8x128xf32>
      %29 = vector.multi_reduction <add>, %27, %cst_19 [0] : vector<32x8x128xf32> to vector<8x128xf32>
      %30 = arith.addf %28, %29 : vector<8x128xf32>
      %c0_20 = arith.constant 0 : index
      %c0_21 = arith.constant 0 : index
      %31 = vector.load %arg17[%c0_20, %c0_21] : memref<8x128xf32, #tpu.memory_space<vmem>>, vector<8x128xf32>
      tpu.vector_store %arg17[%c0_20, %c0_21], %30 {strides = array<i32>} : memref<8x128xf32, #tpu.memory_space<vmem>>, vector<8x128xf32>,
      %c0_22 = arith.constant 0 : index
      %c0_23 = arith.constant 0 : index
      %32 = vector.load %arg18[%c0_22, %c0_23] : memref<8x128xf32, #tpu.memory_space<vmem>>, vector<8x128xf32>
      %33 = arith.mulf %27, %27 : vector<32x8x128xf32>
      %cst_24 = arith.constant dense<0.000000e+00> : vector<8x128xf32>
      %34 = vector.multi_reduction <add>, %33, %cst_24 [0] : vector<32x8x128xf32> to vector<8x128xf32>
      %35 = arith.addf %32, %34 : vector<8x128xf32>
      %c0_25 = arith.constant 0 : index
      %c0_26 = arith.constant 0 : index
      %36 = vector.load %arg18[%c0_25, %c0_26] : memref<8x128xf32, #tpu.memory_space<vmem>>, vector<8x128xf32>
      tpu.vector_store %arg18[%c0_25, %c0_26], %35 {strides = array<i32>} : memref<8x128xf32, #tpu.memory_space<vmem>>, vector<8x128xf32>,
    } else {
    }
    %c1_i32 = arith.constant 1 : i32
    %19 = arith.cmpi eq, %arg0, %c1_i32 : i32
    %20 = arith.extui %19 : i1 to i32
    %c0_i32_13 = arith.constant 0 : i32
    %21 = arith.cmpi ne, %20, %c0_i32_13 : i32
    scf.if %21 {
      %c0_17 = arith.constant 0 : index
      %c0_18 = arith.constant 0 : index
      %27 = vector.load %arg17[%c0_17, %c0_18] : memref<8x128xf32, #tpu.memory_space<vmem>>, vector<8x128xf32>
      %cst_19 = arith.constant dense<0.000000e+00> : vector<128xf32>
      %28 = vector.multi_reduction <add>, %27, %cst_19 [0] : vector<8x128xf32> to vector<128xf32>
      %29 = vector.shape_cast %28 : vector<128xf32> to vector<1x128xf32>
      %cst_20 = arith.constant 3.906250e-03 : f32
      %30 = vector.broadcast %cst_20 : f32 to vector<1x128xf32>
      %31 = arith.mulf %29, %30 : vector<1x128xf32>
      %c0_21 = arith.constant 0 : index
      %c0_22 = arith.constant 0 : index
      %32 = vector.load %arg18[%c0_21, %c0_22] : memref<8x128xf32, #tpu.memory_space<vmem>>, vector<8x128xf32>
      %cst_23 = arith.constant dense<0.000000e+00> : vector<128xf32>
      %33 = vector.multi_reduction <add>, %32, %cst_23 [0] : vector<8x128xf32> to vector<128xf32>
      %34 = vector.shape_cast %33 : vector<128xf32> to vector<1x128xf32>
      %cst_24 = arith.constant 3.906250e-03 : f32
      %35 = vector.broadcast %cst_24 : f32 to vector<1x128xf32>
      %36 = arith.mulf %34, %35 : vector<1x128xf32>
      %37 = arith.mulf %31, %31 : vector<1x128xf32>
      %38 = arith.subf %36, %37 : vector<1x128xf32>
      %c0_25 = arith.constant 0 : index
      %c0_26 = arith.constant 0 : index
      %39 = vector.load %arg6[%c0_25, %c0_26] : memref<1x128xf32, #tpu.memory_space<vmem>>, vector<1x128xf32>
      %c0_27 = arith.constant 0 : index
      %c0_28 = arith.constant 0 : index
      %40 = vector.load %arg7[%c0_27, %c0_28] : memref<1x128xf32, #tpu.memory_space<vmem>>, vector<1x128xf32>
      %41 = vector.broadcast %31 : vector<1x128xf32> to vector<256x128xf32>
      %42 = arith.subf %15, %41 : vector<256x128xf32>
      %cst_29 = arith.constant 9.99999974E-6 : f32
      %43 = vector.broadcast %cst_29 : f32 to vector<1x128xf32>
      %44 = arith.addf %38, %43 : vector<1x128xf32>
      %45 = math.rsqrt %44 : vector<1x128xf32>
      %46 = vector.broadcast %45 : vector<1x128xf32> to vector<256x128xf32>
      %47 = arith.mulf %42, %46 : vector<256x128xf32>
      %48 = vector.broadcast %39 : vector<1x128xf32> to vector<256x128xf32>
      %49 = arith.mulf %47, %48 : vector<256x128xf32>
      %50 = vector.broadcast %40 : vector<1x128xf32> to vector<256x128xf32>
      %51 = arith.addf %49, %50 : vector<256x128xf32>
      %cst_30 = arith.constant 0.000000e+00 : f32
      %52 = vector.broadcast %cst_30 : f32 to vector<256x128xf32>
      %53 = arith.maximumf %51, %52 : vector<256x128xf32>
      %54 = arith.truncf %53 : vector<256x128xf32> to vector<256x128xbf16>
      %c0_31 = arith.constant 0 : index
      %c0_32 = arith.constant 0 : index
      %55 = vector.load %arg8[%c0_31, %c0_32] : memref<128x256xbf16, #tpu.memory_space<vmem>>, vector<128x256xbf16>
      %cst_33 = arith.constant dense<0.000000e+00> : vector<256x256xf32>
      %56 = tpu.matmul %54, %55, %cst_33 {dimension_numbers = #tpu.dot_dimension_numbers<[1], [0], [0], [1], [0, 0, 1, 1], [], []>} : vector<256x128xbf16>, vector<128x256xbf16>, vector<256x256xf32> -> vector<256x256xf32>
      %57 = vector.shape_cast %56 : vector<256x256xf32> to vector<32x8x256xf32>
      %c0_34 = arith.constant 0 : index
      %c0_35 = arith.constant 0 : index
      %58 = vector.load %arg19[%c0_34, %c0_35] : memref<8x256xf32, #tpu.memory_space<vmem>>, vector<8x256xf32>
      %cst_36 = arith.constant dense<0.000000e+00> : vector<8x256xf32>
      %59 = vector.multi_reduction <add>, %57, %cst_36 [0] : vector<32x8x256xf32> to vector<8x256xf32>
      %60 = arith.addf %58, %59 : vector<8x256xf32>
      %c0_37 = arith.constant 0 : index
      %c0_38 = arith.constant 0 : index
      %61 = vector.load %arg19[%c0_37, %c0_38] : memref<8x256xf32, #tpu.memory_space<vmem>>, vector<8x256xf32>
      tpu.vector_store %arg19[%c0_37, %c0_38], %60 {strides = array<i32>} : memref<8x256xf32, #tpu.memory_space<vmem>>, vector<8x256xf32>,
      %c0_39 = arith.constant 0 : index
      %c0_40 = arith.constant 0 : index
      %62 = vector.load %arg20[%c0_39, %c0_40] : memref<8x256xf32, #tpu.memory_space<vmem>>, vector<8x256xf32>
      %63 = arith.mulf %57, %57 : vector<32x8x256xf32>
      %cst_41 = arith.constant dense<0.000000e+00> : vector<8x256xf32>
      %64 = vector.multi_reduction <add>, %63, %cst_41 [0] : vector<32x8x256xf32> to vector<8x256xf32>
      %65 = arith.addf %62, %64 : vector<8x256xf32>
      %c0_42 = arith.constant 0 : index
      %c0_43 = arith.constant 0 : index
      %66 = vector.load %arg20[%c0_42, %c0_43] : memref<8x256xf32, #tpu.memory_space<vmem>>, vector<8x256xf32>
      tpu.vector_store %arg20[%c0_42, %c0_43], %65 {strides = array<i32>} : memref<8x256xf32, #tpu.memory_space<vmem>>, vector<8x256xf32>,
      %67 = vector.shape_cast %56 : vector<256x256xf32> to vector<2x128x256xf32>
      %cst_44 = arith.constant dense<0xFF800000> : vector<2x256xf32>
      %68 = vector.multi_reduction <maximumf>, %67, %cst_44 [1] : vector<2x128x256xf32> to vector<2x256xf32>
      %cst_45 = arith.constant dense<0x7F800000> : vector<2x256xf32>
      %69 = vector.multi_reduction <minimumf>, %67, %cst_45 [1] : vector<2x128x256xf32> to vector<2x256xf32>
      %c0_46 = arith.constant 0 : index
      %c0_47 = arith.constant 0 : index
      %70 = vector.load %arg21[%c0_46, %c0_47] : memref<2x256xf32, #tpu.memory_space<vmem>>, vector<2x256xf32>
      tpu.vector_store %arg21[%c0_46, %c0_47], %68 {strides = array<i32>} : memref<2x256xf32, #tpu.memory_space<vmem>>, vector<2x256xf32>,
      %c0_48 = arith.constant 0 : index
      %c0_49 = arith.constant 0 : index
      %71 = vector.load %arg22[%c0_48, %c0_49] : memref<2x256xf32, #tpu.memory_space<vmem>>, vector<2x256xf32>
      tpu.vector_store %arg22[%c0_48, %c0_49], %69 {strides = array<i32>} : memref<2x256xf32, #tpu.memory_space<vmem>>, vector<2x256xf32>,
    } else {
    }
    %c1_i32_14 = arith.constant 1 : i32
    %22 = arith.cmpi eq, %arg0, %c1_i32_14 : i32
    %c0_i32_15 = arith.constant 0 : i32
    %23 = arith.cmpi eq, %arg1, %c0_i32_15 : i32
    %24 = arith.andi %22, %23 : i1
    %25 = arith.extui %24 : i1 to i32
    %c0_i32_16 = arith.constant 0 : i32
    %26 = arith.cmpi ne, %25, %c0_i32_16 : i32
    scf.if %26 {
      %c0_17 = arith.constant 0 : index
      %c0_18 = arith.constant 0 : index
      %27 = vector.load %arg19[%c0_17, %c0_18] : memref<8x256xf32, #tpu.memory_space<vmem>>, vector<8x256xf32>
      %cst_19 = arith.constant dense<0.000000e+00> : vector<256xf32>
      %28 = vector.multi_reduction <add>, %27, %cst_19 [0] : vector<8x256xf32> to vector<256xf32>
      %29 = vector.shape_cast %28 : vector<256xf32> to vector<1x256xf32>
      %cst_20 = arith.constant 3.906250e-03 : f32
      %30 = vector.broadcast %cst_20 : f32 to vector<1x256xf32>
      %31 = arith.mulf %29, %30 : vector<1x256xf32>
      %c0_21 = arith.constant 0 : index
      %c0_22 = arith.constant 0 : index
      %32 = vector.load %arg20[%c0_21, %c0_22] : memref<8x256xf32, #tpu.memory_space<vmem>>, vector<8x256xf32>
      %cst_23 = arith.constant dense<0.000000e+00> : vector<256xf32>
      %33 = vector.multi_reduction <add>, %32, %cst_23 [0] : vector<8x256xf32> to vector<256xf32>
      %34 = vector.shape_cast %33 : vector<256xf32> to vector<1x256xf32>
      %cst_24 = arith.constant 3.906250e-03 : f32
      %35 = vector.broadcast %cst_24 : f32 to vector<1x256xf32>
      %36 = arith.mulf %34, %35 : vector<1x256xf32>
      %37 = arith.mulf %31, %31 : vector<1x256xf32>
      %38 = arith.subf %36, %37 : vector<1x256xf32>
      %cst_25 = arith.constant 9.99999974E-6 : f32
      %39 = vector.broadcast %cst_25 : f32 to vector<1x256xf32>
      %40 = arith.addf %38, %39 : vector<1x256xf32>
      %41 = math.rsqrt %40 : vector<1x256xf32>
      %c0_26 = arith.constant 0 : index
      %c0_27 = arith.constant 0 : index
      %42 = vector.load %arg9[%c0_26, %c0_27] : memref<1x256xf32, #tpu.memory_space<vmem>>, vector<1x256xf32>
      %c0_28 = arith.constant 0 : index
      %c0_29 = arith.constant 0 : index
      %43 = vector.load %arg10[%c0_28, %c0_29] : memref<1x256xf32, #tpu.memory_space<vmem>>, vector<1x256xf32>
      %cst_30 = arith.constant 0.000000e+00 : f32
      %44 = vector.broadcast %cst_30 : f32 to vector<1x256xf32>
      %45 = arith.cmpf oge, %42, %44 : vector<1x256xf32>
      %c0_31 = arith.constant 0 : index
      %c0_32 = arith.constant 0 : index
      %46 = vector.load %arg21[%c0_31, %c0_32] : memref<2x256xf32, #tpu.memory_space<vmem>>, vector<2x256xf32>
      %c0_33 = arith.constant 0 : index
      %c0_34 = arith.constant 0 : index
      %47 = vector.load %arg22[%c0_33, %c0_34] : memref<2x256xf32, #tpu.memory_space<vmem>>, vector<2x256xf32>
      %48 = vector.shape_cast %45 : vector<1x256xi1> to vector<1x256xi1>
      %49 = vector.broadcast %48 : vector<1x256xi1> to vector<2x256xi1>
      %50 = arith.select %49, %46, %47 : vector<2x256xi1>, vector<2x256xf32>
      %51 = vector.broadcast %31 : vector<1x256xf32> to vector<2x256xf32>
      %52 = arith.subf %50, %51 : vector<2x256xf32>
      %53 = vector.broadcast %41 : vector<1x256xf32> to vector<2x256xf32>
      %54 = arith.mulf %52, %53 : vector<2x256xf32>
      %55 = vector.broadcast %42 : vector<1x256xf32> to vector<2x256xf32>
      %56 = arith.mulf %54, %55 : vector<2x256xf32>
      %57 = vector.broadcast %43 : vector<1x256xf32> to vector<2x256xf32>
      %58 = arith.addf %56, %57 : vector<2x256xf32>
      %cst_35 = arith.constant 0.000000e+00 : f32
      %59 = vector.broadcast %cst_35 : f32 to vector<2x256xf32>
      %60 = arith.maximumf %58, %59 : vector<2x256xf32>
      %61 = arith.truncf %60 : vector<2x256xf32> to vector<2x256xbf16>
      %c0_36 = arith.constant 0 : index
      %c0_37 = arith.constant 0 : index
      %62 = vector.load %arg11[%c0_36, %c0_37] : memref<256x256xbf16, #tpu.memory_space<vmem>>, vector<256x256xbf16>
      %cst_38 = arith.constant dense<0.000000e+00> : vector<2x256xf32>
      %63 = tpu.matmul %61, %62, %cst_38 {dimension_numbers = #tpu.dot_dimension_numbers<[1], [0], [0], [1], [0, 0, 1, 1], [], []>} : vector<2x256xbf16>, vector<256x256xbf16>, vector<2x256xf32> -> vector<2x256xf32>
      %cst_39 = arith.constant dense<0.000000e+00> : vector<256xf32>
      %64 = vector.multi_reduction <add>, %63, %cst_39 [0] : vector<2x256xf32> to vector<256xf32>
      %65 = vector.shape_cast %64 : vector<256xf32> to vector<1x256xf32>
      %cst_40 = arith.constant 2.000000e+00 : f32
      %66 = vector.broadcast %cst_40 : f32 to vector<1x256xf32>
      %67 = arith.divf %65, %66 : vector<1x256xf32>
      %68 = arith.mulf %63, %63 : vector<2x256xf32>
      %cst_41 = arith.constant dense<0.000000e+00> : vector<256xf32>
      %69 = vector.multi_reduction <add>, %68, %cst_41 [0] : vector<2x256xf32> to vector<256xf32>
      %70 = vector.shape_cast %69 : vector<256xf32> to vector<1x256xf32>
      %cst_42 = arith.constant 2.000000e+00 : f32
      %71 = vector.broadcast %cst_42 : f32 to vector<1x256xf32>
      %72 = arith.divf %70, %71 : vector<1x256xf32>
      %73 = arith.mulf %67, %67 : vector<1x256xf32>
      %74 = arith.subf %72, %73 : vector<1x256xf32>
      %75 = vector.broadcast %67 : vector<1x256xf32> to vector<2x256xf32>
      %76 = arith.subf %63, %75 : vector<2x256xf32>
      %cst_43 = arith.constant 9.99999974E-6 : f32
      %77 = vector.broadcast %cst_43 : f32 to vector<1x256xf32>
      %78 = arith.addf %74, %77 : vector<1x256xf32>
      %79 = math.rsqrt %78 : vector<1x256xf32>
      %80 = vector.broadcast %79 : vector<1x256xf32> to vector<2x256xf32>
      %81 = arith.mulf %76, %80 : vector<2x256xf32>
      %c0_44 = arith.constant 0 : index
      %c0_45 = arith.constant 0 : index
      %82 = vector.load %arg12[%c0_44, %c0_45] : memref<1x256xf32, #tpu.memory_space<vmem>>, vector<1x256xf32>
      %83 = vector.broadcast %82 : vector<1x256xf32> to vector<2x256xf32>
      %84 = arith.mulf %81, %83 : vector<2x256xf32>
      %c0_46 = arith.constant 0 : index
      %c0_47 = arith.constant 0 : index
      %85 = vector.load %arg13[%c0_46, %c0_47] : memref<1x256xf32, #tpu.memory_space<vmem>>, vector<1x256xf32>
      %86 = vector.broadcast %85 : vector<1x256xf32> to vector<2x256xf32>
      %87 = arith.addf %84, %86 : vector<2x256xf32>
      %cst_48 = arith.constant 0.000000e+00 : f32
      %88 = vector.broadcast %cst_48 : f32 to vector<2x256xf32>
      %89 = arith.maximumf %87, %88 : vector<2x256xf32>
      %c0_49 = arith.constant 0 : index
      %c0_50 = arith.constant 0 : index
      %90 = vector.load %arg14[%c0_49, %c0_50] : memref<256x16xf32, #tpu.memory_space<vmem>>, vector<256x16xf32>
      %cst_51 = arith.constant dense<0.000000e+00> : vector<2x16xf32>
      %91 = tpu.matmul %89, %90, %cst_51 {dimension_numbers = #tpu.dot_dimension_numbers<[1], [0], [0], [1], [0, 0, 1, 1], [], []>} : vector<2x256xf32>, vector<256x16xf32>, vector<2x16xf32> -> vector<2x16xf32>
      %c0_52 = arith.constant 0 : index
      %c0_53 = arith.constant 0 : index
      %92 = vector.load %arg15[%c0_52, %c0_53] : memref<1x16xf32, #tpu.memory_space<vmem>>, vector<1x16xf32>
      %93 = vector.broadcast %92 : vector<1x16xf32> to vector<2x16xf32>
      %94 = arith.addf %91, %93 : vector<2x16xf32>
      %c0_54 = arith.constant 0 : index
      %c0_55 = arith.constant 0 : index
      %95 = vector.load %arg16[%c0_54, %c0_55] : memref<2x16xf32, #tpu.memory_space<vmem>>, vector<2x16xf32>
      tpu.vector_store %arg16[%c0_54, %c0_55], %94 {strides = array<i32>} : memref<2x16xf32, #tpu.memory_space<vmem>>, vector<2x16xf32>,
    } else {
    }
    return
  }
  func.func @transform_0(%arg0: i32, %arg1: i32) -> (i32, i32) {
    %c0_i32 = arith.constant 0 : i32
    %c0_i32_0 = arith.constant 0 : i32
    return %arg1, %c0_i32 : i32, i32
  }
  func.func @transform_1(%arg0: i32, %arg1: i32) -> (i32, i32) {
    %c0_i32 = arith.constant 0 : i32
    %c0_i32_0 = arith.constant 0 : i32
    %c0_i32_1 = arith.constant 0 : i32
    return %c0_i32, %c0_i32_0 : i32, i32
  }
  func.func @transform_2(%arg0: i32, %arg1: i32) -> (i32, i32) {
    %c0_i32 = arith.constant 0 : i32
    %c0_i32_0 = arith.constant 0 : i32
    %c0_i32_1 = arith.constant 0 : i32
    return %c0_i32, %c0_i32_0 : i32, i32
  }
  func.func @transform_3(%arg0: i32, %arg1: i32) -> (i32, i32) {
    %c0_i32 = arith.constant 0 : i32
    %c0_i32_0 = arith.constant 0 : i32
    %c0_i32_1 = arith.constant 0 : i32
    return %c0_i32, %c0_i32_0 : i32, i32
  }
  func.func @transform_4(%arg0: i32, %arg1: i32) -> (i32, i32) {
    %c0_i32 = arith.constant 0 : i32
    %c0_i32_0 = arith.constant 0 : i32
    %c0_i32_1 = arith.constant 0 : i32
    return %c0_i32, %c0_i32_0 : i32, i32
  }
  func.func @transform_5(%arg0: i32, %arg1: i32) -> (i32, i32) {
    %c0_i32 = arith.constant 0 : i32
    %c0_i32_0 = arith.constant 0 : i32
    %c0_i32_1 = arith.constant 0 : i32
    return %c0_i32, %c0_i32_0 : i32, i32
  }
  func.func @transform_6(%arg0: i32, %arg1: i32) -> (i32, i32) {
    %c0_i32 = arith.constant 0 : i32
    %c0_i32_0 = arith.constant 0 : i32
    %c0_i32_1 = arith.constant 0 : i32
    return %c0_i32, %c0_i32_0 : i32, i32
  }
  func.func @transform_7(%arg0: i32, %arg1: i32) -> (i32, i32) {
    %c0_i32 = arith.constant 0 : i32
    %c0_i32_0 = arith.constant 0 : i32
    %c0_i32_1 = arith.constant 0 : i32
    return %c0_i32, %c0_i32_0 : i32, i32
  }
  func.func @transform_8(%arg0: i32, %arg1: i32) -> (i32, i32) {
    %c0_i32 = arith.constant 0 : i32
    %c0_i32_0 = arith.constant 0 : i32
    %c0_i32_1 = arith.constant 0 : i32
    return %c0_i32, %c0_i32_0 : i32, i32
  }
  func.func @transform_9(%arg0: i32, %arg1: i32) -> (i32, i32) {
    %c0_i32 = arith.constant 0 : i32
    %c0_i32_0 = arith.constant 0 : i32
    %c0_i32_1 = arith.constant 0 : i32
    return %c0_i32, %c0_i32_0 : i32, i32
  }
  func.func @transform_10(%arg0: i32, %arg1: i32) -> (i32, i32) {
    %c0_i32 = arith.constant 0 : i32
    %c0_i32_0 = arith.constant 0 : i32
    %c0_i32_1 = arith.constant 0 : i32
    return %c0_i32, %c0_i32_0 : i32, i32
  }
  func.func @transform_11(%arg0: i32, %arg1: i32) -> (i32, i32) {
    %c0_i32 = arith.constant 0 : i32
    %c0_i32_0 = arith.constant 0 : i32
    %c0_i32_1 = arith.constant 0 : i32
    return %c0_i32, %c0_i32_0 : i32, i32
  }
  func.func @transform_12(%arg0: i32, %arg1: i32) -> (i32, i32) {
    %c0_i32 = arith.constant 0 : i32
    %c0_i32_0 = arith.constant 0 : i32
    %c0_i32_1 = arith.constant 0 : i32
    return %c0_i32, %c0_i32_0 : i32, i32
  }
  func.func @transform_13(%arg0: i32, %arg1: i32) -> (i32, i32) {
    %c0_i32 = arith.constant 0 : i32
    %c0_i32_0 = arith.constant 0 : i32
    %c0_i32_1 = arith.constant 0 : i32
    return %c0_i32, %c0_i32_0 : i32, i32
  }
  func.func @transform_14(%arg0: i32, %arg1: i32) -> (i32, i32) {
    %c0_i32 = arith.constant 0 : i32
    %c0_i32_0 = arith.constant 0 : i32
    %c0_i32_1 = arith.constant 0 : i32
    return %c0_i32, %c0_i32_0 : i32, i32
  }
}

</mosaic_0001>

<bundles_post_ra>
// kernel: custom-call.57
= control target key start
LH: loop header
LB: loop body
LE: loop exit
PB: predicated region body
PF: predicated region fallthrough
CT: control target
= control target key end

     0   :  { %s645_s9 = smov 0   ;;  %s647_s10 = smov 0   ;;  %s795_s0 = inlined_call_operand.vmem [shape: f32[2,6,3], index: 0, kind: input, shape index: {}]   ;;  %s796_s1 = inlined_call_operand.vmem [shape: f32[2,6,3], index: 1, kind: output, shape index: {0}]   ;;  %s797_s2 = inlined_call_operand.vmem [shape: f32[2,3], index: 2, kind: output, shape index: {1}]  }
   0x1   :  { %s649_s11 = smov 0   ;;  %s651_s12 = smov 0  }
   0x2   :  { %s653_s13 = smov 0  }
   0x3 LB: > { %s28_s14 = sadd.s32 1, %s618_s12  ;;  %s500_s15 = sadd.s32 4294967295, %s622_s13   ;;  %s622_s13 = sphi %s653_s13, %s9_s13   ;;  %s618_s12 = sphi %s651_s12, %s804_s12   ;;  %s614_s11 = sphi %s649_s11, %s803_s11   ;;  %s610_s10 = sphi %s647_s10, %s802_s10   ;;  %s606_s9 = sphi %s645_s9, %s801_s9  }
   0x4   : > { %p30_p0 = scmp.ge.s32.totalorder %s28_s14, 2  ;;  %s33_s16 = ssub.s32 0, %s618_s12 }
   0x5   : > { %s502_s17 = smin.u32 %s618_s12, %s33_s16  ;;  %p57_p1 = scmp.ne.s32.totalorder %s610_s10, %s606_s9 }
   0x6   : > { %s806_s14 = smov (%p30_p0, %s28_s14), 0  ;;  %s35_s18 = sshrl.u32 %s502_s17, 3 }
   0x7   : > { %s39_s19 = ssub.s32 0, %s806_s14  ;;  %p58_p2 = scmp.eq.s32.totalorder %s500_s15, 1 }
   0x8   : > { %s503_s20 = smin.u32 %s39_s19, %s806_s14  ;;  %s47_s24 = sadd.s32 1, %s610_s10 }
   0x9   : > { %s41_s21 = sshrl.u32 %s503_s20, 3  ;;  %p680_p3 = por %p58_p2, %p57_p1 }
   0xa   : > { %s44_s23 = ssub.s32 %s35_s18, %s41_s21  ;;  %p505_p5 = scmp.ge.s32.totalorder %s622_s13, 2 }
   0xb   : > { %p45_p4 = scmp.eq.s32.totalorder %s44_s23, 0  ;;  %s82_s26 = sand.u32 (!%p505_p5), 1, %s622_s13  }
   0xc   : > { %80 = sbr.rel (%p505_p5) target bundleno = 19 (0x13), region = 16  ;;  %s507_s27 = sshll.u32 (!%p505_p5), %s618_s12, 3 }
   0xd   : > { %s686_s25 = scalar_select %p45_p4, %s610_s10, %s47_s24  }
   0xe   : > { %s506_s28 = sshll.u32 (!%p505_p5), %s82_s26, 3  ;;  %s88_s3 = scalar_lea.vmem (!%p505_p5), %s795_s0, %s507_s27 }
   0xf   : > { %v116_v0 = vld [vmem:[%s88_s3] sm:$0xff] (!%p505_p5)  ;;  %s84_s4 = scalar_lea.vmem (!%p505_p5), [#allocation0], %s506_s28 }
  0x10   : > { %117 = vst [vmem:[%s84_s4] sm:$0xff] (!%p505_p5), %v116_v0 }
  0x13 PF: > { %p508_p6 = scmp.ge.s32.totalorder %s622_s13, 1  ;;  %p122_p7 = scmp.lt.s32.totalorder %s622_s13, 3 }
  0x15   : > { %p123_p8 = pnand %p508_p6, %p122_p7 }
  0x17   : > { %126 = sbr.rel (%p123_p8) target bundleno = 330 (0x14a), region = 54 }
  0x1e   : > { %s129_s5 = sand.u32 1, %s500_s15   ;;  %s143_s6 = sand.u32 1, %s606_s9   ;;  %v628_v2 = vmov 0.0  }
  0x1f   : > { %s509_s7 = sshll.u32 %s129_s5, 3  ;;  %s697_s8 = sshll.u32 %s143_s6, 1 }
  0x20   : > { %s152_s16 = sand.u32 7, %s614_s11   ;;  %s131_s17 = scalar_lea.vmem [#allocation0], %s509_s7 }
  0x21   : > { %v154_v1 = vld [vmem:[%s131_s17] sm:$0xff]  ;;  %s700_s18 = scalar_lea.vmem [#allocation1], %s509_s7  ;;  %s703_s19 = scalar_lea.vmem [#allocation2], %s152_s16 }
  0x22   : > { %155 = vst [vmem:[%s700_s18] sm:$0xff] %v154_v1  ;;  %156 = vst [vmem:[%s703_s19] sm:$0x1] %v628_v2  ;;  %s145_s15 = scalar_lea.vmem [#allocation3], %s697_s8  ;;  %s707_s20 = smov 0  }
  0x23 LB: >> { %v164_v3 = vlaneseq  ;;  %v716_v5 = vstv %s626_s20  ;;  %s191_s9 = scalar_lea.vmem %s700_s18, %s626_s20 [#allocation1]  ;;  %s249_s21 = scalar_lea.vmem [#allocation4], %s626_s20  ;;  %v629_v59 = vmov 1.0   ;;  %s626_s20 = sphi %s707_s20, %s162_s20  }
  0x24   : >> { %s266_s23 = smov [#allocation4] }
  0x25   : >> { %v713_v4 = vshrl.u32 %v164_v3, 7  ;;  %v243_v48 = vand.u32 127, %v164_v3 }
  0x27   : >> { %vm168_vm0 = vcmp.gt.s32.totalorder %v713_v4, %v716_v5  ;;  %vm169_vm1 = vcmp.lt.s32.totalorder %v713_v4, 6  ;;  %v230_v4 = vmov %v713_v4  ;;  %vm734_vm12 = vcmp.eq.s32.totalorder %v243_v48, %v716_v5 }
  0x28   : >> { %vm170_vm2 = vmand %vm168_vm0, %vm169_vm1  ;;  %vm234_vm9 = vcmp.gt.s32.totalorder %v230_v4, %v716_v5  ;;  %vm235_vm10 = vcmp.lt.s32.totalorder %v230_v4, 6  ;;  %v269_v4 = vmov %v713_v4  ;;  %vm295_vm15 = vcmp.gt.s32.totalorder %v243_v48, %v716_v5 }
  0x29   : >> { %v163_v6 = vld [vmem:[%s700_s18] sm:$0xff]  ;;  %v192_v15 = vld [vmem:[%s191_s9] ss:$0 sm:$0xff]  ;;  %s227_s18 = smov %s700_s18  ;;  %vm236_vm11 = vmand %vm234_vm9, %vm235_vm10  ;;  %vm274_vm13 = vcmp.lt.s32.totalorder %v269_v4, 6  ;;  %v286_v4 = vmov %v713_v4 }
  0x2a   : >> { %v171_v7 = vsel %vm170_vm2, %v163_v6, 0.0  ;;  %v193_v16 = vand.u32 2147483647, %v192_v15  ;;  %vm218_vm8 = vcmp.lt.f32.partialorder %v192_v15, 0.0  ;;  %v231_v45 = vld [vmem:[%s227_s18] sm:$0xff]  ;;  %s265_s18 = smov %s700_s18  ;;  %vm303_vm14 = vcmp.ge.s32.totalorder %v286_v4, %v716_v5 }
  0x2b   : >> { %v172_v8 = vmul.f32 %v171_v7, %v171_v7  ;;  %v237_v49 = vsel %vm236_vm11, %v231_v45, 0.0  ;;  %v262_v60 = vld [vmem:[%s703_s19] ss:$0 sm:$0xff]  ;;  %vm304_vm0 = vmand %vm734_vm12, %vm303_vm14 }
  0x2c   : >> { %v194_v21 = vmax.f32 %v193_v16, 0.0  ;;  %v272_v63 = vld [vmem:[%s265_s18] sm:$0xff]  ;;  %s282_s18 = smov %s265_s18 }
  0x2d   : >> { %v173_v9 = vrot.slane %v172_v8, 4  ;;  %s307_s24 = scalar_lea.vmem %s282_s18, %s626_s20  ;;  %s162_s20 = sadd.s32 1, %s626_s20  }
  0x2e   : >> { %p159_p9 = scmp.ge.s32.totalorder %s162_s20, 3  }
  0x2f   : >> { %v174_v10 = vadd.f32 %v173_v9, %v172_v8  ;;  %s515_s26 = sshll.u32 (%p159_p9), %s614_s11, 3 }
  0x30   : > { %s332_s29 = scalar_lea.vmem (%p159_p9), %s796_s1, %s515_s26 }
  0x31   : >> { %v175_v11 = vrot.slane %v174_v10, 2 }
  0x33   : >> { %v176_v12 = vadd.f32 %v175_v11, %v174_v10 }
  0x35   : >> { %v177_v13 = vrot.slane %v176_v12, 1 }
  0x37   : >> { %v178_v14 = vadd.f32 %v177_v13, %v176_v12  ;;  %v293_v13 = vld [vmem:[%s282_s18] sm:$0xff] }
  0x39   : >> { %570 = vrsqrt.f32 %v178_v14  ;;  %vm181_vm3 = vcmp.eq.f32.partialorder %v178_v14, inf  ;;  %v184_v18 = vand.u32 2147483648, %v178_v14  ;;  %vm183_vm4 = vcmp.eq.f32.partialorder %v178_v14, 0.0 }
  0x43   : >> { %v571_v17 = vpop.eup %570 }
  0x44   : >> { %v180_v19 = vmul.f32 %v571_v17, %v178_v14 }
  0x46   : >> { %v182_v20 = vsel %vm181_vm3, %v178_v14, %v180_v19 }
  0x47   : >> { %v185_v22 = vsel %vm183_vm4, %v184_v18, %v182_v20 }
  0x48   : >> { %v195_v23 = vand.u32 2147483647, %v185_v22 }
  0x4a   : >> { %v196_v24 = vmax.f32 %v194_v21, %v195_v23 }
  0x4c   : >> { %572 = vrcp.f32 %v196_v24  ;;  %vm208_vm7 = vcmp.eq.f32.partialorder %v196_v24, 0.0 }
  0x56   : >> { %v573_v25 = vpop.eup %572 }
  0x57   : >> { %v198_v26 = vmul.f32 %v573_v25, %v193_v16  ;;  %v201_v27 = vmul.f32 0.0, %v573_v25  ;;  %v205_v28 = vmul.f32 %v573_v25, %v195_v23 }
  0x59   : >> { %v199_v29 = vmul.f32 %v198_v26, %v198_v26  ;;  %v202_v30 = vmul.f32 %v201_v27, %v201_v27  ;;  %v206_v31 = vmul.f32 %v205_v28, %v205_v28 }
  0x5b   : >> { %v203_v32 = vadd.f32 %v202_v30, %v199_v29 }
  0x5d   : >> { %v207_v33 = vadd.f32 %v206_v31, %v203_v32 }
  0x5f   : >> { %574 = vrsqrt.f32 %v207_v33  ;;  %vm211_vm5 = vcmp.eq.f32.partialorder %v207_v33, inf  ;;  %v214_v35 = vand.u32 2147483648, %v207_v33  ;;  %vm213_vm6 = vcmp.eq.f32.partialorder %v207_v33, 0.0 }
  0x69   : >> { %v575_v34 = vpop.eup %574 }
  0x6a   : >> { %v210_v36 = vmul.f32 %v575_v34, %v207_v33 }
  0x6c   : >> { %v212_v37 = vsel %vm211_vm5, %v207_v33, %v210_v36 }
  0x6d   : >> { %v215_v38 = vsel %vm213_vm6, %v214_v35, %v212_v37 }
  0x6e   : >> { %v216_v39 = vmul.f32 %v215_v38, %v196_v24 }
  0x70   : >> { %v217_v40 = vsel %vm208_vm7, 0.0, %v216_v39 }
  0x71   : >> { %v219_v41 = vxor.u32 2147483648, %v217_v40 }
  0x73   : >> { %v220_v42 = vsel %vm218_vm8, %v217_v40, %v219_v41 }
  0x74   : >> { %v726_v43 = vsel %vm183_vm4, %v192_v15, %v220_v42  ;;  %576 = vrcp.f32 %v220_v42  ;;  %v221_v46 = vsub.f32 %v220_v42, %v192_v15 }
  0x75   : >> { %v226_v44 = vsub.f32 %v192_v15, %v726_v43 }
  0x77   : >> { %578 = vrcp.f32 %v226_v44 }
  0x7e   : >> { %v577_v47 = vpop.eup %576 }
  0x7f   : >> { %v223_v50 = vmul.f32 %v577_v47, %v221_v46 }
  0x81   : >> { %v579_v51 = vpop.eup %578  ;;  %v225_v55 = vsel %vm183_vm4, 0.0, %v223_v50 }
  0x82   : >> { %v239_v52 = vmul.f32 %v579_v51, %v237_v49  ;;  %v255_v57 = vsel %vm734_vm12, %v225_v55, 0.0 }
  0x84   : >> { %v240_v54 = vsel %vm183_vm4, 0.0, %v239_v52 }
  0x85   : >> { %v245_v56 = vsel %vm734_vm12, %v240_v54, 0.0 }
  0x86   : >> { %246 = vadd.xlane.f32.xlu0 %v245_v56 }
  0x8a   : >> { %256 = vadd.xlane.f32.xlu0 %v255_v57 }
 0x113   : >> { %v247_v58 = vpop.xlane.xlu0 %246 }
 0x114   : >> { %248 = vst [vmem:[#allocation4] sm:$0xff] %v247_v58 }
 0x115   : >> { %250 = vst [vmem:[%s249_s21] sm:$0x1] %v629_v59 }
 0x117   : >> { %v257_v61 = vpop.xlane.xlu0 %256 }
 0x118   : >> { %v263_v62 = vsel %vm734_vm12, %v257_v61, %v262_v60 }
 0x119   : >> { %264 = vst [vmem:[%s703_s19] sm:$0x1] %v263_v62 }
 0x11c   : >> { %v271_v0 = vld [vmem:[%s266_s23] sm:$0xff]  ;;  %s283_s23 = smov %s266_s23 }
 0x11d   : >> { %v273_v1 = vmul.f32 %v272_v63, %v271_v0  ;;  %v291_v12 = vld [vmem:[%s283_s23] sm:$0xff] }
 0x11f   : >> { %v275_v2 = vsel %vm274_vm13, %v273_v1, 0.0 }
 0x120   : >> { %v276_v3 = vrot.slane %v275_v2, 4  ;;  %v318_v4 = vld [vmem:[#allocation2] sm:$0x3] (%p159_p9) }
 0x121   : > { %320 = vst [vmem:[%s145_s15] sm:$0x3] (%p159_p9), %v318_v4 }
 0x122   : >> { %v277_v6 = vadd.f32 %v276_v3, %v275_v2 }
 0x124   : >> { %v278_v7 = vrot.slane %v277_v6, 2 }
 0x126   : >> { %v279_v8 = vadd.f32 %v278_v7, %v277_v6 }
 0x128   : >> { %v280_v9 = vrot.slane %v279_v8, 1 }
 0x12a   : >> { %v281_v10 = vadd.f32 %v280_v9, %v279_v8 }
 0x12c   : >> { %v287_v11 = vmul.f32 %v281_v10, %v257_v61 }
 0x12e   : >> { %v292_v14 = vmul.f32 %v291_v12, %v287_v11 }
 0x130   : >> { %v296_v15 = vsub.f32 %v293_v13, %v292_v14 }
 0x132   : >> { %v297_v16 = vsel %vm295_vm15, %v296_v15, %v293_v13 }
 0x133   : >> { %v305_v17 = vsel %vm304_vm0, %v291_v12, %v297_v16 }
 0x134   : >> { %306 = vst [vmem:[%s282_s18] sm:$0xff] %v305_v17 }
 0x137   : > { %161 = sbr.rel (!%p159_p9) target bundleno = 35 (0x23), region = 175 }
 0x13b   : >> { %v308_v18 = vld [vmem:[%s307_s24] ss:$0 sm:$0xff] }
 0x13c   : >> { %v313_v19 = vsel %vm734_vm12, %v726_v43, %v308_v18 }
 0x13d   : >> { %314 = vst [vmem:[%s307_s24] sm:$0x1] %v313_v19 }
 0x13e   : > { %p368_p10 = scmp.lt.s32.totalorder (%p680_p3), %s614_s11, 0  ;;  %s369_s30 = ssub.s32 (%p680_p3), 0, %s614_s11  ;;  %v391_v20 = vld [vmem:[%s145_s15] sm:$0x3] (%p680_p3) }
 0x13f   : > { %367 = sbr.rel (!%p680_p3) target bundleno = 330 (0x14a), region = 99  ;;  %s516_s3 = smin.u32 (%p680_p3), %s614_s11, %s369_s30 }
 0x140   : > { %s371_s4 = sshrl.u32 (%p680_p3), %s516_s3, 3 }
 0x141   : > { %s372_s5 = ssub.s32 (%p680_p3), 0, %s371_s4 }
 0x144   : > { %v360_v5 = vld [vmem:[%s700_s18] sm:$0xff] }
 0x145   : > { %361 = vst [vmem:[%s332_s29] sm:$0xff] %v360_v5 }
 0x146   : > { %s808_s5 = smov (!%p368_p10, %s372_s5), %s371_s4 }
 0x147   : > { %s517_s6 = sshll.u32 %s808_s5, 1 }
 0x148   : > { %s375_s17 = scalar_lea.vmem %s797_s2, %s517_s6 }
 0x149   : > { %392 = vst [vmem:[%s375_s17] sm:$0x3] %v391_v20 }
 0x14a PF: > { %s9_s13 = sadd.s32 1, %s622_s13   ;;  %s801_s9 = smov %s610_s10 }
 0x14b   : > { %p6_p11 = scmp.ge.s32.totalorder %s9_s13, 4   ;;  %s802_s10 = smov %s686_s25 }
 0x14c   : > { %s803_s11 = smov %s618_s12  ;;  %s804_s12 = smov %s806_s14 }
 0x14d   :  { %8 = sbr.rel (!%p6_p11) target bundleno = 3 (0x3), region = 186 }

// kernel: custom-call.58
= control target key start
LH: loop header
LB: loop body
LE: loop exit
PB: predicated region body
PF: predicated region fallthrough
CT: control target
= control target key end

     0   :  { %s236_s6 = smov 0   ;;  %s263_s0 = inlined_call_operand.vmem [shape: f32[2,3,3], index: 0, kind: input, shape index: {}]   ;;  %s264_s1 = inlined_call_operand.vmem [shape: f32[2,3,3], index: 1, kind: output, shape index: {}]  }
   0x1 LB: > { %s198_s7 = sadd.s32 4294967295, %s224_s6   ;;  %p200_p0 = scmp.ge.s32.totalorder %s224_s6, 2  ;;  %s224_s6 = sphi %s236_s6, %s7_s6  }
   0x2   : > { %s23_s8 = sand.u32 (!%p200_p0), 1, %s224_s6   ;;  %s202_s9 = sshll.u32 (!%p200_p0), %s224_s6, 2 }
   0x3   : > { %21 = sbr.rel (%p200_p0) target bundleno = 10 (0xa), region = 16  ;;  %s201_s10 = sshll.u32 (!%p200_p0), %s23_s8, 2 }
   0x4   : > { %s27_s13 = scalar_lea.vmem (!%p200_p0), %s263_s0, %s202_s9  ;;  %s25_s14 = scalar_lea.vmem (!%p200_p0), [#allocation1], %s201_s10 }
   0x5   : > { %v43_v0 = vld [vmem:[%s27_s13] sm:$0xf] (!%p200_p0) }
   0x6   : > { %44 = vst [vmem:[%s25_s14] sm:$0xf] (!%p200_p0), %v43_v0 }
   0xa PF: > { %p203_p1 = scmp.ge.s32.totalorder %s224_s6, 1  ;;  %p60_p2 = scmp.lt.s32.totalorder %s224_s6, 3 }
   0xc   : > { %p61_p3 = pnand %p203_p1, %p60_p2 }
   0xd   : > { %s252_s15 = sand.u32 (!%p61_p3), 1, %s198_s7   ;;  %v82_v1 = vlaneseq (!%p61_p3)  ;;  %vm96_vm1 = vcmask (!%p61_p3), 23552   ;;  %s207_s19 = sshll.u32 (!%p61_p3), %s198_s7, 2 }
   0xe   : > { %64 = sbr.rel (%p61_p3) target bundleno = 334 (0x14e), region = 50  ;;  %s204_s16 = sshll.u32 (!%p61_p3), %s252_s15, 2 }
   0xf   : > { %s73_s17 = scalar_lea.vmem (!%p61_p3), [#allocation1], %s204_s16  ;;  %v83_v3 = vand.u32 (!%p61_p3), 127, %v82_v1  ;;  %v85_v4 = vshrl.u32 (!%p61_p3), %v82_v1, 7  ;;  %s77_s18 = scalar_lea.vmem (!%p61_p3), [#allocation3], %s204_s16 }
  0x10   : > { %v80_v2 = vld [vmem:[%s73_s17] sm:$0xf] (!%p61_p3)  ;;  %s128_s22 = scalar_lea.vmem (!%p61_p3), %s264_s1, %s207_s19 }
  0x11   : > { %81 = vst [vmem:[#allocation0] sm:$0xf] (!%p61_p3), %v80_v2  ;;  %vm91_vm0 = vcmp.eq.s32.totalorder (!%p61_p3), %v83_v3, 0  ;;  %vm87_vm2 = vcmp.eq.s32.totalorder (!%p61_p3), %v83_v3, %v85_v4  ;;  %vm100_vm3 = vcmp.eq.s32.totalorder (!%p61_p3), %v83_v3, 1  ;;  %vm111_vm4 = vcmp.eq.s32.totalorder (!%p61_p3), %v83_v3, 2 }
  0x18   : > { %v88_v5 = vld [vmem:[#allocation0] sm:$0xff] }
  0x19   : > { %v95_v6 = vld [vmem:[#allocation0 + $0x1] ss:$0 sm:$0xff]  ;;  %v92_v7 = vsel %vm91_vm0, %v88_v5, 1.0  ;;  %v106_v11 = vld [vmem:[#allocation0 + $0x2] ss:$0 sm:$0xff] }
  0x1a   : > { %v97_v8 = vsel %vm96_vm1, %v95_v6, 0.0  ;;  %v93_v9 = vsel %vm87_vm2, %v92_v7, 0.0  ;;  %v108_v12 = vsel %vm96_vm1, %v106_v11, 0.0 }
  0x1b   : > { %v101_v10 = vmul.f32 %v97_v8, %v93_v9 }
  0x1d   : > { %102 = vadd.xlane.f32.xlu0 %v101_v10 }
  0xaa   : > { %v103_v13 = vpop.xlane.xlu0 %102 }
  0xab   : > { %v104_v14 = vsel %vm100_vm3, %v103_v13, %v93_v9 }
  0xac   : > { %v112_v15 = vmul.f32 %v108_v12, %v104_v14 }
  0xae   : > { %113 = vadd.xlane.f32.xlu0 %v112_v15 }
 0x13b   : > { %v114_v16 = vpop.xlane.xlu0 %113 }
 0x13c   : > { %v115_v17 = vsel %vm111_vm4, %v114_v16, %v104_v14 }
 0x13d   : > { %116 = vst [vmem:[#allocation2] sm:$0xff] %v115_v17 }
 0x144   : > { %v120_v18 = vld [vmem:[#allocation2] sm:$0xf] }
 0x145   : > { %122 = vst [vmem:[%s77_s18] sm:$0xf] %v120_v18 }
 0x14c   : > { %v144_v19 = vld [vmem:[%s77_s18] sm:$0xf] }
 0x14d   : > { %145 = vst [vmem:[%s128_s22] sm:$0xf] %v144_v19 }
 0x14e PF: > { %s7_s6 = sadd.s32 1, %s224_s6  }
 0x14f   : > { %p4_p4 = scmp.ge.s32.totalorder %s7_s6, 4  }
 0x151   :  { %6 = sbr.rel (!%p4_p4) target bundleno = 1 (0x1), region = 112 }

// kernel: custom-call.50
= control target key start
LH: loop header
LB: loop body
LE: loop exit
PB: predicated region body
PF: predicated region fallthrough
CT: control target
= control target key end

     0   :  { %s6_s0 = inlined_call_operand.hbm [shape: pred[2], index: 0, kind: output, shape index: {}]  }

// kernel: custom-call.55
= control target key start
LH: loop header
LB: loop body
LE: loop exit
PB: predicated region body
PF: predicated region fallthrough
CT: control target
= control target key end

     0   :  { %s343_s6 = smov 0   ;;  %s345_s7 = smov 0   ;;  %s390_s0 = inlined_call_operand.vmem [shape: f32[2,3,3], index: 0, kind: input, shape index: {}]   ;;  %s391_s1 = inlined_call_operand.vmem [shape: f32[2,3,3], index: 1, kind: output, shape index: {}]  }
   0x1   :  { %s347_s8 = smov 0  }
   0x2 LB: > { %s265_s9 = sadd.s32 4294967295, %s330_s8   ;;  %s26_s10 = sadd.s32 1, %s326_s7  ;;  %s330_s8 = sphi %s347_s8, %s7_s8   ;;  %s326_s7 = sphi %s345_s7, %s393_s7   ;;  %s322_s6 = sphi %s343_s6, %s392_s6  }
   0x3   : > { %p28_p0 = scmp.ge.s32.totalorder %s26_s10, 2  ;;  %p267_p1 = scmp.ge.s32.totalorder %s330_s8, 2 }
   0x4   : > { %s42_s11 = sand.u32 (!%p267_p1), 1, %s330_s8   ;;  %s269_s12 = sshll.u32 (!%p267_p1), %s326_s7, 2 }
   0x5   : > { %s395_s10 = smov (%p28_p0, %s26_s10), 0  ;;  %40 = sbr.rel (%p267_p1) target bundleno = 12 (0xc), region = 16 }
   0x6   : > { %s268_s13 = sshll.u32 (!%p267_p1), %s42_s11, 2  ;;  %s48_s16 = scalar_lea.vmem (!%p267_p1), %s390_s0, %s269_s12 }
   0x7   : > { %v64_v0 = vld [vmem:[%s48_s16] sm:$0xf] (!%p267_p1)  ;;  %s44_s17 = scalar_lea.vmem (!%p267_p1), [#allocation1], %s268_s13 }
   0x8   : > { %65 = vst [vmem:[%s44_s17] sm:$0xf] (!%p267_p1), %v64_v0 }
   0xc PF: > { %p270_p2 = scmp.ge.s32.totalorder %s330_s8, 1  ;;  %p81_p3 = scmp.lt.s32.totalorder %s330_s8, 3 }
   0xe   : > { %p82_p4 = pnand %p270_p2, %p81_p3 }
   0xf   : > { %v332_v1 = vmov (!%p82_p4), 0.0   ;;  %s370_s18 = sand.u32 (!%p82_p4), 1, %s265_s9   ;;  %vm104_vm0 = vcmask (!%p82_p4), 7168   ;;  %vm122_vm1 = vcmask (!%p82_p4), 15368   ;;  %vm139_vm2 = vcmask (!%p82_p4), 1047553   ;;  %s274_s22 = sshll.u32 (!%p82_p4), %s322_s6, 2 }
  0x10   : > { %85 = sbr.rel (%p82_p4) target bundleno = 541 (0x21d), region = 50  ;;  %103 = vst [vmem:[#allocation2] sm:$0xff] (!%p82_p4), %v332_v1  ;;  %s271_s19 = sshll.u32 (!%p82_p4), %s370_s18, 2  ;;  %vm140_vm3 = vmand (!%p82_p4), %vm122_vm1, %vm139_vm2  ;;  %vm144_vm4 = vcmask (!%p82_p4), 23568   ;;  %vm161_vm5 = vcmask (!%p82_p4), 1047554  }
  0x11   : > { %s94_s20 = scalar_lea.vmem (!%p82_p4), [#allocation1], %s271_s19  ;;  %vm162_vm6 = vmand (!%p82_p4), %vm144_vm4, %vm161_vm5  ;;  %s98_s21 = scalar_lea.vmem (!%p82_p4), [#allocation3], %s271_s19 }
  0x12   : > { %v101_v5 = vld [vmem:[%s94_s20] sm:$0xf] (!%p82_p4)  ;;  %s179_s25 = scalar_lea.vmem (!%p82_p4), %s391_s1, %s274_s22 }
  0x13   : > { %102 = vst [vmem:[#allocation0] sm:$0xf] (!%p82_p4), %v101_v5 }
  0x17   : > { %v105_v2 = vld [vmem:[#allocation2] ss:$0 sm:$0xff] }
  0x18   : > { %v107_v3 = vmul.f32 %v105_v2, %v105_v2  ;;  %v114_v4 = vmul.f32 0.0, %v105_v2 }
  0x1a   : > { %108 = vadd.xlane.f32.xlu0 %v107_v3  ;;  %v106_v6 = vld [vmem:[#allocation0] ss:$0 sm:$0xff]  ;;  %v126_v18 = vld [vmem:[#allocation0 + $0x1] ss:$0 sm:$0xff]  ;;  %v148_v30 = vld [vmem:[#allocation0 + $0x2] ss:$0 sm:$0xff] }
  0x1b   : > { %v112_v10 = vld [vmem:[#allocation0] sm:$0xff] }
  0x1e   : > { %115 = vadd.xlane.f32.xlu0 %v114_v4 }
  0xa7   : > { %v109_v7 = vpop.xlane.xlu0 %108 }
  0xa8   : > { %v110_v8 = vsub.f32 %v106_v6, %v109_v7 }
  0xaa   : > { %302 = vrsqrt.f32 %v110_v8 }
  0xab   : > { %v116_v9 = vpop.xlane.xlu0 %115 }
  0xac   : > { %v117_v11 = vsub.f32 %v112_v10, %v116_v9 }
  0xb4   : > { %v303_v12 = vpop.eup %302 }
  0xb5   : > { %v118_v13 = vmul.f32 %v303_v12, %v117_v11 }
  0xb7   : > { %v119_v14 = vsel %vm104_vm0, %v118_v13, 0.0 }
  0xb8   : > { %121 = vst [vmem:[#allocation2] sm:$0xff] %v119_v14 }
  0xbf   : > { %v124_v15 = vld [vmem:[#allocation2 + $0x1] ss:$0 sm:$0xff] }
  0xc0   : > { %v127_v16 = vmul.f32 %v124_v15, %v124_v15  ;;  %v134_v17 = vmul.f32 %v124_v15, %v119_v14 }
  0xc2   : > { %128 = vadd.xlane.f32.xlu1 %v127_v16 }
  0xc6   : > { %135 = vadd.xlane.f32.xlu1 %v134_v17 }
 0x14f   : > { %v129_v19 = vpop.xlane.xlu1 %128 }
 0x150   : > { %v130_v20 = vsub.f32 %v126_v18, %v129_v19 }
 0x152   : > { %304 = vrsqrt.f32 %v130_v20 }
 0x153   : > { %v136_v21 = vpop.xlane.xlu1 %135 }
 0x154   : > { %v137_v22 = vsub.f32 %v112_v10, %v136_v21 }
 0x15c   : > { %v305_v23 = vpop.eup %304 }
 0x15d   : > { %v138_v24 = vmul.f32 %v305_v23, %v137_v22 }
 0x15f   : > { %v141_v25 = vsel %vm140_vm3, %v138_v24, 0.0 }
 0x160   : > { %v142_v26 = vadd.f32 %v141_v25, %v119_v14 }
 0x162   : > { %143 = vst [vmem:[#allocation2] sm:$0xff] %v142_v26 }
 0x169   : > { %v146_v27 = vld [vmem:[#allocation2 + $0x2] ss:$0 sm:$0xff] }
 0x16a   : > { %v156_v28 = vmul.f32 %v146_v27, %v142_v26  ;;  %v149_v29 = vmul.f32 %v146_v27, %v146_v27 }
 0x16c   : > { %157 = vadd.xlane.f32.xlu1 %v156_v28  ;;  %150 = vadd.xlane.f32.xlu0 %v149_v29 }
 0x1f9   : > { %v151_v31 = vpop.xlane.xlu0 %150  ;;  %v158_v33 = vpop.xlane.xlu1 %157 }
 0x1fa   : > { %v152_v32 = vsub.f32 %v148_v30, %v151_v31  ;;  %v159_v34 = vsub.f32 %v112_v10, %v158_v33 }
 0x1fc   : > { %306 = vrsqrt.f32 %v152_v32 }
 0x206   : > { %v307_v35 = vpop.eup %306 }
 0x207   : > { %v160_v36 = vmul.f32 %v307_v35, %v159_v34 }
 0x209   : > { %v163_v37 = vsel %vm162_vm6, %v160_v36, 0.0 }
 0x20a   : > { %v164_v38 = vadd.f32 %v163_v37, %v142_v26 }
 0x20c   : > { %165 = vst [vmem:[#allocation2] sm:$0xff] %v164_v38 }
 0x213   : > { %v169_v39 = vld [vmem:[#allocation2] sm:$0xf] }
 0x214   : > { %171 = vst [vmem:[%s98_s21] sm:$0xf] %v169_v39 }
 0x21b   : > { %v195_v40 = vld [vmem:[%s98_s21] sm:$0xf] }
 0x21c   : > { %196 = vst [vmem:[%s179_s25] sm:$0xf] %v195_v40 }
 0x21d PF: > { %s7_s8 = sadd.s32 1, %s330_s8   ;;  %s392_s6 = smov %s326_s7 }
 0x21e   : > { %p4_p5 = scmp.ge.s32.totalorder %s7_s8, 4   ;;  %s393_s7 = smov %s395_s10 }
 0x220   :  { %6 = sbr.rel (!%p4_p5) target bundleno = 2 (0x2), region = 114 }

// kernel: custom-call.56
= control target key start
LH: loop header
LB: loop body
LE: loop exit
PB: predicated region body
PF: predicated region fallthrough
CT: control target
= control target key end

     0   :  { %s343_s6 = smov 0   ;;  %s345_s7 = smov 0   ;;  %s390_s0 = inlined_call_operand.vmem [shape: f32[2,1,3,3], index: 0, kind: input, shape index: {}]   ;;  %s391_s1 = inlined_call_operand.vmem [shape: f32[2,1,3,3], index: 1, kind: output, shape index: {}]  }
   0x1   :  { %s347_s8 = smov 0  }
   0x2 LB: > { %s269_s9 = sadd.s32 4294967295, %s330_s8   ;;  %s33_s10 = sadd.s32 1, %s326_s7  ;;  %s330_s8 = sphi %s347_s8, %s7_s8   ;;  %s326_s7 = sphi %s345_s7, %s393_s7   ;;  %s322_s6 = sphi %s343_s6, %s392_s6  }
   0x3   : > { %p35_p0 = scmp.ge.s32.totalorder %s33_s10, 2  ;;  %p271_p1 = scmp.ge.s32.totalorder %s330_s8, 2 }
   0x4   : > { %s49_s11 = sand.u32 (!%p271_p1), 1, %s330_s8   ;;  %s273_s12 = sshll.u32 (!%p271_p1), %s326_s7, 2 }
   0x5   : > { %s395_s10 = smov (%p35_p0, %s33_s10), 0  ;;  %47 = sbr.rel (%p271_p1) target bundleno = 12 (0xc), region = 16 }
   0x6   : > { %s272_s13 = sshll.u32 (!%p271_p1), %s49_s11, 2  ;;  %s56_s16 = scalar_lea.vmem (!%p271_p1), %s390_s0, %s273_s12 }
   0x7   : > { %v72_v0 = vld [vmem:[%s56_s16] sm:$0xf] (!%p271_p1)  ;;  %s51_s17 = scalar_lea.vmem (!%p271_p1), [#allocation1], %s272_s13 }
   0x8   : > { %73 = vst [vmem:[%s51_s17] sm:$0xf] (!%p271_p1), %v72_v0 }
   0xc PF: > { %p274_p2 = scmp.ge.s32.totalorder %s330_s8, 1  ;;  %p89_p3 = scmp.lt.s32.totalorder %s330_s8, 3 }
   0xe   : > { %p90_p4 = pnand %p274_p2, %p89_p3 }
  0x10   : > { %93 = sbr.rel (%p90_p4) target bundleno = 511 (0x1ff), region = 50 }
  0x17   : > { %s370_s18 = sand.u32 1, %s269_s9   ;;  %v111_v1 = vlaneseq  ;;  %v332_v11 = vmov -1.0   ;;  %s278_s22 = sshll.u32 %s322_s6, 2 }
  0x18   : > { %s275_s19 = sshll.u32 %s370_s18, 2  ;;  %s178_s25 = scalar_lea.vmem %s391_s1, %s278_s22 }
  0x19   : > { %s102_s20 = scalar_lea.vmem [#allocation1], %s275_s19  ;;  %v112_v3 = vand.u32 127, %v111_v1  ;;  %v115_v4 = vshrl.u32 %v111_v1, 7  ;;  %s106_s21 = scalar_lea.vmem [#allocation3], %s275_s19 }
  0x1a   : > { %v109_v2 = vld [vmem:[%s102_s20] sm:$0xf] }
  0x1b   : > { %110 = vst [vmem:[#allocation0] sm:$0xf] %v109_v2  ;;  %vm113_vm0 = vcmp.lt.s32.totalorder %v112_v3, 3  ;;  %vm122_vm1 = vcmp.ge.s32.totalorder %v115_v4, %v112_v3  ;;  %vm117_vm2 = vcmp.eq.s32.totalorder %v115_v4, %v112_v3  ;;  %vm136_vm4 = vcmp.eq.s32.totalorder %v112_v3, 0 }
  0x1c   : > { %vm123_vm3 = vmand %vm122_vm1, %vm113_vm0  ;;  %vm133_vm5 = vcmp.eq.s32.totalorder %v112_v3, %v115_v4  ;;  %v137_v12 = vsel %vm136_vm4, 1.0, %v332_v11  ;;  %vm144_vm6 = vcmp.eq.s32.totalorder %v112_v3, 1  ;;  %vm154_vm7 = vcmp.eq.s32.totalorder %v112_v3, 2 }
  0x1d   : > { %v138_v13 = vsel %vm133_vm5, %v137_v12, 0.0 }
  0x22   : > { %v118_v5 = vld [vmem:[#allocation0] sm:$0xff] }
  0x23   : > { %v119_v6 = vsel %vm117_vm2, %v118_v5, 0.0  ;;  %v124_v7 = vsel %vm123_vm3, %v118_v5, 0.0 }
  0x24   : > { %120 = vadd.xlane.f32.xlu0 %v119_v6 }
  0xb1   : > { %v121_v8 = vpop.xlane.xlu0 %120 }
  0xb2   : > { %306 = vrcp.f32 %v121_v8  ;;  %vm161_vm8 = vweird.f32 %v121_v8 }
  0xbc   : > { %v307_v9 = vpop.eup %306 }
  0xbd   : > { %v126_v10 = vmul.f32 %v307_v9, %v124_v7 }
  0xbf   : > { %127 = vst [vmem:[#allocation4] sm:$0xff] %v126_v10 }
  0xc6   : > { %v140_v14 = vld [vmem:[#allocation4 + $0x1] ss:$0 sm:$0xff]  ;;  %v150_v17 = vld [vmem:[#allocation4 + $0x2] ss:$0 sm:$0xff] }
  0xc7   : > { %v141_v15 = vxor.u32 2147483648, %v140_v14  ;;  %v151_v19 = vxor.u32 2147483648, %v150_v17 }
  0xc9   : > { %v145_v16 = vmul.f32 %v141_v15, %v138_v13 }
  0xcb   : > { %146 = vadd.xlane.f32.xlu0 %v145_v16 }
 0x158   : > { %v147_v18 = vpop.xlane.xlu0 %146 }
 0x159   : > { %v148_v20 = vsel %vm144_vm6, %v147_v18, %v138_v13 }
 0x15a   : > { %v155_v21 = vmul.f32 %v151_v19, %v148_v20 }
 0x15c   : > { %156 = vadd.xlane.f32.xlu1 %v155_v21 }
 0x1e9   : > { %v157_v22 = vpop.xlane.xlu1 %156 }
 0x1ea   : > { %v158_v23 = vsel %vm154_vm7, %v157_v22, %v148_v20 }
 0x1eb   : > { %v160_v24 = vmul.f32 %v307_v9, %v158_v23 }
 0x1ed   : > { %v162_v25 = vsel %vm161_vm8, %v158_v23, %v160_v24 }
 0x1ee   : > { %163 = vst [vmem:[#allocation2] sm:$0xff] %v162_v25 }
 0x1f5   : > { %v167_v26 = vld [vmem:[#allocation2] sm:$0xf] }
 0x1f6   : > { %169 = vst [vmem:[%s106_s21] sm:$0xf] %v167_v26 }
 0x1fd   : > { %v194_v27 = vld [vmem:[%s106_s21] sm:$0xf] }
 0x1fe   : > { %195 = vst [vmem:[%s178_s25] sm:$0xf] %v194_v27 }
 0x1ff PF: > { %s7_s8 = sadd.s32 1, %s330_s8   ;;  %s392_s6 = smov %s326_s7 }
 0x200   : > { %p4_p5 = scmp.ge.s32.totalorder %s7_s8, 4   ;;  %s393_s7 = smov %s395_s10 }
 0x202   :  { %6 = sbr.rel (!%p4_p5) target bundleno = 2 (0x2), region = 112 }

// kernel: custom-call.22
= control target key start
LH: loop header
LB: loop body
LE: loop exit
PB: predicated region body
PF: predicated region fallthrough
CT: control target
= control target key end

     0   :  { %s1704_s30 = smov 0   ;;  %s1706_s10 = smov 0   ;;  %s2030_s0 = inlined_call_operand.vmem [shape: f32[2,2,2], index: 0, kind: input, shape index: {}]   ;;  %s2031_s1 = inlined_call_operand.vmem [shape: f32[2,2,2], index: 1, kind: input, shape index: {}]   ;;  %s2032_s2 = inlined_call_operand.vmem [shape: f32[2,2,2], index: 2, kind: input, shape index: {}]   ;;  %s2033_s3 = inlined_call_operand.vmem [shape: f32[2,2,2], index: 3, kind: input, shape index: {}]   ;;  %s2034_s4 = inlined_call_operand.vmem [shape: f32[2,2], index: 4, kind: output, shape index: {0}]   ;;  %s2035_s5 = inlined_call_operand.vmem [shape: f32[2,2], index: 5, kind: output, shape index: {1}]   ;;  %s2036_s6 = inlined_call_operand.vmem [shape: f32[2,2,2], index: 6, kind: output, shape index: {2}]   ;;  %s2037_s7 = inlined_call_operand.vmem [shape: f32[2,2,2], index: 7, kind: output, shape index: {3}]   ;;  %s2038_s8 = inlined_call_operand.vmem [shape: f32[2,2,2], index: 8, kind: output, shape index: {4}]   ;;  %s2039_s9 = inlined_call_operand.vmem [shape: f32[2,2,2], index: 9, kind: output, shape index: {5}]  }
   0x1   :  { %s1708_s11 = smov 0  }
   0x2 LB: > { %s1720_s12 = sadd.s32 4294967295, %s1641_s11   ;;  %s1723_s13 = sadd.s32 1, %s1641_s11   ;;  %s1641_s11 = sphi %s1708_s11, %s2058_s11   ;;  %s1637_s10 = sphi %s1706_s10, %s2057_s10   ;;  %s1633_s30 = sphi %s1704_s30, %s2056_s30  }
   0x3   : > { %s20_s14 = sshrl.u32 %s1641_s11, 3  ;;  %s21_s15 = sshrl.u32 %s1723_s13, 3 }
   0x4   : > { %s22_s16 = ssub.s32 %s20_s14, %s21_s15  ;;  %s25_s17 = sadd.s32 1, %s1637_s10 }
   0x5   : > { %p23_p0 = scmp.eq.s32.totalorder %s22_s16, 0  ;;  %p35_p1 = scmp.ne.s32.totalorder %s1637_s10, %s1633_s30 }
   0x6   : > { %p36_p2 = scmp.eq.s32.totalorder %s1720_s12, 1  ;;  %p1502_p4 = scmp.ge.s32.totalorder %s1641_s11, 2 }
   0x7   : > { %s1732_s18 = scalar_select %p23_p0, %s1637_s10, %s25_s17  }
   0x8   : > { %p1734_p3 = por %p36_p2, %p35_p1  ;;  %86 = sbr.rel (%p1502_p4) target bundleno = 17 (0x11), region = 16 }
   0x9   : > { %2040 = sst [smem:[#allocation33_spill]] %s1732_s18  ;;  %s88_s20 = sand.u32 (!%p1502_p4), 1, %s1641_s11  }
   0xa   : > { %s1504_s21 = sshll.u32 (!%p1502_p4), %s1641_s11, 1  ;;  %s1503_s22 = sshll.u32 (!%p1502_p4), %s88_s20, 1 }
   0xb   : > { %s92_s25 = scalar_lea.vmem (!%p1502_p4), %s2030_s0, %s1504_s21  ;;  %s90_s26 = scalar_lea.vmem (!%p1502_p4), [#allocation1], %s1503_s22 }
   0xc   : > { %v108_v0 = vld [vmem:[%s92_s25] sm:$0x3] (!%p1502_p4)  ;;  %s129_s29 = scalar_lea.vmem (!%p1502_p4), %s2031_s1, %s1504_s21  ;;  %s166_s16 = scalar_lea.vmem (!%p1502_p4), %s2032_s2, %s1504_s21 }
   0xd   : > { %109 = vst [vmem:[%s90_s26] sm:$0x3] (!%p1502_p4), %v108_v0  ;;  %v145_v1 = vld [vmem:[%s129_s29] sm:$0x3] (!%p1502_p4)  ;;  %s127_s17 = scalar_lea.vmem (!%p1502_p4), [#allocation3], %s1503_s22  ;;  %s203_s23 = scalar_lea.vmem (!%p1502_p4), %s2033_s3, %s1504_s21 }
   0xe   : > { %146 = vst [vmem:[%s127_s17] sm:$0x3] (!%p1502_p4), %v145_v1  ;;  %v182_v2 = vld [vmem:[%s166_s16] sm:$0x3] (!%p1502_p4)  ;;  %s164_s24 = scalar_lea.vmem (!%p1502_p4), [#allocation5], %s1503_s22  ;;  %s201_s25 = scalar_lea.vmem (!%p1502_p4), [#allocation7], %s1503_s22 }
   0xf   : > { %183 = vst [vmem:[%s164_s24] sm:$0x3] %v182_v2  ;;  %v219_v3 = vld [vmem:[%s203_s23] sm:$0x3] }
  0x10   : > { %220 = vst [vmem:[%s201_s25] sm:$0x3] %v219_v3 }
  0x11 PF: > { %p1511_p5 = scmp.ge.s32.totalorder %s1641_s11, 1  ;;  %p236_p6 = scmp.lt.s32.totalorder %s1641_s11, 3 }
  0x13   : > { %p237_p7 = pnand %p1511_p5, %p236_p6 }
  0x15   : > { %240 = sbr.rel (%p237_p7) target bundleno = 999 (0x3e7), region = 140 }
  0x1c   : > { %s259_s26 = sand.u32 1, %s1720_s12   ;;  %s277_s27 = sand.u32 1, %s1633_s30   ;;  %v337_v4 = vlaneseq  ;;  %v1651_v5 = vmov 0.0  }
  0x1d   : > { %s1757_s28 = sshll.u32 %s259_s26, 1  ;;  %s1759_s18 = sshll.u32 %s277_s27, 1  ;;  %332 = vst [vmem:[#allocation12] sm:$0xff] %v1651_v5  ;;  %333 = vst [vmem:[#allocation14] sm:$0xff] %v1651_v5 }
  0x1e   : > { %334 = vst [vmem:[#allocation16] sm:$0xff] %v1651_v5  ;;  %335 = vst [vmem:[#allocation18] sm:$0xff] %v1651_v5  ;;  %v1761_v6 = vand.u32 127, %v337_v4  ;;  %v1763_v7 = vshrl.u32 %v337_v4, 7  ;;  %s261_s11 = scalar_lea.vmem [#allocation1], %s1757_s28  ;;  %s265_s30 = scalar_lea.vmem [#allocation3], %s1757_s28 }
  0x1f   : > { %v304_v8 = vld [vmem:[%s261_s11] sm:$0x3]  ;;  %v308_v9 = vld [vmem:[%s265_s30] sm:$0x3]  ;;  %s269_s21 = scalar_lea.vmem [#allocation5], %s1757_s28  ;;  %s273_s22 = scalar_lea.vmem [#allocation7], %s1757_s28 }
  0x20   : > { %305 = vst [vmem:[#allocation0] sm:$0x3] %v304_v8  ;;  %309 = vst [vmem:[#allocation2] sm:$0x3] %v308_v9  ;;  %v312_v10 = vld [vmem:[%s269_s21] sm:$0x3]  ;;  %v339_v6 = vmov %v1761_v6  ;;  %v342_v7 = vmov %v1763_v7 }
  0x21   : > { %v316_v11 = vld [vmem:[%s273_s22] sm:$0x3]  ;;  %313 = vst [vmem:[#allocation4] sm:$0x3] %v312_v10  ;;  %v352_v6 = vmov %v1761_v6  ;;  %v355_v7 = vmov %v1763_v7  ;;  %s320_s29 = smov [#allocation20]  ;;  %s323_s14 = smov [#allocation21]  ;;  %vm346_vm0 = vcmp.eq.s32.totalorder %v342_v7, %v339_v6 }
  0x22   : > { %317 = vst [vmem:[#allocation6] sm:$0x3] %v316_v11  ;;  %vm359_vm1 = vcmp.eq.s32.totalorder %v355_v7, %v352_v6  ;;  %s336_s15 = smov [#allocation12]  ;;  %s349_s16 = smov [#allocation18]  ;;  %vm1391_vm2 = vcmp.lt.s32.totalorder %v1761_v6, 2  ;;  %v1383_v6 = vmov %v1761_v6  ;;  %v1386_v7 = vmov %v1763_v7 }
  0x23   : > { %s326_s17 = smov [#allocation22]  ;;  %s329_s20 = smov [#allocation23]  ;;  %vm1396_vm3 = vcmp.eq.s32.totalorder %v1386_v7, %v1383_v6  ;;  %v1434_v6 = vmov %v1761_v6  ;;  %v1403_v7 = vmov %v1763_v7 }
  0x24   : > { %v343_v12 = vld [vmem:[%s336_s15] sm:$0x3]  ;;  %s1387_s30 = smov [#allocation20]  ;;  %s1404_s21 = smov [#allocation21]  ;;  %v1400_v6 = vmov %v1761_v6  ;;  %v1437_v7 = vmov %v1763_v7 }
  0x25   : > { %v356_v13 = vld [vmem:[%s349_s16] sm:$0x3]  ;;  %v347_v16 = vsel %vm346_vm0, 1.0, %v343_v12  ;;  %s1421_s22 = smov [#allocation22]  ;;  %v1417_v6 = vmov %v1761_v6  ;;  %v1420_v7 = vmov %v1763_v7  ;;  %vm1447_vm4 = vcmp.eq.s32.totalorder %v1437_v7, %v1434_v6 }
  0x26   : > { %v360_v17 = vsel %vm359_vm1, 1.0, %v356_v13  ;;  %348 = vst [vmem:[%s336_s15] sm:$0x3] %v347_v16 }
  0x27   : > { %v321_v14 = vld [vmem:[#allocation0] sm:$0xff]  ;;  %v324_v15 = vld [vmem:[#allocation2] sm:$0xff]  ;;  %361 = vst [vmem:[%s349_s16] sm:$0x3] %v360_v17 }
  0x28   : > { %322 = vst [vmem:[%s320_s29] sm:$0xff] %v321_v14  ;;  %325 = vst [vmem:[%s323_s14] sm:$0xff] %v324_v15  ;;  %v327_v18 = vld [vmem:[#allocation4] sm:$0xff]  ;;  %s1438_s29 = smov [#allocation23] }
  0x29   : > { %v330_v19 = vld [vmem:[#allocation6] sm:$0xff]  ;;  %328 = vst [vmem:[%s326_s17] sm:$0xff] %v327_v18 }
  0x2a   : > { %331 = vst [vmem:[%s329_s20] sm:$0xff] %v330_v19 }
  0x2f   : > { %v1393_v20 = vld [vmem:[%s1387_s30] sm:$0x3] }
  0x30   : > { %v1410_v21 = vld [vmem:[%s1404_s21] sm:$0x3]  ;;  %v1394_v22 = vsel %vm1391_vm2, %v1393_v20, 0.0 }
  0x31   : > { %v1411_v23 = vsel %vm1391_vm2, %v1410_v21, 0.0  ;;  %v1427_v24 = vld [vmem:[%s1421_s22] sm:$0x3]  ;;  %v1395_v26 = vmul.f32 %v1394_v22, %v1394_v22 }
  0x32   : > { %v1444_v25 = vld [vmem:[%s1438_s29] sm:$0x3]  ;;  %v1412_v27 = vmul.f32 %v1411_v23, %v1411_v23  ;;  %v1428_v28 = vsel %vm1391_vm2, %v1427_v24, 0.0 }
  0x33   : > { %v1445_v29 = vsel %vm1391_vm2, %v1444_v25, 0.0  ;;  %v1429_v30 = vmul.f32 %v1428_v28, %v1428_v28  ;;  %v1397_v33 = vsel %vm1396_vm3, 0.0, %v1395_v26 }
  0x34   : > { %v1414_v31 = vadd.f32 %v1412_v27, %v1395_v26  ;;  %v1446_v32 = vmul.f32 %v1445_v29, %v1445_v29  ;;  %v1413_v34 = vadd.f32 %v1412_v27, %v1397_v33 }
  0x36   : > { %v1431_v35 = vadd.f32 %v1429_v30, %v1414_v31  ;;  %v1430_v36 = vadd.f32 %v1429_v30, %v1413_v34  ;;  %v1448_v37 = vsel %vm1447_vm4, 0.0, %v1446_v32 }
  0x38   : > { %v1450_v38 = vadd.f32 %v1446_v32, %v1431_v35  ;;  %v1449_v39 = vadd.f32 %v1448_v37, %v1430_v36 }
  0x3a   : > { %1451 = vadd.xlane.f32.xlu0 %v1450_v38 }
  0x3e   : > { %1459 = vadd.xlane.f32.xlu0 %v1449_v39 }
  0xc7   : > { %v1452_v40 = vpop.xlane.xlu0 %1451 }
  0xc8   : > { %v1453_v41 = vrot.slane %v1452_v40, 4 }
  0xca   : > { %v1454_v42 = vadd.f32 %v1453_v41, %v1452_v40 }
  0xcb   : > { %v1460_v43 = vpop.xlane.xlu0 %1459 }
  0xcc   : > { %v1455_v44 = vrot.slane %v1454_v42, 2  ;;  %v1461_v45 = vrot.slane %v1460_v43, 4 }
  0xce   : > { %v1462_v46 = vadd.f32 %v1461_v45, %v1460_v43  ;;  %v1456_v47 = vadd.f32 %v1455_v44, %v1454_v42 }
  0xd0   : > { %v1463_v48 = vrot.slane %v1462_v46, 2  ;;  %v1457_v50 = vrot.slane %v1456_v47, 1 }
  0xd2   : > { %v1464_v49 = vadd.f32 %v1463_v48, %v1462_v46  ;;  %v1458_v53 = vadd.f32 %v1457_v50, %v1456_v47 }
  0xd4   : > { %v1465_v51 = vrot.slane %v1464_v49, 1 }
  0xd6   : > { %v1466_v52 = vadd.f32 %v1465_v51, %v1464_v49 }
  0xd8   : > { %1552 = vpush %v1466_v52 }
  0xd9   : > { %1554 = vpush %v1458_v53 }
 0x109   : > { %s1553_s14 = spop %1552 }
 0x10a   : > { %s1555_s15 = spop %1554 }
 0x10b   : > { %s1469_s16 = smul.f32 1e-10, %s1555_s15 }
 0x10d   : > { %p1470_p8 = scmp.le.f32.partialorder %s1553_s14, %s1469_s16 }
 0x10e   : > { %s1797_s17 = smov (!%p1470_p8), 0  }
 0x10f   : > { %1473 = sbr.rel (%p1470_p8) target bundleno = 953 (0x3b9), region = 467 }
 0x116 LB: >> { %s1802_s20 = smov 0   ;;  %s1645_s17 = sphi %s1797_s17, %s2042_s17  }
 0x117 LB: >>> { %s466_s30 = smov [#allocation20]  ;;  %v470_v6 = vmov %v1761_v6  ;;  %v473_v7 = vmov %v1763_v7  ;;  %s486_s21 = smov [#allocation21]  ;;  %vm789_vm14 = vcmp.eq.s32.totalorder %v1763_v7, 0  ;;  %vm801_vm15 = vcmp.eq.s32.totalorder %v1763_v7, 1  ;;  %s1649_s20 = sphi %s1802_s20, %s465_s20  }
 0x118   : >>> { %v490_v6 = vmov %v1761_v6  ;;  %v493_v7 = vmov %v1763_v7  ;;  %v474_v54 = vld [vmem:[%s466_s30] sm:$0x3]  ;;  %vm477_vm5 = vcmp.eq.s32.totalorder %v473_v7, %v470_v6  ;;  %s506_s22 = smov [#allocation23]  ;;  %s467_s29 = smov [#allocation24] }
 0x119   : >>> { %vm497_vm6 = vcmp.eq.s32.totalorder %v493_v7, %v490_v6  ;;  %v510_v6 = vmov %v1761_v6  ;;  %v513_v7 = vmov %v1763_v7  ;;  %v478_v55 = vsel %vm477_vm5, %v474_v54, 0.0  ;;  %v494_v56 = vld [vmem:[%s486_s21] sm:$0x3]  ;;  %s487_s14 = smov [#allocation25]  ;;  %s507_s15 = smov [#allocation26] }
 0x11a   : >>> { %vm517_vm7 = vcmp.eq.s32.totalorder %v513_v7, %v510_v6  ;;  %v479_v57 = vrot.slane %v478_v55, 4  ;;  %v498_v58 = vsel %vm497_vm6, %v494_v56, 0.0  ;;  %v514_v59 = vld [vmem:[%s506_s22] sm:$0x3]  ;;  %s530_s16 = smov [#allocation25]  ;;  %s528_s30 = smov [#allocation24]  ;;  %v579_v6 = vmov %v1761_v6 }
 0x11b   : >>> { %v499_v60 = vrot.slane %v498_v58, 4  ;;  %v518_v61 = vsel %vm517_vm7, %v514_v59, 0.0  ;;  %s532_s21 = smov [#allocation26]  ;;  %s567_s22 = smov [#allocation27]  ;;  %v582_v7 = vmov %v1763_v7  ;;  %v594_v6 = vmov %v1761_v6 }
 0x11c   : >>> { %v480_v62 = vadd.f32 %v479_v57, %v478_v55  ;;  %v519_v63 = vrot.slane %v518_v61, 4  ;;  %v597_v7 = vmov %v1763_v7  ;;  %vm584_vm12 = vcmp.eq.s32.totalorder %v582_v7, %v579_v6  ;;  %s1821_s24 = smov [#allocation22]  ;;  %s1827_s23 = smov [#allocation14] }
 0x11d   : >>> { %v500_v0 = vadd.f32 %v499_v60, %v498_v58  ;;  %vm599_vm13 = vcmp.eq.s32.totalorder %v597_v7, %v594_v6  ;;  %s829_s11 = smov [#allocation31]  ;;  %s1833_s27 = smov [#allocation18]  ;;  %v615_v55 = vld [vmem:[%s1821_s24] sm:$0x3]  ;;  %v692_v6 = vmov %v1761_v6  ;;  %v695_v7 = vmov %v1763_v7 }
 0x11e   : >>> { %v481_v1 = vrot.slane %v480_v62, 2  ;;  %v520_v2 = vadd.f32 %v519_v63, %v518_v61  ;;  %v838_v58 = vld [vmem:[%s1827_s23] sm:$0x3]  ;;  %s607_s26 = smov [#allocation32]  ;;  %s831_s25 = smov [#allocation32]  ;;  %v706_v6 = vmov %v1761_v6  ;;  %v709_v7 = vmov %v1763_v7 }
 0x11f   : >>> { %v501_v3 = vrot.slane %v500_v0, 2  ;;  %v840_v61 = vld [vmem:[%s1833_s27] sm:$0x3]  ;;  %vm699_vm0 = vcmp.eq.s32.totalorder %v695_v7, %v692_v6  ;;  %v665_v6 = vmov %v1761_v6  ;;  %v668_v7 = vmov %v1763_v7  ;;  %s465_s20 = sadd.s32 1, %s1649_s20  }
 0x120   : >>> { %v482_v4 = vadd.f32 %v481_v1, %v480_v62  ;;  %v521_v5 = vrot.slane %v520_v2, 2  ;;  %v679_v6 = vmov %v1761_v6  ;;  %v682_v7 = vmov %v1763_v7  ;;  %p462_p9 = scmp.ge.s32.totalorder %s465_s20, 3  }
 0x121   : >>> { %v502_v8 = vadd.f32 %v501_v3, %v500_v0  ;;  %vm714_vm1 = vcmp.eq.s32.totalorder %v709_v7, %v706_v6  ;;  %vm673_vm3 = vcmp.eq.s32.totalorder %v668_v7, %v665_v6  ;;  %vm686_vm4 = vcmp.eq.s32.totalorder %v682_v7, %v679_v6 }
 0x122   : >>> { %v483_v9 = vrot.slane %v482_v4, 1  ;;  %v522_v10 = vadd.f32 %v521_v5, %v520_v2  ;;  %vm728_vm5 = vcmp.eq.s32.totalorder %v1761_v6, 0  ;;  %vm732_vm6 = vcmp.eq.s32.totalorder %v1761_v6, 1 }
 0x123   : >>> { %v503_v11 = vrot.slane %v502_v8, 1  ;;  %v366_v6 = vmov (%p462_p9), %v1761_v6  ;;  %v369_v7 = vmov (%p462_p9), %v1763_v7 }
 0x124   : >>> { %v484_v12 = vadd.f32 %v483_v9, %v482_v4  ;;  %v523_v13 = vrot.slane %v522_v10, 1  ;;  %v419_v6 = vmov (%p462_p9), %v1761_v6  ;;  %vm381_vm7 = vcmp.eq.s32.totalorder (%p462_p9), %v369_v7, %v366_v6 }
 0x125   : >>> { %v504_v14 = vadd.f32 %v503_v11, %v502_v8  ;;  %v422_v7 = vmov (%p462_p9), %v1763_v7  ;;  %v385_v6 = vmov (%p462_p9), %v1761_v6 }
 0x126   : >>> { %485 = vst [vmem:[%s467_s29] sm:$0x1] %v484_v12  ;;  %v524_v15 = vadd.f32 %v523_v13, %v522_v10  ;;  %s569_s29 = smov [#allocation28]  ;;  %v388_v7 = vmov (%p462_p9), %v1763_v7  ;;  %v402_v6 = vmov (%p462_p9), %v1761_v6 }
 0x127   : >>> { %505 = vst [vmem:[%s487_s14] sm:$0x1] %v504_v14  ;;  %s526_s14 = smov [#allocation29]  ;;  %v405_v7 = vmov (%p462_p9), %v1763_v7 }
 0x128   : >>> { %525 = vst [vmem:[%s507_s15] sm:$0x1] %v524_v15  ;;  %s527_s15 = smov [#allocation30]  ;;  %s571_s14 = smov %s526_s14 }
 0x129   : >>> { %s573_s15 = smov %s527_s15 }
 0x12d   : >>> { %v529_v18 = vld [vmem:[%s528_s30] sm:$0xff]  ;;  %s590_s30 = smov [#allocation30] }
 0x12e   : >>> { %v531_v16 = vld [vmem:[%s530_s16] sm:$0xff]  ;;  %v552_v31 = vand.u32 2147483647, %v529_v18  ;;  %s575_s16 = smov [#allocation29] }
 0x12f   : >>> { %v535_v17 = vmul.f32 2.0, %v531_v16  ;;  %v533_v19 = vld [vmem:[%s532_s21] sm:$0xff]  ;;  %v553_v36 = vand.u32 2147483647, %v531_v16  ;;  %s588_s21 = smov [#allocation31] }
 0x130   : >>> { %v534_v20 = vsub.f32 %v533_v19, %v529_v18  ;;  %v554_v32 = vand.u32 2147483647, %v533_v19 }
 0x131   : >>> { %1603 = vrcp.f32 %v535_v17 }
 0x132   : >>> { %v555_v35 = vmin.f32 %v552_v31, %v554_v32 }
 0x134   : >>> { %v556_v37 = vmul.f32 1.1920929e-08, %v555_v35 }
 0x136   : >>> { %vm557_vm11 = vcmp.le.f32.partialorder %v553_v36, %v556_v37 }
 0x13b   : >>> { %v1604_v21 = vpop.eup %1603 }
 0x13c   : >>> { %v537_v22 = vmul.f32 %v1604_v21, %v534_v20 }
 0x13e   : >>> { %v539_v23 = vmul.f32 %v537_v22, %v537_v22  ;;  %vm538_vm10 = vcmp.ge.f32.partialorder %v537_v22, 0.0 }
 0x140   : >>> { %v540_v24 = vadd.f32 1.0, %v539_v23 }
 0x142   : >>> { %1605 = vrsqrt.f32 %v540_v24  ;;  %vm543_vm8 = vcmp.eq.f32.partialorder %v540_v24, inf  ;;  %v546_v26 = vand.u32 2147483648, %v540_v24  ;;  %vm545_vm9 = vcmp.eq.f32.partialorder %v540_v24, 0.0 }
 0x14c   : >>> { %v1606_v25 = vpop.eup %1605 }
 0x14d   : >>> { %v542_v27 = vmul.f32 %v1606_v25, %v540_v24 }
 0x14f   : >>> { %v544_v28 = vsel %vm543_vm8, %v540_v24, %v542_v27  ;;  %vm434_vm8 = vcmp.eq.s32.totalorder (%p462_p9), %v422_v7, %v419_v6 }
 0x150   : >>> { %v547_v29 = vsel %vm545_vm9, %v546_v26, %v544_v28 }
 0x151   : >>> { %v548_v30 = vxor.u32 2147483648, %v547_v29 }
 0x153   : >>> { %v549_v33 = vsel %vm538_vm10, %v547_v29, %v548_v30 }
 0x154   : >>> { %v550_v34 = vadd.f32 %v549_v33, %v537_v22 }
 0x156   : >>> { %1607 = vrcp.f32 %v550_v34 }
 0x160   : >>> { %v1608_v38 = vpop.eup %1607 }
 0x161   : >>> { %v558_v39 = vsel %vm557_vm11, 0.0, %v1608_v38 }
 0x162   : >>> { %v559_v40 = vmul.f32 %v558_v39, %v558_v39  ;;  %v563_v41 = vmul.f32 %v558_v39, %v531_v16 }
 0x164   : >>> { %v560_v42 = vadd.f32 1.0, %v559_v40  ;;  %v564_v43 = vsub.f32 %v529_v18, %v563_v41  ;;  %v566_v44 = vadd.f32 %v563_v41, %v533_v19 }
 0x166   : >>> { %1609 = vrsqrt.f32 %v560_v42  ;;  %568 = vst [vmem:[%s567_s22] sm:$0xff] %v564_v43  ;;  %570 = vst [vmem:[%s569_s29] sm:$0xff] %v566_v44  ;;  %s605_s22 = smov [#allocation31]  ;;  %s1817_s29 = smov [#allocation20] }
 0x167   : >>> { %v613_v53 = vld [vmem:[%s1817_s29] sm:$0x3] }
 0x170   : >>> { %v1610_v45 = vpop.eup %1609 }
 0x171   : >>> { %572 = vst [vmem:[%s571_s14] sm:$0xff] %v1610_v45  ;;  %v562_v46 = vmul.f32 %v1610_v45, %v558_v39  ;;  %s603_s14 = smov [#allocation32] }
 0x173   : >>> { %574 = vst [vmem:[%s573_s15] sm:$0xff] %v562_v46  ;;  %s1819_s15 = smov [#allocation21] }
 0x174   : >>> { %v614_v54 = vld [vmem:[%s1819_s15] sm:$0x3] }
 0x178   : >>> { %v576_v47 = vld [vmem:[%s575_s16] ss:$0 sm:$0xff]  ;;  %s1823_s16 = smov [#allocation23] }
 0x179   : >>> { %v585_v48 = vsel %vm584_vm12, %v576_v47, 0.0  ;;  %v616_v56 = vld [vmem:[%s1823_s16] sm:$0x3] }
 0x17a   : >>> { %586 = vadd.xlane.f32.xlu0 %v585_v48  ;;  %v591_v49 = vld [vmem:[%s590_s30] ss:$0 sm:$0xff]  ;;  %s1825_s30 = smov [#allocation12] }
 0x17b   : >>> { %v600_v50 = vsel %vm599_vm13, %v591_v49, 0.0  ;;  %v837_v57 = vld [vmem:[%s1825_s30] sm:$0x3] }
 0x17e   : >>> { %601 = vadd.xlane.f32.xlu0 %v600_v50 }
 0x207   : >>> { %v587_v51 = vpop.xlane.xlu0 %586 }
 0x208   : >>> { %589 = vst [vmem:[%s588_s21] sm:$0xff] %v587_v51  ;;  %s1829_s21 = smov [#allocation16] }
 0x209   : >>> { %v839_v59 = vld [vmem:[%s1829_s21] sm:$0x3] }
 0x20b   : >>> { %v602_v52 = vpop.xlane.xlu0 %601 }
 0x20c   : >>> { %604 = vst [vmem:[%s603_s14] sm:$0xff] %v602_v52  ;;  %s1853_s14 = smov [#allocation23] }
 0x20f   : >>> { %v606_v60 = vld [vmem:[%s605_s22] sm:$0xff]  ;;  %s1851_s22 = smov [#allocation22] }
 0x210   : >>> { %v830_v62 = vld [vmem:[%s829_s11] sm:$0xff]  ;;  %v617_v63 = vmul.f32 %v613_v53, %v606_v60  ;;  %v620_v0 = vmul.f32 %v614_v54, %v606_v60  ;;  %v624_v1 = vmul.f32 %v615_v55, %v606_v60  ;;  %v627_v2 = vmul.f32 %v616_v56, %v606_v60  ;;  %s1849_s11 = smov [#allocation12] }
 0x211   : >>> { %v841_v3 = vmul.f32 %v837_v57, %v830_v62  ;;  %v844_v4 = vmul.f32 %v838_v58, %v830_v62  ;;  %v848_v5 = vmul.f32 %v839_v59, %v830_v62  ;;  %v851_v8 = vmul.f32 %v840_v61, %v830_v62 }
 0x213   : >>> { %v608_v9 = vld [vmem:[%s607_s26] sm:$0xff]  ;;  %s635_s26 = smov [#allocation30] }
 0x214   : >>> { %v832_v10 = vld [vmem:[%s831_s25] sm:$0xff]  ;;  %v618_v11 = vmul.f32 %v615_v55, %v608_v9  ;;  %v621_v12 = vmul.f32 %v616_v56, %v608_v9  ;;  %v623_v13 = vmul.f32 %v613_v53, %v608_v9  ;;  %v626_v14 = vmul.f32 %v614_v54, %v608_v9  ;;  %s633_s25 = smov [#allocation29] }
 0x215   : >>> { %v842_v15 = vmul.f32 %v839_v59, %v832_v10  ;;  %v845_v16 = vmul.f32 %v840_v61, %v832_v10  ;;  %v847_v17 = vmul.f32 %v837_v57, %v832_v10  ;;  %v850_v18 = vmul.f32 %v838_v58, %v832_v10  ;;  %v634_v27 = vld [vmem:[%s633_s25] ss:$0 sm:$0xff]  ;;  %s662_s25 = smov [#allocation27] }
 0x216   : >>> { %v619_v19 = vsub.f32 %v617_v63, %v618_v11  ;;  %v622_v20 = vsub.f32 %v620_v0, %v621_v12  ;;  %v625_v21 = vadd.f32 %v624_v1, %v623_v13  ;;  %v628_v22 = vadd.f32 %v627_v2, %v626_v14  ;;  %v636_v28 = vld [vmem:[%s635_s26] ss:$0 sm:$0xff]  ;;  %s661_s26 = smov [#allocation20] }
 0x217   : >>> { %v843_v23 = vsub.f32 %v841_v3, %v842_v15  ;;  %v846_v24 = vsub.f32 %v844_v4, %v845_v16  ;;  %v849_v25 = vadd.f32 %v848_v5, %v847_v17  ;;  %v852_v26 = vadd.f32 %v851_v8, %v850_v18  ;;  %v669_v63 = vld [vmem:[%s662_s25] ss:$0 sm:$0xff]  ;;  %s905_s25 = sadd.s32 (%p462_p9), 1, %s1645_s17  }
 0x218   : >>> { %630 = vst [vmem:[%s1819_s15] sm:$0x3] %v622_v20  ;;  %632 = vst [vmem:[%s1823_s16] sm:$0x3] %v628_v22  ;;  %s1855_s15 = smov [#allocation20]  ;;  %s703_s16 = smov [#allocation28] }
 0x219   : >>> { %629 = vst [vmem:[%s1817_s29] sm:$0x3] %v619_v19  ;;  %631 = vst [vmem:[%s1821_s24] sm:$0x3] %v625_v21  ;;  %s1857_s24 = smov [#allocation16]  ;;  %s1865_s29 = smov [#allocation21]  ;;  %v710_v59 = vld [vmem:[%s703_s16] ss:$0 sm:$0xff] }
 0x21a   : >>> { %853 = vst [vmem:[%s1825_s30] sm:$0x3] %v843_v23  ;;  %854 = vst [vmem:[%s1827_s23] sm:$0x3] %v846_v24  ;;  %s1859_s23 = smov [#allocation14]  ;;  %s689_s30 = smov [#allocation22] }
 0x21b   : >>> { %855 = vst [vmem:[%s1829_s21] sm:$0x3] %v849_v25  ;;  %856 = vst [vmem:[%s1833_s27] sm:$0x3] %v852_v26  ;;  %s1863_s27 = smov [#allocation18]  ;;  %s702_s21 = smov [#allocation23] }
 0x21c   : >>> { %s805_s16 = smov [#allocation21]  ;;  %p458_p10 = scmp.ge.s32.totalorder (%p462_p9), %s905_s25, 15 }
 0x21d   : >> { %s2042_s17 = smov (%p462_p9), %s905_s25 }
 0x21f   : >>> { %v644_v30 = vld [vmem:[%s1853_s14] sm:$0x3] }
 0x220   : >>> { %v643_v29 = vld [vmem:[%s1851_s22] sm:$0x3]  ;;  %v652_v36 = vmul.f32 %v644_v30, %v636_v28  ;;  %v655_v42 = vmul.f32 %v644_v30, %v634_v27 }
 0x221   : >>> { %v641_v31 = vld [vmem:[%s1855_s15] sm:$0x3]  ;;  %v651_v35 = vmul.f32 %v643_v29, %v634_v27  ;;  %v654_v37 = vmul.f32 %v643_v29, %v636_v28 }
 0x222   : >>> { %v859_v32 = vld [vmem:[%s1849_s11] ss:$0 sm:$0xff]  ;;  %v1531_v34 = vld [vmem:[%s1849_s11 + $0x1] ss:$0 sm:$0xff]  ;;  %v645_v48 = vmul.f32 %v641_v31, %v634_v27  ;;  %v648_v49 = vmul.f32 %v641_v31, %v636_v28 }
 0x223   : >>> { %v1530_v33 = vld [vmem:[%s1849_s11 - $0x1] sm:$0x2]  ;;  %v1533_v40 = vld [vmem:[%s1857_s24 + $0x1] sm:$0x1]  ;;  %v653_v47 = vsub.f32 %v651_v35, %v652_v36  ;;  %v656_v53 = vadd.f32 %v655_v42, %v654_v37 }
 0x224   : >>> { %v866_v38 = vsel %vm789_vm14, %v859_v32, %v1530_v33  ;;  %v870_v39 = vld [vmem:[%s1857_s24] ss:$0 sm:$0xff]  ;;  %v878_v43 = vsel %vm801_vm15, %v1531_v34, %v1533_v40  ;;  %v1535_v45 = vld [vmem:[%s1859_s23 + $0x1] ss:$0 sm:$0xff] }
 0x225   : >>> { %v883_v41 = vld [vmem:[%s1859_s23] ss:$0 sm:$0xff]  ;;  %869 = vst [vmem:[%s1849_s11] sm:$0x3] %v866_v38  ;;  %880 = vst [vmem:[%s1857_s24] sm:$0x3] %v878_v43  ;;  %v1537_v51 = vld [vmem:[%s1863_s27 + $0x1] sm:$0x1] }
 0x226   : >>> { %v1534_v44 = vld [vmem:[%s1859_s23 - $0x1] sm:$0x2]  ;;  %1532 = vst [vmem:[%s1849_s11 + $0x1] sm:$0x1] %v870_v39  ;;  %v902_v54 = vsel %vm801_vm15, %v1535_v45, %v1537_v51  ;;  %659 = vst [vmem:[%s1851_s22] sm:$0x3] %v653_v47  ;;  %s676_s11 = smov [#allocation21] }
 0x227   : >>> { %v894_v46 = vld [vmem:[%s1863_s27] ss:$0 sm:$0xff]  ;;  %v890_v50 = vsel %vm789_vm14, %v883_v41, %v1534_v44  ;;  %660 = vst [vmem:[%s1853_s14] sm:$0x3] %v656_v53  ;;  %s1907_s22 = smov [#allocation22]  ;;  %s1652_s14 = smov 1  }
 0x228   : >>> { %v642_v52 = vld [vmem:[%s1865_s29] sm:$0x3]  ;;  %893 = vst [vmem:[%s1859_s23] sm:$0x3] %v890_v50  ;;  %904 = vst [vmem:[%s1863_s27] sm:$0x3] %v902_v54  ;;  %s718_s24 = smov [#allocation21]  ;;  %s1910_s27 = smov [#allocation23] }
 0x229   : >>> { %v646_v55 = vmul.f32 %v642_v52, %v636_v28  ;;  %v649_v56 = vmul.f32 %v642_v52, %v634_v27  ;;  %1536 = vst [vmem:[%s1859_s23 + $0x1] sm:$0x1] %v894_v46  ;;  %s1653_s23 = smov 127  }
 0x22b   : >>> { %v647_v57 = vsub.f32 %v645_v48, %v646_v55  ;;  %v650_v58 = vadd.f32 %v649_v56, %v648_v49 }
 0x22d   : >>> { %657 = vst [vmem:[%s1855_s15] sm:$0x3] %v647_v57  ;;  %658 = vst [vmem:[%s1865_s29] sm:$0x3] %v650_v58  ;;  %v696_v60 = vld [vmem:[%s689_s30] sm:$0x3]  ;;  %s717_s15 = smov [#allocation20]  ;;  %s781_s29 = smov [#allocation20] }
 0x22e   : >>> { %v700_v61 = vsel %vm699_vm0, 0.0, %v696_v60  ;;  %v711_v62 = vld [vmem:[%s702_s21] sm:$0x3] }
 0x22f   : >>> { %701 = vst [vmem:[%s689_s30] sm:$0x3] %v700_v61  ;;  %v715_v0 = vsel %vm714_vm1, %v710_v59, %v711_v62  ;;  %s782_s30 = smov [#allocation22] }
 0x230   : >>> { %716 = vst [vmem:[%s702_s21] sm:$0x3] %v715_v0  ;;  %s806_s21 = smov [#allocation23] }
 0x234   : >>> { %v670_v1 = vld [vmem:[%s661_s26] sm:$0x3] }
 0x235   : >>> { %v683_v2 = vld [vmem:[%s676_s11] sm:$0x3]  ;;  %v674_v3 = vsel %vm673_vm3, %v669_v63, %v670_v1 }
 0x236   : >>> { %v687_v4 = vsel %vm686_vm4, 0.0, %v683_v2  ;;  %675 = vst [vmem:[%s661_s26] sm:$0x3] %v674_v3  ;;  %v755_v5 = vld [vmem:[%s1907_s22] sm:$0x3]  ;;  %s370_s26 = smov (%p462_p9), [#allocation20] }
 0x237   : >>> { %688 = vst [vmem:[%s676_s11] sm:$0x3] %v687_v4  ;;  %756 = vrot.lane.b32.xlu0 %v755_v5, %s1652_s14  ;;  %v751_v11 = vld [vmem:[%s1910_s27] sm:$0x3]  ;;  %s389_s11 = smov (%p462_p9), [#allocation21] }
 0x238   : >>> { %v772_v12 = vld [vmem:[%s1910_s27] sm:$0x3] }
 0x239   : >>> { %v754_v30 = vld [vmem:[%s1907_s22] sm:$0x3] }
 0x23d   : >>> { %v723_v8 = vld [vmem:[%s717_s15] sm:$0x3] }
 0x23e   : >>> { %724 = vrot.lane.b32.xlu1 %v723_v8, %s1652_s14  ;;  %v719_v9 = vld [vmem:[%s718_s24] sm:$0x3] }
 0x23f   : >>> { %v740_v10 = vld [vmem:[%s718_s24] sm:$0x3] }
 0x240   : >>> { %v722_v18 = vld [vmem:[%s717_s15] sm:$0x3] }
 0x242   : >>> { %720 = vrot.lane.b32.xlu1 %v719_v9, %s1652_s14 }
 0x246   : >>> { %741 = vrot.lane.b32.xlu1 %v740_v10, %s1653_s23 }
 0x24a   : >>> { %752 = vrot.lane.b32.xlu1 %v751_v11, %s1652_s14  ;;  %s423_s14 = smov (%p462_p9), [#allocation23] }
 0x24e   : >>> { %773 = vrot.lane.b32.xlu1 %v772_v12, %s1653_s23 }
 0x2a9   : >>> { %v757_v20 = vpop.permute.xlu0 %756 }
 0x2aa   : >>> { %v761_v22 = vsel %vm728_vm5, %v755_v5, %v757_v20 }
 0x2b0   : >>> { %v725_v13 = vpop.permute.xlu1 %724 }
 0x2b1   : >>> { %v729_v14 = vsel %vm728_vm5, %v723_v8, %v725_v13 }
 0x2b4   : >>> { %v721_v15 = vpop.permute.xlu1 %720 }
 0x2b5   : >>> { %v733_v16 = vsel %vm732_vm6, %v721_v15, %v729_v14 }
 0x2b6   : >>> { %v739_v17 = vsel %vm1391_vm2, %v733_v16, 0.0 }
 0x2b7   : >>> { %747 = vst [vmem:[%s717_s15] sm:$0x3] %v739_v17 }
 0x2b8   : >>> { %v742_v19 = vpop.permute.xlu1 %741 }
 0x2b9   : >>> { %v746_v21 = vsel %vm732_vm6, %v722_v18, %v742_v19 }
 0x2ba   : >>> { %748 = vst [vmem:[%s718_s24] sm:$0x3] %v746_v21 }
 0x2bc   : >>> { %v753_v23 = vpop.permute.xlu1 %752 }
 0x2bd   : >>> { %v765_v24 = vsel %vm732_vm6, %v753_v23, %v761_v22 }
 0x2be   : >>> { %v783_v25 = vld [vmem:[%s781_s29] ss:$0 sm:$0xff]  ;;  %v1523_v27 = vld [vmem:[%s781_s29 + $0x1] ss:$0 sm:$0xff]  ;;  %v771_v29 = vsel %vm1391_vm2, %v765_v24, 0.0 }
 0x2bf   : >>> { %v1522_v26 = vld [vmem:[%s781_s29 - $0x1] sm:$0x2]  ;;  %779 = vst [vmem:[%s1907_s22] sm:$0x3] %v771_v29  ;;  %s406_s22 = smov (%p462_p9), [#allocation22] }
 0x2c0   : >>> { %v790_v28 = vsel %vm789_vm14, %v783_v25, %v1522_v26  ;;  %v774_v31 = vpop.permute.xlu1 %773 }
 0x2c1   : >>> { %793 = vst [vmem:[%s781_s29] sm:$0x3] %v790_v28  ;;  %v807_v32 = vld [vmem:[%s805_s16] ss:$0 sm:$0xff]  ;;  %v1527_v34 = vld [vmem:[%s805_s16 + $0x1] ss:$0 sm:$0xff]  ;;  %v778_v35 = vsel %vm732_vm6, %v754_v30, %v774_v31 }
 0x2c2   : >>> { %v1526_v33 = vld [vmem:[%s805_s16 - $0x1] sm:$0x2]  ;;  %780 = vst [vmem:[%s1910_s27] sm:$0x3] %v778_v35 }
 0x2c3   : >>> { %v814_v36 = vsel %vm789_vm14, %v807_v32, %v1526_v33 }
 0x2c4   : >>> { %817 = vst [vmem:[%s805_s16] sm:$0x3] %v814_v36 }
 0x2c6   : >>> { %v794_v37 = vld [vmem:[%s782_s30] ss:$0 sm:$0xff]  ;;  %v1525_v38 = vld [vmem:[%s782_s30 + $0x1] sm:$0x1] }
 0x2c7   : >>> { %1524 = vst [vmem:[%s781_s29 + $0x1] sm:$0x1] %v794_v37  ;;  %v802_v39 = vsel %vm801_vm15, %v1523_v27, %v1525_v38  ;;  %464 = sbr.rel (!%p462_p9) target bundleno = 279 (0x117), region = 462 }
 0x2c8   : >>> { %804 = vst [vmem:[%s782_s30] sm:$0x3] %v802_v39 }
 0x2c9   : >>> { %v818_v40 = vld [vmem:[%s806_s21] ss:$0 sm:$0xff]  ;;  %v1529_v41 = vld [vmem:[%s806_s21 + $0x1] sm:$0x1] }
 0x2ca   : >>> { %1528 = vst [vmem:[%s805_s16 + $0x1] sm:$0x1] %v818_v40  ;;  %v826_v42 = vsel %vm801_vm15, %v1527_v34, %v1529_v41 }
 0x2cb   : >>> { %828 = vst [vmem:[%s806_s21] sm:$0x3] %v826_v42 }
 0x2ce   : >> { %v376_v43 = vld [vmem:[%s370_s26] sm:$0x3] }
 0x2cf   : >> { %v377_v45 = vsel %vm1391_vm2, %v376_v43, 0.0  ;;  %v412_v47 = vld [vmem:[%s406_s22] sm:$0x3] }
 0x2d0   : >> { %v378_v49 = vmul.f32 %v377_v45, %v377_v45  ;;  %v413_v51 = vsel %vm1391_vm2, %v412_v47, 0.0 }
 0x2d1   : >> { %v395_v44 = vld [vmem:[%s389_s11] sm:$0x3]  ;;  %v414_v53 = vmul.f32 %v413_v51, %v413_v51 }
 0x2d2   : >> { %v396_v46 = vsel %vm1391_vm2, %v395_v44, 0.0  ;;  %v429_v48 = vld [vmem:[%s423_s14] sm:$0x3]  ;;  %v382_v56 = vsel %vm381_vm7, 0.0, %v378_v49 }
 0x2d3   : >> { %v397_v50 = vmul.f32 %v396_v46, %v396_v46  ;;  %v430_v52 = vsel %vm1391_vm2, %v429_v48, 0.0 }
 0x2d4   : >> { %v431_v55 = vmul.f32 %v430_v52, %v430_v52 }
 0x2d5   : >> { %v399_v54 = vadd.f32 %v397_v50, %v378_v49  ;;  %v398_v57 = vadd.f32 %v397_v50, %v382_v56 }
 0x2d6   : >> { %v435_v60 = vsel %vm434_vm8, 0.0, %v431_v55 }
 0x2d7   : >> { %v416_v58 = vadd.f32 %v414_v53, %v399_v54  ;;  %v415_v59 = vadd.f32 %v414_v53, %v398_v57 }
 0x2d9   : >> { %v437_v61 = vadd.f32 %v431_v55, %v416_v58  ;;  %v436_v62 = vadd.f32 %v435_v60, %v415_v59 }
 0x2db   : >> { %438 = vadd.xlane.f32.xlu0 %v437_v61 }
 0x2df   : >> { %446 = vadd.xlane.f32.xlu0 %v436_v62 }
 0x368   : >> { %v439_v63 = vpop.xlane.xlu0 %438 }
 0x369   : >> { %v440_v0 = vrot.slane %v439_v63, 4 }
 0x36b   : >> { %v441_v1 = vadd.f32 %v440_v0, %v439_v63 }
 0x36c   : >> { %v447_v2 = vpop.xlane.xlu0 %446 }
 0x36d   : >> { %v442_v3 = vrot.slane %v441_v1, 2  ;;  %v448_v4 = vrot.slane %v447_v2, 4 }
 0x36f   : >> { %v449_v5 = vadd.f32 %v448_v4, %v447_v2  ;;  %v443_v8 = vadd.f32 %v442_v3, %v441_v1 }
 0x371   : >> { %v450_v9 = vrot.slane %v449_v5, 2  ;;  %v444_v11 = vrot.slane %v443_v8, 1 }
 0x373   : >> { %v451_v10 = vadd.f32 %v450_v9, %v449_v5  ;;  %v445_v14 = vadd.f32 %v444_v11, %v443_v8 }
 0x375   : >> { %v452_v12 = vrot.slane %v451_v10, 1 }
 0x377   : >> { %v453_v13 = vadd.f32 %v452_v12, %v451_v10 }
 0x379   : >> { %1556 = vpush %v453_v13 }
 0x37a   : >> { %1558 = vpush %v445_v14 }
 0x3aa   : >> { %s1557_s20 = spop %1556 }
 0x3ab   : >> { %s1559_s15 = spop %1558 }
 0x3ac   : >> { %s456_s24 = smul.f32 1e-10, %s1559_s15 }
 0x3ae   : >> { %p457_p11 = scmp.le.f32.partialorder %s1557_s20, %s456_s24 }
 0x3b0   : >> { %p459_p12 = por %p458_p10, %p457_p11 }
 0x3b2   : > { %907 = sbr.rel (!%p459_p12) target bundleno = 278 (0x116), region = 473 }
 0x3b9 PF: > { %s912_s23 = smov [#allocation20]  ;;  %v916_v6 = vmov %v1761_v6  ;;  %v919_v7 = vmov %v1763_v7  ;;  %v967_v15 = vld [vmem:[#allocation12] sm:$0x3]  ;;  %v973_v16 = vld [vmem:[#allocation14] sm:$0x3]  ;;  %s2043_s17 = scalar_lea.vmem [#allocation13], %s1757_s28 }
 0x3ba   : > { %v936_v6 = vmov %v1761_v6  ;;  %v939_v7 = vmov %v1763_v7  ;;  %v920_v17 = vld [vmem:[%s912_s23] sm:$0x3]  ;;  %vm923_vm9 = vcmp.eq.s32.totalorder %v919_v7, %v916_v6  ;;  %969 = vst [vmem:[%s2043_s17] sm:$0x3] %v967_v15  ;;  %s2044_s27 = scalar_lea.vmem [#allocation15], %s1757_s28  ;;  %s932_s29 = smov [#allocation23] }
 0x3bb   : > { %vm943_vm10 = vcmp.eq.s32.totalorder %v939_v7, %v936_v6  ;;  %975 = vst [vmem:[%s2044_s27] sm:$0x3] %v973_v16  ;;  %v979_v18 = vld [vmem:[#allocation16] sm:$0x3]  ;;  %v924_v19 = vsel %vm923_vm9, %v920_v17, 0.0  ;;  %s2045_s16 = scalar_lea.vmem [#allocation17], %s1757_s28  ;;  %s2046_s30 = scalar_lea.vmem [#allocation19], %s1757_s28 }
 0x3bc   : > { %981 = vst [vmem:[%s2045_s16] sm:$0x3] %v979_v18  ;;  %v985_v20 = vld [vmem:[#allocation18] sm:$0x3]  ;;  %v925_v21 = vrot.slane %v924_v19, 4  ;;  %v940_v22 = vld [vmem:[%s932_s29] sm:$0x3] }
 0x3bd   : > { %987 = vst [vmem:[%s2046_s30] sm:$0x3] %v985_v20  ;;  %v944_v23 = vsel %vm943_vm10, %v940_v22, 0.0  ;;  %s908_s21 = sand.u32 7, %s1720_s12   ;;  %s2047_s11 = scalar_lea.vmem [#allocation9], %s1759_s18 }
 0x3be   : > { %v926_v24 = vadd.f32 %v925_v21, %v924_v19  ;;  %v945_v25 = vrot.slane %v944_v23, 4  ;;  %s909_s25 = scalar_lea.vmem [#allocation8], %s908_s21  ;;  %s911_s26 = scalar_lea.vmem [#allocation10], %s908_s21 }
 0x3bf   : > { %s913_s25 = smov %s909_s25  ;;  %s933_s26 = smov %s911_s26 }
 0x3c0   : > { %v927_v26 = vrot.slane %v926_v24, 2  ;;  %v946_v6 = vadd.f32 %v945_v25, %v944_v23  ;;  %s2048_s22 = scalar_lea.vmem [#allocation11], %s1759_s18  ;;  %s1015_s14 = sshrl.u32 (%p1734_p3), %s1720_s12, 3 }
 0x3c1   : > { %s2049_s20 = scalar_lea.vmem (%p1734_p3), [#allocation9], %s1759_s18  ;;  %s1544_s15 = sshll.u32 (%p1734_p3), %s1015_s14, 1 }
 0x3c2   : > { %v928_v7 = vadd.f32 %v927_v26, %v926_v24  ;;  %v947_v27 = vrot.slane %v946_v6, 2  ;;  %s1017_s17 = scalar_lea.vmem (%p1734_p3), %s2034_s4, %s1544_s15 }
 0x3c4   : > { %v929_v28 = vrot.slane %v928_v7, 1  ;;  %v948_v29 = vadd.f32 %v947_v27, %v946_v6 }
 0x3c6   : > { %v930_v30 = vadd.f32 %v929_v28, %v928_v7  ;;  %v949_v31 = vrot.slane %v948_v29, 1 }
 0x3c8   : > { %931 = vst [vmem:[%s913_s25] sm:$0x1] %v930_v30  ;;  %v950_v32 = vadd.f32 %v949_v31, %v948_v29 }
 0x3ca   : > { %951 = vst [vmem:[%s933_s26] sm:$0x1] %v950_v32 }
 0x3cc   : > { %1014 = sbr.rel (!%p1734_p3) target bundleno = 985 (0x3d9), region = 158 }
 0x3cf   : > { %v955_v33 = vld [vmem:[#allocation8] sm:$0x3] }
 0x3d0   : > { %957 = vst [vmem:[%s2047_s11] sm:$0x3] %v955_v33 }
 0x3d1   : > { %v961_v34 = vld [vmem:[#allocation10] sm:$0x3] }
 0x3d2   : > { %963 = vst [vmem:[%s2048_s22] sm:$0x3] %v961_v34 }
 0x3d7   : > { %v1033_v35 = vld [vmem:[%s2049_s20] sm:$0x3] }
 0x3d8   : > { %1034 = vst [vmem:[%s1017_s17] sm:$0x3] %v1033_v35 }
 0x3d9 PF: > { %1051 = sbr.rel (!%p1734_p3) target bundleno = 993 (0x3e1), region = 192  ;;  %s1052_s27 = sshrl.u32 (%p1734_p3), %s1720_s12, 3 }
 0x3da   : > { %s2050_s29 = scalar_lea.vmem (%p1734_p3), [#allocation11], %s1759_s18  ;;  %s1545_s16 = sshll.u32 (%p1734_p3), %s1052_s27, 1 }
 0x3db   : > { %s1054_s25 = scalar_lea.vmem (%p1734_p3), %s2035_s5, %s1545_s16 }
 0x3df   : > { %v1070_v36 = vld [vmem:[%s2050_s29] sm:$0x3] (%p1734_p3) }
 0x3e0   : > { %1071 = vst [vmem:[%s1054_s25] sm:$0x3] %v1070_v36 }
 0x3e1 PF: > { %s1546_s26 = sshll.u32 %s1720_s12, 1  ;;  %s2051_s19 = scalar_lea.vmem [#allocation13], %s1757_s28 }
 0x3e2   : > { %v1103_v37 = vld [vmem:[%s2051_s19] sm:$0x3]  ;;  %s2052_s11 = scalar_lea.vmem [#allocation15], %s1757_s28  ;;  %s1087_s14 = scalar_lea.vmem %s2036_s6, %s1546_s26 }
 0x3e3   : > { %v1136_v38 = vld [vmem:[%s2052_s11] sm:$0x3]  ;;  %s1120_s24 = scalar_lea.vmem %s2037_s7, %s1546_s26  ;;  %s2053_s23 = scalar_lea.vmem [#allocation17], %s1757_s28  ;;  %1104 = vst [vmem:[%s1087_s14] sm:$0x3] %v1103_v37 }
 0x3e4   : > { %v1169_v39 = vld [vmem:[%s2053_s23] sm:$0x3]  ;;  %s2054_s17 = scalar_lea.vmem [#allocation19], %s1757_s28  ;;  %1137 = vst [vmem:[%s1120_s24] sm:$0x3] %v1136_v38  ;;  %s1153_s29 = scalar_lea.vmem %s2038_s8, %s1546_s26 }
 0x3e5   : > { %v1202_v40 = vld [vmem:[%s2054_s17] sm:$0x3]  ;;  %s1186_s21 = scalar_lea.vmem %s2039_s9, %s1546_s26  ;;  %1170 = vst [vmem:[%s1153_s29] sm:$0x3] %v1169_v39 }
 0x3e6   : > { %1203 = vst [vmem:[%s1186_s21] sm:$0x3] %v1202_v40 }
 0x3e7 PF: > { %s2055_s25 = sld [smem:[#allocation33_spill]]  ;;  %p13_p13 = scmp.ge.s32.totalorder %s1723_s13, 4  }
 0x3e8   : > { %s2056_s30 = smov %s1637_s10  ;;  %s2058_s11 = smov %s1723_s13 }
 0x3e9   :  { %15 = sbr.rel (!%p13_p13) target bundleno = 2 (0x2), region = 484 }
 0x3ed   : > { %s2057_s10 = smov %s2055_s25 }

// kernel: reverse
= control target key start
LH: loop header
LB: loop body
LE: loop exit
PB: predicated region body
PF: predicated region fallthrough
CT: control target
= control target key end

     0   :  { %v2_v0 = vlaneseq  ;;  %s105_s0 = inlined_call_operand.vmem [shape: f32[2,3], index: 0, kind: input, shape index: {}]   ;;  %s106_s1 = inlined_call_operand.vmem [shape: f32[2,3], index: 1, kind: output, shape index: {}]  }
   0x2   :  { %v3_v1 = vsub.s32 2, %v2_v0 }
   0x4   :  { %4 = vset.pattern.permute.xlu0 %v3_v1 }
   0x5   :  { %v20_v2 = vld [vmem:[%s105_s0] sm:$0x3] }
   0x6   :  { %21 = vst [vmem:[#allocation1] sm:$0x3] %v20_v2 }
   0xd   :  { %v38_v3 = vld [vmem:[#allocation1] sm:$0x3] }
   0xe   :  { %39 = vst [vmem:[#allocation0] sm:$0x3] %v38_v3 }
  0x15   :  { %v40_v4 = vld [vmem:[#allocation0] sm:$0xff] }
  0x16   :  { %41 = vperm.xlu0 %4, %v40_v4  }
  0x95   :  { %v42_v5 = vpop.permute.xlu0 %41 }
  0x96   :  { %43 = vst [vmem:[#allocation2] sm:$0xff] %v42_v5 }
  0x9d   :  { %v47_v6 = vld [vmem:[#allocation2] sm:$0x3] }
  0x9e   :  { %49 = vst [vmem:[#allocation3] sm:$0x3] %v47_v6 }
  0xa5   :  { %v65_v7 = vld [vmem:[#allocation3] sm:$0x3] }
  0xa6   :  { %66 = vst [vmem:[%s106_s1] sm:$0x3] %v65_v7 }

// kernel: _lambda_.1
= control target key start
LH: loop header
LB: loop body
LE: loop exit
PB: predicated region body
PF: predicated region fallthrough
CT: control target
= control target key end

     0   :  { %s3316_s29 = smov 0   ;;  %s3318_s30 = smov 0   ;;  %s4555_s0 = inlined_call_operand.vmem [shape: f32[256,3], index: 0, kind: input, shape index: {}]   ;;  %s4556_s1 = inlined_call_operand.vmem [shape: f32[3,64], index: 1, kind: input, shape index: {}]   ;;  %s4557_s2 = inlined_call_operand.vmem [shape: f32[1,64], index: 2, kind: input, shape index: {}]   ;;  %s4558_s3 = inlined_call_operand.vmem [shape: bf16[64,128], index: 3, kind: input, shape index: {}]   ;;  %s4559_s4 = inlined_call_operand.vmem [shape: f32[1,128], index: 4, kind: input, shape index: {}]   ;;  %s4560_s5 = inlined_call_operand.vmem [shape: f32[1,128], index: 5, kind: input, shape index: {}]   ;;  %s4561_s6 = inlined_call_operand.vmem [shape: bf16[128,256], index: 6, kind: input, shape index: {}]   ;;  %s4562_s7 = inlined_call_operand.vmem [shape: f32[1,256], index: 7, kind: input, shape index: {}]   ;;  %s4563_s8 = inlined_call_operand.vmem [shape: f32[1,256], index: 8, kind: input, shape index: {}]   ;;  %s4564_s9 = inlined_call_operand.vmem [shape: bf16[256,256], index: 9, kind: input, shape index: {}]   ;;  %s4565_s10 = inlined_call_operand.vmem [shape: f32[1,256], index: 10, kind: input, shape index: {}]   ;;  %s4566_s11 = inlined_call_operand.vmem [shape: f32[1,256], index: 11, kind: input, shape index: {}]   ;;  %s4567_s12 = inlined_call_operand.vmem [shape: f32[256,16], index: 12, kind: input, shape index: {}]   ;;  %s4568_s13 = inlined_call_operand.vmem [shape: f32[1,16], index: 13, kind: input, shape index: {}]   ;;  %s4569_s14 = inlined_call_operand.vmem [shape: f32[2,16], index: 14, kind: output, shape index: {}]  }
   0x1   :  { %s3320_s15 = smov 0  }
   0x2 LB: > { %s36_s16 = sadd.s32 1, %s3231_s30  ;;  %p2757_p0 = scmp.ge.s32.totalorder %s3235_s15, 1  ;;  %s3235_s15 = sphi %s3320_s15, %s24_s15   ;;  %s3231_s30 = sphi %s3318_s30, %s4654_s30   ;;  %s3227_s29 = sphi %s3316_s29, %s4653_s29  }
   0x3   : > { %p38_p1 = scmp.ge.s32.totalorder %s36_s16, 2  ;;  %p420_p2 = scmp.lt.s32.totalorder %s3235_s15, 3 }
   0x5   : > { %s4656_s16 = smov (%p38_p1, %s36_s16), 0  ;;  %p421_p3 = pnand %p2757_p0, %p420_p2 }
   0x6   : > { %p468_p4 = scmp.eq.s32.totalorder (!%p421_p3), %s3227_s29, 0 }
   0x7   : > { %424 = sbr.rel (%p421_p3) target bundleno = 1437 (0x59d), region = 76 }
   0xe   : > { %473 = sbr.rel (!%p468_p4) target bundleno = 21 (0x15), region = 80  ;;  %v3237_v0 = vmov (%p468_p4), 0.0  }
   0xf   : > { %474 = vst [vmem:[#allocation2] sm:$0xff] (%p468_p4), %v3237_v0  ;;  %475 = vst [vmem:[#allocation3] sm:$0xff] (%p468_p4), %v3237_v0 }
  0x10   : > { %476 = vst [vmem:[#allocation4] sm:$0xff] (%p468_p4), %v3237_v0  ;;  %477 = vst [vmem:[#allocation4 + $0x8] sm:$0xff] (%p468_p4), %v3237_v0 }
  0x11   : > { %478 = vst [vmem:[#allocation5] sm:$0xff] (%p468_p4), %v3237_v0  ;;  %479 = vst [vmem:[#allocation5 + $0x8] sm:$0xff] (%p468_p4), %v3237_v0 }
  0x15 PF: > { %v512_v1 = vld [vmem:[%s4556_s1] sm:$0x7]  ;;  %vm617_vm0 = vcmask 1042432   ;;  %vm520_vm1 = vcmask 23552   ;;  %v481_v3 = vld [vmem:[%s4555_s0 + $0x8] sm:$0xff]  ;;  %v482_v4 = vld [vmem:[%s4555_s0 + $0x10] sm:$0xff] }
  0x16   : > { %v480_v2 = vld [vmem:[%s4555_s0] sm:$0xff]  ;;  %2961 = vmatprep.subr.msk.mxu0 %vm617_vm0, %v512_v1  ;;  %v483_v5 = vld [vmem:[%s4555_s0 + $0x18] sm:$0xff]  ;;  %v485_v7 = vld [vmem:[%s4555_s0 + $0x28] sm:$0xff]  ;;  %vm926_vm2 = vcmask 523264   ;;  %p2813_p5 = scmp.ne.s32.totalorder %s3227_s29, 0 }
  0x17   : > { %2963 = vmatprep.mubr.msk.f32.mxu0 %vm520_vm1, %v480_v2  ;;  %2962 = vmatpush3.msk.msra.mxu0 %vm617_vm0, %v512_v1  ;;  %v484_v6 = vld [vmem:[%s4555_s0 + $0x20] sm:$0xff]  ;;  %v486_v8 = vld [vmem:[%s4555_s0 + $0x30] sm:$0xff]  ;;  %v487_v9 = vld [vmem:[%s4555_s0 + $0x38] sm:$0xff] }
  0x18   : > { %2964 = vmatmul.mubr.msk.f32.vlgmr.msra.gmra.mrb[0].mxu0 %vm520_vm1, %v481_v3  ;;  %v488_v10 = vld [vmem:[%s4555_s0 + $0x40] sm:$0xff]  ;;  %v489_v12 = vld [vmem:[%s4555_s0 + $0x48] sm:$0xff]  ;;  %v490_v13 = vld [vmem:[%s4555_s0 + $0x50] sm:$0xff] }
  0x19   : > { %2966 = vmatprep.mubr.msk.f32.mxu0 %vm520_vm1, %v482_v4  ;;  %v3127_v11 = vld [vmem:[%s4558_s3] sm:$0xff]   ;;  %v491_v14 = vld [vmem:[%s4555_s0 + $0x58] sm:$0xff]  ;;  %v493_v16 = vld [vmem:[%s4555_s0 + $0x68] sm:$0xff] }
  0x1a   : > { %3011 = vmatprep.subr.bf16.mxu1 %v3127_v11  ;;  %v492_v15 = vld [vmem:[%s4555_s0 + $0x60] sm:$0xff]  ;;  %v494_v17 = vld [vmem:[%s4555_s0 + $0x70] sm:$0xff]  ;;  %v495_v18 = vld [vmem:[%s4555_s0 + $0x78] sm:$0xff] }
  0x1b   : > { %3012 = vmatpush3.bf16.msra.mxu1 %v3127_v11  ;;  %v496_v19 = vld [vmem:[%s4555_s0 + $0x80] sm:$0xff]  ;;  %v497_v20 = vld [vmem:[%s4555_s0 + $0x88] sm:$0xff]  ;;  %v498_v21 = vld [vmem:[%s4555_s0 + $0x90] sm:$0xff] }
  0x1c   : > { %2967 = vmatmul.mubr.msk.f32.gmra.mrb[2].mxu0 %vm520_vm1, %v483_v5  ;;  %v499_v22 = vld [vmem:[%s4555_s0 + $0x98] sm:$0xff]  ;;  %v500_v23 = vld [vmem:[%s4555_s0 + $0xa0] sm:$0xff]  ;;  %v501_v24 = vld [vmem:[%s4555_s0 + $0xa8] sm:$0xff] }
  0x1d   : > { %2969 = vmatprep.mubr.msk.f32.mxu0 %vm520_vm1, %v484_v6  ;;  %v502_v25 = vld [vmem:[%s4555_s0 + $0xb0] sm:$0xff]  ;;  %v503_v26 = vld [vmem:[%s4555_s0 + $0xb8] sm:$0xff]  ;;  %v504_v27 = vld [vmem:[%s4555_s0 + $0xc0] sm:$0xff] }
  0x1e   : > { %v505_v28 = vld [vmem:[%s4555_s0 + $0xc8] sm:$0xff]  ;;  %v506_v29 = vld [vmem:[%s4555_s0 + $0xd0] sm:$0xff]  ;;  %v507_v30 = vld [vmem:[%s4555_s0 + $0xd8] sm:$0xff] }
  0x1f   : > { %v508_v31 = vld [vmem:[%s4555_s0 + $0xe0] sm:$0xff]  ;;  %v509_v32 = vld [vmem:[%s4555_s0 + $0xe8] sm:$0xff]  ;;  %v510_v33 = vld [vmem:[%s4555_s0 + $0xf0] sm:$0xff] }
  0x20   : > { %2970 = vmatmul.mubr.msk.f32.gmra.mrb[4].mxu0 %vm520_vm1, %v485_v7  ;;  %v511_v34 = vld [vmem:[%s4555_s0 + $0xf8] sm:$0xff]  ;;  %v3128_v35 = vld [vmem:[%s4558_s3 + $0x8] sm:$0xff]   ;;  %v3129_v36 = vld [vmem:[%s4558_s3 + $0x10] sm:$0xff]  }
  0x21   : > { %2972 = vmatprep.mubr.msk.f32.mxu0 %vm520_vm1, %v486_v8  ;;  %3013 = vmatprep.subr.bf16.mxu1 %v3128_v35  ;;  %v3130_v37 = vld [vmem:[%s4558_s3 + $0x18] sm:$0xff]   ;;  %v3483_v38 = vld [vmem:[%s4557_s2] ss:$0 sm:$0xff] }
  0x22   : > { %3014 = vmatpush3.bf16.msra.mxu1 %v3128_v35 }
  0x23   : > { %3015 = vmatprep.subr.bf16.mxu1 %v3129_v36 }
  0x24   : > { %2973 = vmatmul.mubr.msk.f32.gmra.mrb[6].mxu0 %vm520_vm1, %v487_v9 }
  0x25   : > { %2975 = vmatprep.mubr.msk.f32.mxu0 %vm520_vm1, %v488_v10 }
  0x26   : > { %3016 = vmatpush3.bf16.msra.mxu1 %v3129_v36 }
  0x27   : > { %3017 = vmatprep.subr.bf16.mxu1 %v3130_v37 }
  0x28   : > { %2976 = vmatmul.mubr.msk.f32.gmra.mrb[8].mxu0 %vm520_vm1, %v489_v12 }
  0x29   : > { %2978 = vmatprep.mubr.msk.f32.mxu0 %vm520_vm1, %v490_v13 }
  0x2a   : > { %3018 = vmatpush3.bf16.msra.mxu1 %v3130_v37 }
  0x2c   : > { %2979 = vmatmul.mubr.msk.f32.gmra.mrb[10].mxu0 %vm520_vm1, %v491_v14 }
  0x2d   : > { %2981 = vmatprep.mubr.msk.f32.mxu0 %vm520_vm1, %v492_v15 }
  0x30   : > { %2982 = vmatmul.mubr.msk.f32.gmra.mrb[12].mxu0 %vm520_vm1, %v493_v16 }
  0x31   : > { %2984 = vmatprep.mubr.msk.f32.mxu0 %vm520_vm1, %v494_v17 }
  0x34   : > { %2985 = vmatmul.mubr.msk.f32.gmra.mrb[14].mxu0 %vm520_vm1, %v495_v18 }
  0x35   : > { %2987 = vmatprep.mubr.msk.f32.mxu0 %vm520_vm1, %v496_v19 }
  0x38   : > { %2988 = vmatmul.mubr.msk.f32.gmra.mrb[16].mxu0 %vm520_vm1, %v497_v20 }
  0x39   : > { %2990 = vmatprep.mubr.msk.f32.mxu0 %vm520_vm1, %v498_v21 }
  0x3c   : > { %2991 = vmatmul.mubr.msk.f32.gmra.mrb[18].mxu0 %vm520_vm1, %v499_v22 }
  0x3d   : > { %2993 = vmatprep.mubr.msk.f32.mxu0 %vm520_vm1, %v500_v23 }
  0x40   : > { %2994 = vmatmul.mubr.msk.f32.gmra.mrb[20].mxu0 %vm520_vm1, %v501_v24 }
  0x41   : > { %2996 = vmatprep.mubr.msk.f32.mxu0 %vm520_vm1, %v502_v25 }
  0x44   : > { %2997 = vmatmul.mubr.msk.f32.gmra.mrb[22].mxu0 %vm520_vm1, %v503_v26 }
  0x45   : > { %2999 = vmatprep.mubr.msk.f32.mxu0 %vm520_vm1, %v504_v27 }
  0x48   : > { %3000 = vmatmul.mubr.msk.f32.gmra.mrb[24].mxu0 %vm520_vm1, %v505_v28 }
  0x49   : > { %3002 = vmatprep.mubr.msk.f32.mxu0 %vm520_vm1, %v506_v29 }
  0x4c   : > { %3003 = vmatmul.mubr.msk.f32.gmra.mrb[26].mxu0 %vm520_vm1, %v507_v30 }
  0x4d   : > { %3005 = vmatprep.mubr.msk.f32.mxu0 %vm520_vm1, %v508_v31 }
  0x50   : > { %3006 = vmatmul.mubr.msk.f32.gmra.mrb[28].mxu0 %vm520_vm1, %v509_v32 }
  0x51   : > { %3008 = vmatprep.mubr.msk.f32.mxu0 %vm520_vm1, %v510_v33 }
  0x54   : > { %3009 = vmatmul.mubr.msk.f32.gmra.mrb[30].mxu0 %vm520_vm1, %v511_v34 }
  0xeb   : > { %v2965_v39 = vpop.f32.mrb[0].mxu0 }
  0xec   : > { %v693_v40 = vadd.f32 %v2965_v39, %v3483_v38  ;;  %v687_v41 = vpop.f32.mrb[1].mxu0 }
  0xed   : > { %v688_v42 = vadd.f32 %v3483_v38, %v687_v41 }
  0xee   : > { %v847_v43 = vmax.f32 %v693_v40, 0.0 }
  0xef   : > { %v846_v44 = vmax.f32 %v688_v42, 0.0  ;;  %v2968_v45 = vpop.f32.mrb[2].mxu0 }
  0xf0   : > { %v703_v46 = vadd.f32 %v2968_v45, %v3483_v38  ;;  %v697_v47 = vpop.f32.mrb[3].mxu0 }
  0xf1   : > { %v698_v48 = vadd.f32 %v3483_v38, %v697_v47  ;;  %v878_v49 = vpack.c.bf16 %v847_v43, %v846_v44 }
  0xf2   : > { %v849_v50 = vmax.f32 %v703_v46, 0.0 }
  0xf3   : > { %v848_v51 = vmax.f32 %v698_v48, 0.0  ;;  %v2971_v52 = vpop.f32.mrb[4].mxu0  ;;  %3019 = vmatprep.mubr.msk.bf16.mxu1 %vm926_vm2, %v878_v49 }
  0xf4   : > { %v713_v53 = vadd.f32 %v2971_v52, %v3483_v38  ;;  %v707_v54 = vpop.f32.mrb[5].mxu0 }
  0xf5   : > { %v879_v55 = vpack.c.bf16 %v849_v50, %v848_v51  ;;  %v708_v56 = vadd.f32 %v3483_v38, %v707_v54 }
  0xf6   : > { %v851_v57 = vmax.f32 %v713_v53, 0.0 }
  0xf7   : > { %v850_v58 = vmax.f32 %v708_v56, 0.0  ;;  %v2974_v59 = vpop.f32.mrb[6].mxu0  ;;  %3020 = vmatmul.mubr.msk.bf16.vlgmr.msra.gmra.mrb[0].mxu1 %vm926_vm2, %v879_v55 }
  0xf8   : > { %v723_v60 = vadd.f32 %v2974_v59, %v3483_v38  ;;  %v717_v61 = vpop.f32.mrb[7].mxu0 }
  0xf9   : > { %v880_v62 = vpack.c.bf16 %v851_v57, %v850_v58  ;;  %v718_v63 = vadd.f32 %v3483_v38, %v717_v61 }
  0xfa   : > { %v853_v0 = vmax.f32 %v723_v60, 0.0 }
  0xfb   : > { %v852_v1 = vmax.f32 %v718_v63, 0.0  ;;  %v2977_v2 = vpop.f32.mrb[8].mxu0  ;;  %3023 = vmatprep.mubr.msk.bf16.mxu1 %vm926_vm2, %v880_v62 }
  0xfc   : > { %v733_v3 = vadd.f32 %v2977_v2, %v3483_v38  ;;  %v727_v4 = vpop.f32.mrb[9].mxu0 }
  0xfd   : > { %v881_v5 = vpack.c.bf16 %v853_v0, %v852_v1  ;;  %v728_v6 = vadd.f32 %v3483_v38, %v727_v4 }
  0xfe   : > { %v855_v7 = vmax.f32 %v733_v3, 0.0 }
  0xff   : > { %v854_v8 = vmax.f32 %v728_v6, 0.0  ;;  %v2980_v9 = vpop.f32.mrb[10].mxu0  ;;  %3024 = vmatmul.mubr.msk.bf16.gmra.mrb[4].mxu1 %vm926_vm2, %v881_v5 }
 0x100   : > { %v743_v10 = vadd.f32 %v2980_v9, %v3483_v38  ;;  %v737_v11 = vpop.f32.mrb[11].mxu0 }
 0x101   : > { %v882_v12 = vpack.c.bf16 %v855_v7, %v854_v8  ;;  %v738_v13 = vadd.f32 %v3483_v38, %v737_v11 }
 0x102   : > { %v857_v14 = vmax.f32 %v743_v10, 0.0 }
 0x103   : > { %v856_v15 = vmax.f32 %v738_v13, 0.0  ;;  %v2983_v16 = vpop.f32.mrb[12].mxu0  ;;  %3027 = vmatprep.mubr.msk.bf16.mxu1 %vm926_vm2, %v882_v12 }
 0x104   : > { %v753_v17 = vadd.f32 %v2983_v16, %v3483_v38  ;;  %v747_v18 = vpop.f32.mrb[13].mxu0 }
 0x105   : > { %v883_v19 = vpack.c.bf16 %v857_v14, %v856_v15  ;;  %v748_v20 = vadd.f32 %v3483_v38, %v747_v18 }
 0x106   : > { %v859_v21 = vmax.f32 %v753_v17, 0.0 }
 0x107   : > { %v858_v22 = vmax.f32 %v748_v20, 0.0  ;;  %v2986_v23 = vpop.f32.mrb[14].mxu0  ;;  %3028 = vmatmul.mubr.msk.bf16.gmra.mrb[8].mxu1 %vm926_vm2, %v883_v19 }
 0x108   : > { %v763_v24 = vadd.f32 %v2986_v23, %v3483_v38  ;;  %v757_v25 = vpop.f32.mrb[15].mxu0 }
 0x109   : > { %v884_v26 = vpack.c.bf16 %v859_v21, %v858_v22  ;;  %v758_v27 = vadd.f32 %v3483_v38, %v757_v25 }
 0x10a   : > { %v861_v28 = vmax.f32 %v763_v24, 0.0 }
 0x10b   : > { %v860_v29 = vmax.f32 %v758_v27, 0.0  ;;  %v2989_v30 = vpop.f32.mrb[16].mxu0  ;;  %3031 = vmatprep.mubr.msk.bf16.mxu1 %vm926_vm2, %v884_v26 }
 0x10c   : > { %v773_v31 = vadd.f32 %v2989_v30, %v3483_v38  ;;  %v767_v32 = vpop.f32.mrb[17].mxu0 }
 0x10d   : > { %v885_v33 = vpack.c.bf16 %v861_v28, %v860_v29  ;;  %v768_v34 = vadd.f32 %v3483_v38, %v767_v32 }
 0x10e   : > { %v863_v35 = vmax.f32 %v773_v31, 0.0 }
 0x10f   : > { %v862_v36 = vmax.f32 %v768_v34, 0.0  ;;  %v2992_v37 = vpop.f32.mrb[18].mxu0  ;;  %3032 = vmatmul.mubr.msk.bf16.gmra.mrb[12].mxu1 %vm926_vm2, %v885_v33 }
 0x110   : > { %v783_v39 = vadd.f32 %v2992_v37, %v3483_v38  ;;  %v777_v40 = vpop.f32.mrb[19].mxu0 }
 0x111   : > { %v886_v41 = vpack.c.bf16 %v863_v35, %v862_v36  ;;  %v778_v42 = vadd.f32 %v3483_v38, %v777_v40 }
 0x112   : > { %v865_v43 = vmax.f32 %v783_v39, 0.0 }
 0x113   : > { %v864_v44 = vmax.f32 %v778_v42, 0.0  ;;  %v2995_v45 = vpop.f32.mrb[20].mxu0  ;;  %3035 = vmatprep.mubr.msk.bf16.mxu1 %vm926_vm2, %v886_v41 }
 0x114   : > { %v793_v46 = vadd.f32 %v2995_v45, %v3483_v38  ;;  %v787_v47 = vpop.f32.mrb[21].mxu0 }
 0x115   : > { %v887_v48 = vpack.c.bf16 %v865_v43, %v864_v44  ;;  %v788_v49 = vadd.f32 %v3483_v38, %v787_v47 }
 0x116   : > { %v867_v50 = vmax.f32 %v793_v46, 0.0 }
 0x117   : > { %v866_v51 = vmax.f32 %v788_v49, 0.0  ;;  %v2998_v52 = vpop.f32.mrb[22].mxu0  ;;  %3036 = vmatmul.mubr.msk.bf16.gmra.mrb[16].mxu1 %vm926_vm2, %v887_v48 }
 0x118   : > { %v803_v53 = vadd.f32 %v2998_v52, %v3483_v38  ;;  %v797_v54 = vpop.f32.mrb[23].mxu0 }
 0x119   : > { %v888_v55 = vpack.c.bf16 %v867_v50, %v866_v51  ;;  %v798_v56 = vadd.f32 %v3483_v38, %v797_v54 }
 0x11a   : > { %v869_v57 = vmax.f32 %v803_v53, 0.0 }
 0x11b   : > { %v868_v58 = vmax.f32 %v798_v56, 0.0  ;;  %v3001_v59 = vpop.f32.mrb[24].mxu0  ;;  %3039 = vmatprep.mubr.msk.bf16.mxu1 %vm926_vm2, %v888_v55 }
 0x11c   : > { %v813_v60 = vadd.f32 %v3001_v59, %v3483_v38  ;;  %v807_v61 = vpop.f32.mrb[25].mxu0 }
 0x11d   : > { %v889_v62 = vpack.c.bf16 %v869_v57, %v868_v58  ;;  %v808_v63 = vadd.f32 %v3483_v38, %v807_v61 }
 0x11e   : > { %v871_v0 = vmax.f32 %v813_v60, 0.0 }
 0x11f   : > { %v870_v1 = vmax.f32 %v808_v63, 0.0  ;;  %v3004_v2 = vpop.f32.mrb[26].mxu0  ;;  %3040 = vmatmul.mubr.msk.bf16.gmra.mrb[20].mxu1 %vm926_vm2, %v889_v62 }
 0x120   : > { %v823_v3 = vadd.f32 %v3004_v2, %v3483_v38  ;;  %v817_v4 = vpop.f32.mrb[27].mxu0 }
 0x121   : > { %v890_v5 = vpack.c.bf16 %v871_v0, %v870_v1  ;;  %v818_v6 = vadd.f32 %v3483_v38, %v817_v4 }
 0x122   : > { %v873_v7 = vmax.f32 %v823_v3, 0.0 }
 0x123   : > { %v872_v8 = vmax.f32 %v818_v6, 0.0  ;;  %v3007_v9 = vpop.f32.mrb[28].mxu0  ;;  %3043 = vmatprep.mubr.msk.bf16.mxu1 %vm926_vm2, %v890_v5 }
 0x124   : > { %v833_v10 = vadd.f32 %v3007_v9, %v3483_v38  ;;  %v827_v11 = vpop.f32.mrb[29].mxu0 }
 0x125   : > { %v891_v12 = vpack.c.bf16 %v873_v7, %v872_v8  ;;  %v828_v13 = vadd.f32 %v3483_v38, %v827_v11 }
 0x126   : > { %v875_v14 = vmax.f32 %v833_v10, 0.0 }
 0x127   : > { %v874_v15 = vmax.f32 %v828_v13, 0.0  ;;  %v3010_v16 = vpop.f32.mrb[30].mxu0  ;;  %3044 = vmatmul.mubr.msk.bf16.gmra.mrb[24].mxu1 %vm926_vm2, %v891_v12 }
 0x128   : > { %v843_v17 = vadd.f32 %v3010_v16, %v3483_v38  ;;  %v837_v18 = vpop.f32.mrb[31].mxu0 }
 0x129   : > { %v892_v19 = vpack.c.bf16 %v875_v14, %v874_v15  ;;  %v838_v20 = vadd.f32 %v3483_v38, %v837_v18 }
 0x12a   : > { %v877_v21 = vmax.f32 %v843_v17, 0.0 }
 0x12b   : > { %v876_v22 = vmax.f32 %v838_v20, 0.0  ;;  %3047 = vmatprep.mubr.msk.bf16.mxu1 %vm926_vm2, %v892_v19 }
 0x12d   : > { %v893_v23 = vpack.c.bf16 %v877_v21, %v876_v22 }
 0x12f   : > { %3048 = vmatmul.mubr.msk.bf16.gmra.mrb[28].mxu1 %vm926_vm2, %v893_v23 }
 0x1ca   : > { %v3533_v24 = vpop.f32.mrb[0].mxu1 }
 0x1cb   : > { %v3535_v25 = vpop.f32.mrb[1].mxu1  ;;  %v1176_v62 = vmul.f32 (!%p2813_p5), %v3533_v24, %v3533_v24 }
 0x1cc   : > { %v3537_v26 = vpop.f32.mrb[2].mxu1  ;;  %v1174_v59 = vmul.f32 (!%p2813_p5), %v3535_v25, %v3535_v25 }
 0x1cd   : > { %v3539_v27 = vpop.f32.mrb[3].mxu1  ;;  %v1177_v0 = vmul.f32 (!%p2813_p5), %v3537_v26, %v3537_v26 }
 0x1ce   : > { %v1140_v56 = vadd.f32 (!%p2813_p5), %v3539_v27, %v3535_v25  ;;  %v1175_v60 = vmul.f32 (!%p2813_p5), %v3539_v27, %v3539_v27 }
 0x1d0   : > { %v1141_v57 = vadd.f32 (!%p2813_p5), %v3533_v24, %v1140_v56  ;;  %v1206_v1 = vadd.f32 (!%p2813_p5), %v1175_v60, %v1174_v59 }
 0x1d2   : > { %v3541_v28 = vpop.f32.mrb[4].mxu1  ;;  %v1142_v58 = vadd.f32 (!%p2813_p5), %v3537_v26, %v1141_v57  ;;  %v1207_v4 = vadd.f32 (!%p2813_p5), %v1206_v1, %v1176_v62 }
 0x1d3   : > { %v3543_v29 = vpop.f32.mrb[5].mxu1  ;;  %v1180_v9 = vmul.f32 (!%p2813_p5), %v3541_v28, %v3541_v28 }
 0x1d4   : > { %v3545_v38 = vpop.f32.mrb[6].mxu1  ;;  %v1143_v61 = vadd.f32 (!%p2813_p5), %v1142_v58, %v3543_v29  ;;  %v1178_v3 = vmul.f32 (!%p2813_p5), %v3543_v29, %v3543_v29  ;;  %v1208_v7 = vadd.f32 (!%p2813_p5), %v1207_v4, %v1177_v0 }
 0x1d5   : > { %v3547_v30 = vpop.f32.mrb[7].mxu1  ;;  %v1181_v12 = vmul.f32 (!%p2813_p5), %v3545_v38, %v3545_v38 }
 0x1d6   : > { %v1144_v63 = vadd.f32 (!%p2813_p5), %v1143_v61, %v3547_v30  ;;  %v1179_v6 = vmul.f32 (!%p2813_p5), %v3547_v30, %v3547_v30  ;;  %v1209_v10 = vadd.f32 (!%p2813_p5), %v1208_v7, %v1178_v3 }
 0x1d8   : > { %v1145_v2 = vadd.f32 (!%p2813_p5), %v3541_v28, %v1144_v63  ;;  %v1210_v13 = vadd.f32 (!%p2813_p5), %v1209_v10, %v1179_v6 }
 0x1da   : > { %v3549_v31 = vpop.f32.mrb[8].mxu1  ;;  %v1146_v5 = vadd.f32 (!%p2813_p5), %v3545_v38, %v1145_v2  ;;  %v1211_v16 = vadd.f32 (!%p2813_p5), %v1210_v13, %v1180_v9 }
 0x1db   : > { %v3551_v32 = vpop.f32.mrb[9].mxu1  ;;  %v1184_v21 = vmul.f32 (!%p2813_p5), %v3549_v31, %v3549_v31 }
 0x1dc   : > { %v3553_v33 = vpop.f32.mrb[10].mxu1  ;;  %v1147_v8 = vadd.f32 (!%p2813_p5), %v1146_v5, %v3551_v32  ;;  %v1182_v15 = vmul.f32 (!%p2813_p5), %v3551_v32, %v3551_v32  ;;  %v1212_v19 = vadd.f32 (!%p2813_p5), %v1211_v16, %v1181_v12 }
 0x1dd   : > { %v3555_v34 = vpop.f32.mrb[11].mxu1  ;;  %v1185_v56 = vmul.f32 (!%p2813_p5), %v3553_v33, %v3553_v33 }
 0x1de   : > { %v1148_v11 = vadd.f32 (!%p2813_p5), %v1147_v8, %v3555_v34  ;;  %v1183_v18 = vmul.f32 (!%p2813_p5), %v3555_v34, %v3555_v34  ;;  %v1213_v22 = vadd.f32 (!%p2813_p5), %v1212_v19, %v1182_v15 }
 0x1e0   : > { %v1149_v14 = vadd.f32 (!%p2813_p5), %v3549_v31, %v1148_v11  ;;  %v1214_v57 = vadd.f32 (!%p2813_p5), %v1213_v22, %v1183_v18 }
 0x1e2   : > { %v3557_v35 = vpop.f32.mrb[12].mxu1  ;;  %v1150_v17 = vadd.f32 (!%p2813_p5), %v3553_v33, %v1149_v14  ;;  %v1215_v60 = vadd.f32 (!%p2813_p5), %v1214_v57, %v1184_v21 }
 0x1e3   : > { %v3559_v36 = vpop.f32.mrb[13].mxu1  ;;  %v1188_v1 = vmul.f32 (!%p2813_p5), %v3557_v35, %v3557_v35 }
 0x1e4   : > { %v3561_v37 = vpop.f32.mrb[14].mxu1  ;;  %v1151_v20 = vadd.f32 (!%p2813_p5), %v1150_v17, %v3559_v36  ;;  %v1186_v59 = vmul.f32 (!%p2813_p5), %v3559_v36, %v3559_v36  ;;  %v1216_v63 = vadd.f32 (!%p2813_p5), %v1215_v60, %v1185_v56 }
 0x1e5   : > { %v3563_v39 = vpop.f32.mrb[15].mxu1  ;;  %v1189_v4 = vmul.f32 (!%p2813_p5), %v3561_v37, %v3561_v37 }
 0x1e6   : > { %v1152_v23 = vadd.f32 (!%p2813_p5), %v1151_v20, %v3563_v39  ;;  %v1187_v62 = vmul.f32 (!%p2813_p5), %v3563_v39, %v3563_v39  ;;  %v1217_v2 = vadd.f32 (!%p2813_p5), %v1216_v63, %v1186_v59 }
 0x1e8   : > { %v1153_v58 = vadd.f32 (!%p2813_p5), %v3557_v35, %v1152_v23  ;;  %v1218_v5 = vadd.f32 (!%p2813_p5), %v1217_v2, %v1187_v62 }
 0x1ea   : > { %v3565_v40 = vpop.f32.mrb[16].mxu1  ;;  %v1154_v61 = vadd.f32 (!%p2813_p5), %v3561_v37, %v1153_v58  ;;  %v1219_v8 = vadd.f32 (!%p2813_p5), %v1218_v5, %v1188_v1 }
 0x1eb   : > { %v3567_v41 = vpop.f32.mrb[17].mxu1  ;;  %v1192_v13 = vmul.f32 (!%p2813_p5), %v3565_v40, %v3565_v40 }
 0x1ec   : > { %v3569_v42 = vpop.f32.mrb[18].mxu1  ;;  %v1155_v0 = vadd.f32 (!%p2813_p5), %v1154_v61, %v3567_v41  ;;  %v1190_v7 = vmul.f32 (!%p2813_p5), %v3567_v41, %v3567_v41  ;;  %v1220_v11 = vadd.f32 (!%p2813_p5), %v1219_v8, %v1189_v4 }
 0x1ed   : > { %v3571_v43 = vpop.f32.mrb[19].mxu1  ;;  %v1193_v16 = vmul.f32 (!%p2813_p5), %v3569_v42, %v3569_v42 }
 0x1ee   : > { %v1156_v3 = vadd.f32 (!%p2813_p5), %v1155_v0, %v3571_v43  ;;  %v1191_v10 = vmul.f32 (!%p2813_p5), %v3571_v43, %v3571_v43  ;;  %v1221_v14 = vadd.f32 (!%p2813_p5), %v1220_v11, %v1190_v7  ;;  %v1139_v11 = vld [vmem:[#allocation2] sm:$0xff] (!%p2813_p5) }
 0x1f0   : > { %v1157_v6 = vadd.f32 (!%p2813_p5), %v3565_v40, %v1156_v3  ;;  %v1222_v17 = vadd.f32 (!%p2813_p5), %v1221_v14, %v1191_v10 }
 0x1f2   : > { %v3573_v44 = vpop.f32.mrb[20].mxu1  ;;  %v1158_v9 = vadd.f32 (!%p2813_p5), %v3569_v42, %v1157_v6  ;;  %v1223_v20 = vadd.f32 (!%p2813_p5), %v1222_v17, %v1192_v13 }
 0x1f3   : > { %v3575_v45 = vpop.f32.mrb[21].mxu1  ;;  %v1196_v57 = vmul.f32 (!%p2813_p5), %v3573_v44, %v3573_v44 }
 0x1f4   : > { %v3577_v46 = vpop.f32.mrb[22].mxu1  ;;  %v1159_v12 = vadd.f32 (!%p2813_p5), %v1158_v9, %v3575_v45  ;;  %v1194_v19 = vmul.f32 (!%p2813_p5), %v3575_v45, %v3575_v45  ;;  %v1224_v23 = vadd.f32 (!%p2813_p5), %v1223_v20, %v1193_v16 }
 0x1f5   : > { %v3579_v47 = vpop.f32.mrb[23].mxu1  ;;  %v1197_v60 = vmul.f32 (!%p2813_p5), %v3577_v46, %v3577_v46 }
 0x1f6   : > { %v1160_v15 = vadd.f32 (!%p2813_p5), %v1159_v12, %v3579_v47  ;;  %v1195_v22 = vmul.f32 (!%p2813_p5), %v3579_v47, %v3579_v47  ;;  %v1225_v58 = vadd.f32 (!%p2813_p5), %v1224_v23, %v1194_v19  ;;  %v1173_v23 = vld [vmem:[#allocation3] sm:$0xff] (!%p2813_p5) }
 0x1f8   : > { %v1161_v18 = vadd.f32 (!%p2813_p5), %v3573_v44, %v1160_v15  ;;  %v1226_v61 = vadd.f32 (!%p2813_p5), %v1225_v58, %v1195_v22 }
 0x1fa   : > { %v3581_v48 = vpop.f32.mrb[24].mxu1  ;;  %v1162_v21 = vadd.f32 (!%p2813_p5), %v3577_v46, %v1161_v18  ;;  %v1227_v0 = vadd.f32 (!%p2813_p5), %v1226_v61, %v1196_v57 }
 0x1fb   : > { %v3583_v49 = vpop.f32.mrb[25].mxu1  ;;  %v1200_v5 = vmul.f32 (!%p2813_p5), %v3581_v48, %v3581_v48 }
 0x1fc   : > { %v3585_v50 = vpop.f32.mrb[26].mxu1  ;;  %v1163_v56 = vadd.f32 (!%p2813_p5), %v1162_v21, %v3583_v49  ;;  %v1198_v63 = vmul.f32 (!%p2813_p5), %v3583_v49, %v3583_v49  ;;  %v1228_v3 = vadd.f32 (!%p2813_p5), %v1227_v0, %v1197_v60 }
 0x1fd   : > { %v3587_v51 = vpop.f32.mrb[27].mxu1  ;;  %v1201_v8 = vmul.f32 (!%p2813_p5), %v3585_v50, %v3585_v50 }
 0x1fe   : > { %v1164_v59 = vadd.f32 (!%p2813_p5), %v1163_v56, %v3587_v51  ;;  %v1199_v2 = vmul.f32 (!%p2813_p5), %v3587_v51, %v3587_v51  ;;  %v1229_v6 = vadd.f32 (!%p2813_p5), %v1228_v3, %v1198_v63 }
 0x1ff   : > { %1138 = sbr.rel (%p2813_p5) target bundleno = 529 (0x211), region = 84 }
 0x200   : > { %v1165_v62 = vadd.f32 (!%p2813_p5), %v3581_v48, %v1164_v59  ;;  %v1230_v9 = vadd.f32 (!%p2813_p5), %v1229_v6, %v1199_v2 }
 0x202   : > { %v3589_v52 = vpop.f32.mrb[28].mxu1  ;;  %v1166_v1 = vadd.f32 (!%p2813_p5), %v3585_v50, %v1165_v62  ;;  %v1231_v13 = vadd.f32 (!%p2813_p5), %v1230_v9, %v1200_v5 }
 0x203   : > { %v3591_v53 = vpop.f32.mrb[29].mxu1  ;;  %v1204_v18 = vmul.f32 (!%p2813_p5), %v3589_v52, %v3589_v52 }
 0x204   : > { %v3593_v54 = vpop.f32.mrb[30].mxu1  ;;  %v1167_v4 = vadd.f32 (!%p2813_p5), %v1166_v1, %v3591_v53  ;;  %v1202_v12 = vmul.f32 (!%p2813_p5), %v3591_v53, %v3591_v53  ;;  %v1232_v16 = vadd.f32 (!%p2813_p5), %v1231_v13, %v1201_v8 }
 0x205   : > { %v3595_v55 = vpop.f32.mrb[31].mxu1  ;;  %v1205_v20 = vmul.f32 (!%p2813_p5), %v3593_v54, %v3593_v54 }
 0x206   : > { %v1168_v7 = vadd.f32 %v1167_v4, %v3595_v55  ;;  %v1203_v15 = vmul.f32 %v3595_v55, %v3595_v55  ;;  %v1233_v19 = vadd.f32 %v1232_v16, %v1202_v12 }
 0x208   : > { %v1169_v10 = vadd.f32 %v3589_v52, %v1168_v7  ;;  %v1234_v21 = vadd.f32 %v1233_v19, %v1203_v15 }
 0x20a   : > { %v1170_v14 = vadd.f32 %v3593_v54, %v1169_v10  ;;  %v1235_v22 = vadd.f32 %v1234_v21, %v1204_v18 }
 0x20c   : > { %v1171_v17 = vadd.f32 %v1170_v14, %v1139_v11  ;;  %v1236_v56 = vadd.f32 %v1235_v22, %v1205_v20 }
 0x20e   : > { %1172 = vst [vmem:[#allocation2] sm:$0xff] %v1171_v17  ;;  %v1237_v57 = vadd.f32 %v1236_v56, %v1173_v23 }
 0x210   : > { %1238 = vst [vmem:[#allocation3] sm:$0xff] %v1237_v57 }
 0x211 PF: > { %p1239_p6 = scmp.eq.s32.totalorder %s3227_s29, 1  ;;  %p2814_p7 = scmp.ne.s32.totalorder %s3227_s29, 1 }
 0x213   : > { %1242 = sbr.rel (%p2814_p7) target bundleno = 900 (0x384), region = 88 }
 0x21a   : > { %v3131_v58 = vld [vmem:[%s4561_s6 + $0x4] ss:$8 sps:$4 sm:$0xff]   ;;  %v3133_v59 = vld [vmem:[%s4561_s6] ss:$8 sps:$4 sm:$0xff]   ;;  %v3238_v60 = vmov 0   ;;  %vm2135_vm3 = vcmask 1041409  }
 0x21b   : > { %1581 = vmatprep.mubr.bf16.mxu0 %v3238_v60  ;;  %1661 = vmatprep.mubr.bf16.mxu1 %v3238_v60  ;;  %v3134_v61 = vld [vmem:[%s4561_s6 + $0x14] ss:$8 sps:$4 sm:$0xff]   ;;  %v3136_v62 = vld [vmem:[%s4561_s6 + $0x10] ss:$8 sps:$4 sm:$0xff]   ;;  %v3137_v63 = vld [vmem:[%s4561_s6 + $0x24] ss:$8 sps:$4 sm:$0xff]  }
 0x21c   : > { %1549 = vmatprep.subr.bf16.mxu0 %v3131_v58  ;;  %3083 = vmatprep.subr.bf16.mxu1 %v3131_v58  ;;  %v3139_v0 = vld [vmem:[%s4561_s6 + $0x20] ss:$8 sps:$4 sm:$0xff]   ;;  %v3140_v1 = vld [vmem:[%s4561_s6 + $0x34] ss:$8 sps:$4 sm:$0xff]   ;;  %v3142_v3 = vld [vmem:[%s4561_s6 + $0x30] ss:$8 sps:$4 sm:$0xff]  }
 0x21d   : > { %1550 = vmatpush1.bf16.msra.mxu0 %v3133_v59  ;;  %3091 = vmatpush1.bf16.msra.mxu1 %v3133_v59  ;;  %v1243_v2 = vld [vmem:[#allocation2] sm:$0xff]  ;;  %v1251_v5 = vld [vmem:[#allocation3] sm:$0xff]  ;;  %v3146_v12 = vld [vmem:[%s4561_s6 + $0x54] ss:$8 sps:$4 sm:$0xff]   ;;  %vm2137_vm4 = vcmask 1043459   ;;  %vm2139_vm5 = vcmask 1045509  }
 0x21e   : > { %1551 = vmatprep.subr.bf16.mxu0 %v3134_v61  ;;  %3084 = vmatprep.subr.bf16.mxu1 %v3134_v61  ;;  %v1244_v4 = vrot.slane %v1243_v2, 4  ;;  %v3143_v6 = vld [vmem:[%s4561_s6 + $0x44] ss:$8 sps:$4 sm:$0xff]   ;;  %v1252_v7 = vrot.slane %v1251_v5, 4  ;;  %v3145_v10 = vld [vmem:[%s4561_s6 + $0x40] ss:$8 sps:$4 sm:$0xff]  }
 0x21f   : > { %v3148_v16 = vld [vmem:[%s4561_s6 + $0x50] ss:$8 sps:$4 sm:$0xff]   ;;  %v3149_v18 = vld [vmem:[%s4561_s6 + $0x64] ss:$8 sps:$4 sm:$0xff]   ;;  %v3151_v22 = vld [vmem:[%s4561_s6 + $0x60] ss:$8 sps:$4 sm:$0xff]  }
 0x220   : > { %v1245_v8 = vadd.f32 %v1244_v4, %v1243_v2  ;;  %v1253_v9 = vadd.f32 %v1252_v7, %v1251_v5  ;;  %v3152_v56 = vld [vmem:[%s4561_s6 + $0x74] ss:$8 sps:$4 sm:$0xff]   ;;  %v3154_v59 = vld [vmem:[%s4561_s6 + $0x70] ss:$8 sps:$4 sm:$0xff]   ;;  %vm2141_vm6 = vcmask 1047559  }
 0x221   : > { %1552 = vmatpush1.bf16.msra.mxu0 %v3136_v62  ;;  %3092 = vmatpush1.bf16.msra.mxu1 %v3136_v62 }
 0x222   : > { %1553 = vmatprep.subr.bf16.mxu0 %v3137_v63  ;;  %3085 = vmatprep.subr.bf16.mxu1 %v3137_v63  ;;  %v1246_v11 = vrot.slane %v1245_v8, 2  ;;  %v1254_v13 = vrot.slane %v1253_v9, 2 }
 0x224   : > { %v1247_v14 = vadd.f32 %v1246_v11, %v1245_v8  ;;  %v1255_v15 = vadd.f32 %v1254_v13, %v1253_v9 }
 0x225   : > { %1554 = vmatpush1.bf16.msra.mxu0 %v3139_v0  ;;  %3093 = vmatpush1.bf16.msra.mxu1 %v3139_v0 }
 0x226   : > { %1555 = vmatprep.subr.bf16.mxu0 %v3140_v1  ;;  %3086 = vmatprep.subr.bf16.mxu1 %v3140_v1  ;;  %v1248_v17 = vrot.slane %v1247_v14, 1  ;;  %v1256_v19 = vrot.slane %v1255_v15, 1 }
 0x228   : > { %v1249_v20 = vadd.f32 %v1248_v17, %v1247_v14  ;;  %v1257_v21 = vadd.f32 %v1256_v19, %v1255_v15 }
 0x229   : > { %1556 = vmatpush1.bf16.msra.mxu0 %v3142_v3  ;;  %3094 = vmatpush1.bf16.msra.mxu1 %v3142_v3 }
 0x22a   : > { %1557 = vmatprep.subr.bf16.mxu0 %v3143_v6  ;;  %3087 = vmatprep.subr.bf16.mxu1 %v3143_v6  ;;  %v3740_v23 = vmul.f32 0.00390625, %v1249_v20  ;;  %v1258_v57 = vmul.f32 0.00390625, %v1257_v21 }
 0x22c   : > { %v1259_v58 = vmul.f32 %v3740_v23, %v3740_v23  ;;  %v1263_v63 = vsub.f32 %v3535_v25, %v3740_v23  ;;  %v1264_v0 = vsub.f32 %v3539_v27, %v3740_v23  ;;  %v1279_v1 = vsub.f32 %v3567_v41, %v3740_v23  ;;  %v3773_v41 = vld [vmem:[%s4559_s4] ss:$0 sm:$0xff] }
 0x22d   : > { %1558 = vmatpush1.bf16.msra.mxu0 %v3145_v10  ;;  %3095 = vmatpush1.bf16.msra.mxu1 %v3145_v10  ;;  %v1280_v2 = vsub.f32 %v3571_v43, %v3740_v23  ;;  %v1265_v3 = vsub.f32 %v3533_v24, %v3740_v23  ;;  %v1266_v4 = vsub.f32 %v3537_v26, %v3740_v23 }
 0x22e   : > { %1559 = vmatprep.subr.bf16.mxu0 %v3146_v12  ;;  %3088 = vmatprep.subr.bf16.mxu1 %v3146_v12  ;;  %v1260_v61 = vsub.f32 %v1258_v57, %v1259_v58  ;;  %v1281_v5 = vsub.f32 %v3565_v40, %v3740_v23  ;;  %v1282_v25 = vsub.f32 %v3569_v42, %v3740_v23 }
 0x22f   : > { %v1267_v27 = vsub.f32 %v3543_v29, %v3740_v23  ;;  %v1268_v24 = vsub.f32 %v3547_v30, %v3740_v23  ;;  %v1283_v26 = vsub.f32 %v3575_v45, %v3740_v23  ;;  %v1284_v40 = vsub.f32 %v3579_v47, %v3740_v23  ;;  %v3790_v30 = vld [vmem:[%s4560_s5] ss:$0 sm:$0xff] }
 0x230   : > { %v1295_v62 = vadd.f32 1e-05, %v1260_v61  ;;  %v1269_v42 = vsub.f32 %v3541_v28, %v3740_v23 }
 0x231   : > { %1560 = vmatpush1.bf16.msra.mxu0 %v3148_v16  ;;  %3096 = vmatpush1.bf16.msra.mxu1 %v3148_v16 }
 0x232   : > { %1561 = vmatprep.subr.bf16.mxu0 %v3149_v18  ;;  %3089 = vmatprep.subr.bf16.mxu1 %v3149_v18  ;;  %3155 = vrsqrt.f32 %v1295_v62 }
 0x235   : > { %1562 = vmatpush1.bf16.msra.mxu0 %v3151_v22  ;;  %3097 = vmatpush1.bf16.msra.mxu1 %v3151_v22 }
 0x236   : > { %1563 = vmatprep.subr.bf16.mxu0 %v3152_v56  ;;  %3090 = vmatprep.subr.bf16.mxu1 %v3152_v56 }
 0x239   : > { %1564 = vmatpush1.bf16.msra.mxu0 %v3154_v59  ;;  %3098 = vmatpush1.bf16.msra.mxu1 %v3154_v59 }
 0x23c   : > { %v3768_v6 = vpop.eup %3155 }
 0x23d   : > { %v1297_v29 = vmul.f32 %v3768_v6, %v1263_v63  ;;  %v1298_v43 = vmul.f32 %v3768_v6, %v1264_v0  ;;  %v1313_v7 = vmul.f32 %v3768_v6, %v1279_v1  ;;  %v1314_v8 = vmul.f32 %v3768_v6, %v1280_v2 }
 0x23e   : > { %v1299_v45 = vmul.f32 %v3768_v6, %v1265_v3  ;;  %v1300_v47 = vmul.f32 %v3768_v6, %v1266_v4  ;;  %v1315_v9 = vmul.f32 %v3768_v6, %v1281_v5  ;;  %v1316_v28 = vmul.f32 %v3768_v6, %v1282_v25 }
 0x23f   : > { %v1335_v10 = vmul.f32 %v3773_v41, %v1297_v29  ;;  %v1336_v11 = vmul.f32 %v3773_v41, %v1298_v43  ;;  %v1351_v12 = vmul.f32 %v3773_v41, %v1313_v7  ;;  %v1352_v13 = vmul.f32 %v3773_v41, %v1314_v8 }
 0x240   : > { %v1337_v14 = vmul.f32 %v3773_v41, %v1299_v45  ;;  %v1338_v15 = vmul.f32 %v3773_v41, %v1300_v47  ;;  %v1353_v16 = vmul.f32 %v3773_v41, %v1315_v9  ;;  %v1354_v17 = vmul.f32 %v3773_v41, %v1316_v28 }
 0x241   : > { %v1373_v18 = vadd.f32 %v3790_v30, %v1335_v10  ;;  %v1374_v19 = vadd.f32 %v3790_v30, %v1336_v11  ;;  %v1389_v20 = vadd.f32 %v3790_v30, %v1351_v12  ;;  %v1390_v21 = vadd.f32 %v3790_v30, %v1352_v13 }
 0x242   : > { %v1375_v22 = vadd.f32 %v3790_v30, %v1337_v14  ;;  %v1376_v56 = vadd.f32 %v3790_v30, %v1338_v15  ;;  %v1391_v57 = vadd.f32 %v3790_v30, %v1353_v16  ;;  %v1392_v58 = vadd.f32 %v3790_v30, %v1354_v17 }
 0x243   : > { %v1405_v59 = vmax.f32 %v1373_v18, 0.0  ;;  %v1406_v61 = vmax.f32 %v1374_v19, 0.0  ;;  %v1421_v62 = vmax.f32 %v1389_v20, 0.0  ;;  %v1422_v63 = vmax.f32 %v1390_v21, 0.0 }
 0x244   : > { %v1407_v0 = vmax.f32 %v1375_v22, 0.0  ;;  %v1408_v1 = vmax.f32 %v1376_v56, 0.0  ;;  %v1270_v2 = vsub.f32 %v3545_v38, %v3740_v23  ;;  %v1285_v3 = vsub.f32 %v3573_v44, %v3740_v23 }
 0x245   : > { %v1437_v4 = vpack.c.bf16 %v1406_v61, %v1405_v59  ;;  %v1445_v5 = vpack.c.bf16 %v1422_v63, %v1421_v62  ;;  %v1301_v25 = vmul.f32 %v3768_v6, %v1267_v27  ;;  %v1302_v29 = vmul.f32 %v3768_v6, %v1268_v24 }
 0x246   : > { %v1423_v43 = vmax.f32 %v1391_v57, 0.0  ;;  %v1424_v7 = vmax.f32 %v1392_v58, 0.0  ;;  %v1317_v8 = vmul.f32 %v3768_v6, %v1283_v26  ;;  %v1318_v45 = vmul.f32 %v3768_v6, %v1284_v40 }
 0x247   : > { %1582 = vmatmul.mubr.bf16.vlgmr.msra.gmra.mrb[0].mxu0 %v1437_v4  ;;  %1662 = vmatmul.mubr.bf16.vlgmr.msra.gmra.mrb[0].mxu1 %v1445_v5  ;;  %v1339_v47 = vmul.f32 %v3773_v41, %v1301_v25  ;;  %v1340_v38 = vmul.f32 %v3773_v41, %v1302_v29  ;;  %v1286_v44 = vsub.f32 %v3577_v46, %v3740_v23 }
 0x248   : > { %1591 = vmatprep.mubr.bf16.mxu0 %v3238_v60  ;;  %1671 = vmatprep.mubr.bf16.mxu1 %v3238_v60  ;;  %v1355_v27 = vmul.f32 %v3773_v41, %v1317_v8  ;;  %v1356_v24 = vmul.f32 %v3773_v41, %v1318_v45  ;;  %v1303_v26 = vmul.f32 %v3768_v6, %v1269_v42 }
 0x249   : > { %v1304_v40 = vmul.f32 %v3768_v6, %v1270_v2  ;;  %v1438_v9 = vpack.c.bf16 %v1408_v1, %v1407_v0  ;;  %v1446_v28 = vpack.c.bf16 %v1424_v7, %v1423_v43  ;;  %v1377_v10 = vadd.f32 %v3790_v30, %v1339_v47 }
 0x24a   : > { %v1378_v11 = vadd.f32 %v3790_v30, %v1340_v38  ;;  %v1393_v46 = vadd.f32 %v3790_v30, %v1355_v27  ;;  %v1394_v12 = vadd.f32 %v3790_v30, %v1356_v24  ;;  %v1319_v13 = vmul.f32 %v3768_v6, %v1285_v3 }
 0x24b   : > { %v1320_v14 = vmul.f32 %v3768_v6, %v1286_v44  ;;  %v1271_v15 = vsub.f32 %v3551_v32, %v3740_v23  ;;  %v1341_v42 = vmul.f32 %v3773_v41, %v1303_v26  ;;  %v1342_v16 = vmul.f32 %v3773_v41, %v1304_v40 }
 0x24c   : > { %v1272_v17 = vsub.f32 %v3555_v34, %v3740_v23  ;;  %v1409_v18 = vmax.f32 %v1377_v10, 0.0  ;;  %v1410_v19 = vmax.f32 %v1378_v11, 0.0  ;;  %v1287_v20 = vsub.f32 %v3583_v49, %v3740_v23 }
 0x24d   : > { %v1288_v21 = vsub.f32 %v3587_v51, %v3740_v23  ;;  %v1425_v22 = vmax.f32 %v1393_v46, 0.0  ;;  %v1426_v56 = vmax.f32 %v1394_v12, 0.0  ;;  %v1357_v32 = vmul.f32 %v3773_v41, %v1319_v13 }
 0x24e   : > { %v1358_v57 = vmul.f32 %v3773_v41, %v1320_v14  ;;  %v1305_v34 = vmul.f32 %v3768_v6, %v1271_v15  ;;  %v1379_v58 = vadd.f32 %v3790_v30, %v1341_v42  ;;  %v1380_v49 = vadd.f32 %v3790_v30, %v1342_v16 }
 0x24f   : > { %1592 = vmatmul.mubr.bf16.gmra.mrb[4].mxu0 %v1438_v9  ;;  %1672 = vmatmul.mubr.bf16.gmra.mrb[4].mxu1 %v1446_v28  ;;  %v1306_v51 = vmul.f32 %v3768_v6, %v1272_v17  ;;  %v1273_v59 = vsub.f32 %v3549_v31, %v3740_v23  ;;  %v1321_v61 = vmul.f32 %v3768_v6, %v1287_v20 }
 0x250   : > { %1601 = vmatprep.mubr.bf16.mxu0 %v3238_v60  ;;  %1681 = vmatprep.mubr.bf16.mxu1 %v3238_v60  ;;  %v1322_v62 = vmul.f32 %v3768_v6, %v1288_v21  ;;  %v1274_v63 = vsub.f32 %v3553_v33, %v3740_v23  ;;  %v1289_v0 = vsub.f32 %v3581_v48, %v3740_v23  ;;  %v1411_v29 = vmax.f32 %v1379_v58, 0.0 }
 0x251   : > { %v1439_v1 = vpack.c.bf16 %v1410_v19, %v1409_v18  ;;  %v1447_v2 = vpack.c.bf16 %v1426_v56, %v1425_v22  ;;  %v1395_v3 = vadd.f32 %v3790_v30, %v1357_v32  ;;  %v1396_v4 = vadd.f32 %v3790_v30, %v1358_v57 }
 0x252   : > { %v1343_v5 = vmul.f32 %v3773_v41, %v1305_v34  ;;  %v1290_v31 = vsub.f32 %v3585_v50, %v3740_v23  ;;  %v1275_v25 = vsub.f32 %v3559_v36, %v3740_v23  ;;  %v1276_v33 = vsub.f32 %v3563_v39, %v3740_v23 }
 0x253   : > { %v1412_v43 = vmax.f32 %v1380_v49, 0.0  ;;  %v1344_v48 = vmul.f32 %v3773_v41, %v1306_v51  ;;  %v1277_v7 = vsub.f32 %v3557_v35, %v3740_v23  ;;  %v1359_v8 = vmul.f32 %v3773_v41, %v1321_v61 }
 0x254   : > { %v1360_v45 = vmul.f32 %v3773_v41, %v1322_v62  ;;  %v1291_v50 = vsub.f32 %v3591_v53, %v3740_v23  ;;  %v1278_v36 = vsub.f32 %v3561_v37, %v3740_v23  ;;  %v1427_v39 = vmax.f32 %v1395_v3, 0.0 }
 0x255   : > { %v1428_v47 = vmax.f32 %v1396_v4, 0.0  ;;  %v1292_v38 = vsub.f32 %v3595_v55, %v3740_v23  ;;  %v1293_v35 = vsub.f32 %v3589_v52, %v3740_v23  ;;  %v1381_v44 = vadd.f32 %v3790_v30, %v1343_v5 }
 0x256   : > { %v1307_v53 = vmul.f32 %v3768_v6, %v1273_v59  ;;  %v1308_v37 = vmul.f32 %v3768_v6, %v1274_v63  ;;  %v1440_v27 = vpack.c.bf16 %v1412_v43, %v1411_v29  ;;  %v1382_v24 = vadd.f32 %v3790_v30, %v1344_v48 }
 0x257   : > { %1602 = vmatmul.mubr.bf16.gmra.mrb[8].mxu0 %v1439_v1  ;;  %1682 = vmatmul.mubr.bf16.gmra.mrb[8].mxu1 %v1447_v2  ;;  %v1311_v26 = vmul.f32 %v3768_v6, %v1277_v7  ;;  %v1294_v55 = vsub.f32 %v3593_v54, %v3740_v23  ;;  %v1397_v52 = vadd.f32 %v3790_v30, %v1359_v8  ;;  %v1413_v13 = vmax.f32 %v1381_v44, 0.0 }
 0x258   : > { %1611 = vmatprep.mubr.bf16.mxu0 %v3238_v60  ;;  %1691 = vmatprep.mubr.bf16.mxu1 %v3238_v60  ;;  %v1398_v40 = vadd.f32 %v3790_v30, %v1360_v45  ;;  %v1323_v9 = vmul.f32 %v3768_v6, %v1289_v0  ;;  %v1312_v28 = vmul.f32 %v3768_v6, %v1278_v36  ;;  %v1414_v15 = vmax.f32 %v1382_v24, 0.0 }
 0x259   : > { %v1448_v10 = vpack.c.bf16 %v1428_v47, %v1427_v39  ;;  %v1324_v11 = vmul.f32 %v3768_v6, %v1290_v31  ;;  %v1349_v46 = vmul.f32 %v3773_v41, %v1311_v26  ;;  %v1327_v12 = vmul.f32 %v3768_v6, %v1293_v35 }
 0x25a   : > { %v1345_v14 = vmul.f32 %v3773_v41, %v1307_v53  ;;  %v1346_v54 = vmul.f32 %v3773_v41, %v1308_v37  ;;  %v1350_v23 = vmul.f32 %v3773_v41, %v1312_v28  ;;  %v1328_v16 = vmul.f32 %v3768_v6, %v1294_v55 }
 0x25b   : > { %v1387_v42 = vadd.f32 %v3790_v30, %v1349_v46  ;;  %v1365_v17 = vmul.f32 %v3773_v41, %v1327_v12  ;;  %v1429_v18 = vmax.f32 %v1397_v52, 0.0  ;;  %v1430_v19 = vmax.f32 %v1398_v40, 0.0 }
 0x25c   : > { %v1361_v20 = vmul.f32 %v3773_v41, %v1323_v9  ;;  %v1388_v21 = vadd.f32 %v3790_v30, %v1350_v23  ;;  %v1362_v22 = vmul.f32 %v3773_v41, %v1324_v11  ;;  %v1366_v32 = vmul.f32 %v3773_v41, %v1328_v16 }
 0x25d   : > { %v1419_v56 = vmax.f32 %v1387_v42, 0.0  ;;  %v1403_v57 = vadd.f32 %v3790_v30, %v1365_v17  ;;  %v1383_v34 = vadd.f32 %v3790_v30, %v1345_v14  ;;  %v1384_v58 = vadd.f32 %v3790_v30, %v1346_v54 }
 0x25e   : > { %v1420_v49 = vmax.f32 %v1388_v21, 0.0  ;;  %v1441_v51 = vpack.c.bf16 %v1414_v15, %v1413_v13  ;;  %v1309_v59 = vmul.f32 %v3768_v6, %v1275_v25  ;;  %v1404_v61 = vadd.f32 %v3790_v30, %v1366_v32 }
 0x25f   : > { %1612 = vmatmul.mubr.bf16.gmra.mrb[12].mxu0 %v1440_v27  ;;  %1692 = vmatmul.mubr.bf16.gmra.mrb[12].mxu1 %v1448_v10  ;;  %v1435_v62 = vmax.f32 %v1403_v57, 0.0  ;;  %v1449_v63 = vpack.c.bf16 %v1430_v19, %v1429_v18  ;;  %v1399_v0 = vadd.f32 %v3790_v30, %v1361_v20  ;;  %v1310_v1 = vmul.f32 %v3768_v6, %v1276_v33 }
 0x260   : > { %1621 = vmatprep.mubr.bf16.mxu0 %v3238_v60  ;;  %1701 = vmatprep.mubr.bf16.mxu1 %v3238_v60  ;;  %v1444_v2 = vpack.c.bf16 %v1420_v49, %v1419_v56  ;;  %v1400_v3 = vadd.f32 %v3790_v30, %v1362_v22  ;;  %v1325_v4 = vmul.f32 %v3768_v6, %v1291_v50  ;;  %v1436_v31 = vmax.f32 %v1404_v61, 0.0 }
 0x261   : > { %v1326_v5 = vmul.f32 %v3768_v6, %v1292_v38  ;;  %v1415_v43 = vmax.f32 %v1383_v34, 0.0  ;;  %v1416_v48 = vmax.f32 %v1384_v58, 0.0  ;;  %v1431_v25 = vmax.f32 %v1399_v0, 0.0 }
 0x262   : > { %v1452_v29 = vpack.c.bf16 %v1436_v31, %v1435_v62  ;;  %v1347_v7 = vmul.f32 %v3773_v41, %v1309_v59  ;;  %v1432_v8 = vmax.f32 %v1400_v3, 0.0  ;;  %v1348_v45 = vmul.f32 %v3773_v41, %v1310_v1 }
 0x263   : > { %v1363_v33 = vmul.f32 %v3773_v41, %v1325_v4  ;;  %v1364_v36 = vmul.f32 %v3773_v41, %v1326_v5  ;;  %v1442_v6 = vpack.c.bf16 %v1416_v48, %v1415_v43  ;;  %v3239_v11 = vmov 1983009808  }
 0x264   : > { %v1385_v50 = vadd.f32 %v3790_v30, %v1347_v7  ;;  %v1450_v39 = vpack.c.bf16 %v1432_v8, %v1431_v25  ;;  %v1386_v47 = vadd.f32 %v3790_v30, %v1348_v45  ;;  %v2116_v46 = vunpack.c.l.s4 %v3239_v11 }
 0x265   : > { %v1401_v38 = vadd.f32 %v3790_v30, %v1363_v33  ;;  %v1402_v35 = vadd.f32 %v3790_v30, %v1364_v36  ;;  %v2118_v12 = vlaneseq }
 0x266   : > { %v1417_v44 = vmax.f32 %v1385_v50, 0.0  ;;  %v1418_v53 = vmax.f32 %v1386_v47, 0.0  ;;  %v2117_v58 = vunpack.c.0.s8 %v2116_v46 }
 0x267   : > { %1622 = vmatmul.mubr.bf16.gmra.mrb[16].mxu0 %v1441_v51  ;;  %1702 = vmatmul.mubr.bf16.gmra.mrb[16].mxu1 %v1449_v63  ;;  %v1433_v37 = vmax.f32 %v1401_v38, 0.0  ;;  %v1434_v41 = vmax.f32 %v1402_v35, 0.0  ;;  %v2119_v49 = vshrl.u32 %v2118_v12, 7 }
 0x268   : > { %1631 = vmatprep.mubr.bf16.mxu0 %v3238_v60  ;;  %1711 = vmatprep.mubr.bf16.mxu1 %v3238_v60  ;;  %v1443_v27 = vpack.c.bf16 %v1418_v53, %v1417_v44 }
 0x269   : > { %v1451_v24 = vpack.c.bf16 %v1434_v41, %v1433_v37  ;;  %v3962_v53 = vsub.s32 %v2117_v58, %v2119_v49 }
 0x26b   : > { %4587 = vst [vmem:[#allocation8_spill] sm:$0xff] %v3962_v53 }
 0x26f   : > { %1632 = vmatmul.mubr.bf16.gmra.mrb[20].mxu0 %v1442_v6  ;;  %1712 = vmatmul.mubr.bf16.gmra.mrb[20].mxu1 %v1450_v39 }
 0x270   : > { %1641 = vmatprep.mubr.bf16.mxu0 %v3238_v60  ;;  %1721 = vmatprep.mubr.bf16.mxu1 %v3238_v60 }
 0x277   : > { %1642 = vmatmul.mubr.bf16.gmra.mrb[24].mxu0 %v1443_v27  ;;  %1722 = vmatmul.mubr.bf16.gmra.mrb[24].mxu1 %v1451_v24 }
 0x278   : > { %1651 = vmatprep.mubr.bf16.mxu0 %v3238_v60  ;;  %1731 = vmatprep.mubr.bf16.mxu1 %v3238_v60 }
 0x27f   : > { %1652 = vmatmul.mubr.bf16.gmra.mrb[28].mxu0 %v1444_v2  ;;  %1732 = vmatmul.mubr.bf16.gmra.mrb[28].mxu1 %v1452_v29 }
 0x31a   : > { %v1583_v30 = vpop.f32.mrb[0].mxu0  ;;  %v3936_v26 = vpop.f32.mrb[0].mxu1 }
 0x31b   : > { %v1585_v55 = vpop.f32.mrb[1].mxu0  ;;  %v3938_v52 = vpop.f32.mrb[1].mxu1  ;;  %v1812_v40 = vmul.f32 %v1583_v30, %v1583_v30  ;;  %v3966_v37 = vmul.f32 %v3936_v26, %v3936_v26 }
 0x31c   : > { %v1813_v9 = vmul.f32 %v1585_v55, %v1585_v55  ;;  %v1587_v28 = vpop.f32.mrb[2].mxu0  ;;  %v3940_v10 = vpop.f32.mrb[2].mxu1  ;;  %v3970_v41 = vmul.f32 %v3938_v52, %v3938_v52 }
 0x31d   : > { %v1744_v13 = vadd.f32 %v1587_v28, %v1583_v30  ;;  %v1814_v14 = vmul.f32 %v1587_v28, %v1587_v28  ;;  %v1942_v54 = vmax.f32 %v1583_v30, %v1587_v28  ;;  %v2026_v60 = vmin.f32 %v1583_v30, %v1587_v28  ;;  %v1589_v23 = vpop.f32.mrb[3].mxu0  ;;  %v3942_v15 = vpop.f32.mrb[3].mxu1 }
 0x31e   : > { %v1775_v42 = vadd.f32 %v1589_v23, %v1585_v55  ;;  %v1815_v16 = vmul.f32 %v1589_v23, %v1589_v23  ;;  %v1963_v17 = vmax.f32 %v1585_v55, %v1589_v23  ;;  %v2047_v18 = vmin.f32 %v1585_v55, %v1589_v23 }
 0x31f   : > { %v1876_v19 = vadd.f32 %v1814_v14, %v1812_v40  ;;  %v1984_v20 = vmax.f32 %v3936_v26, %v3940_v10  ;;  %v2068_v21 = vmin.f32 %v3936_v26, %v3940_v10  ;;  %v2005_v56 = vmax.f32 %v3938_v52, %v3942_v15 }
 0x320   : > { %v1907_v22 = vadd.f32 %v1815_v16, %v1813_v9  ;;  %v2089_v32 = vmin.f32 %v3938_v52, %v3942_v15  ;;  %v3976_v30 = vmul.f32 %v3940_v10, %v3940_v10  ;;  %v3980_v55 = vmul.f32 %v3942_v15, %v3942_v15 }
 0x322   : > { %v1593_v57 = vpop.f32.mrb[4].mxu0  ;;  %v3952_v34 = vpop.f32.mrb[4].mxu1 }
 0x323   : > { %v1745_v51 = vadd.f32 %v1744_v13, %v1593_v57  ;;  %v1816_v59 = vmul.f32 %v1593_v57, %v1593_v57  ;;  %v1943_v61 = vmax.f32 %v1942_v54, %v1593_v57  ;;  %v2027_v62 = vmin.f32 %v2026_v60, %v1593_v57  ;;  %v1595_v63 = vpop.f32.mrb[5].mxu0  ;;  %v3954_v0 = vpop.f32.mrb[5].mxu1 }
 0x324   : > { %v1776_v1 = vadd.f32 %v1775_v42, %v1595_v63  ;;  %v1817_v2 = vmul.f32 %v1595_v63, %v1595_v63  ;;  %v1964_v3 = vmax.f32 %v1963_v17, %v1595_v63  ;;  %v2048_v4 = vmin.f32 %v2047_v18, %v1595_v63  ;;  %v1597_v5 = vpop.f32.mrb[6].mxu0  ;;  %v3956_v31 = vpop.f32.mrb[6].mxu1 }
 0x325   : > { %v1877_v29 = vadd.f32 %v1876_v19, %v1816_v59  ;;  %v1746_v43 = vadd.f32 %v1745_v51, %v1597_v5  ;;  %v1818_v48 = vmul.f32 %v1597_v5, %v1597_v5  ;;  %v1944_v25 = vmax.f32 %v1943_v61, %v1597_v5  ;;  %v1599_v7 = vpop.f32.mrb[7].mxu0  ;;  %v3958_v8 = vpop.f32.mrb[7].mxu1 }
 0x326   : > { %v1908_v45 = vadd.f32 %v1907_v22, %v1817_v2  ;;  %v2028_v33 = vmin.f32 %v2027_v62, %v1597_v5  ;;  %v1777_v36 = vadd.f32 %v1776_v1, %v1599_v7  ;;  %v1819_v6 = vmul.f32 %v1599_v7, %v1599_v7 }
 0x327   : > { %v1878_v50 = vadd.f32 %v1877_v29, %v1818_v48  ;;  %v1965_v39 = vmax.f32 %v1964_v3, %v1599_v7  ;;  %v2049_v47 = vmin.f32 %v2048_v4, %v1599_v7  ;;  %v1985_v35 = vmax.f32 %v1984_v20, %v3952_v34 }
 0x328   : > { %v1909_v38 = vadd.f32 %v1908_v45, %v1819_v6  ;;  %v2069_v44 = vmin.f32 %v2068_v21, %v3952_v34  ;;  %v2006_v27 = vmax.f32 %v2005_v56, %v3954_v0  ;;  %v2090_v24 = vmin.f32 %v2089_v32, %v3954_v0 }
 0x329   : > { %v1986_v9 = vmax.f32 %v1985_v35, %v3956_v31  ;;  %v3996_v2 = vmul.f32 %v3952_v34, %v3952_v34  ;;  %v4002_v29 = vmul.f32 %v3954_v0, %v3954_v0  ;;  %v4008_v7 = vmul.f32 %v3956_v31, %v3956_v31 }
 0x32a   : > { %v1603_v40 = vpop.f32.mrb[8].mxu0  ;;  %v2070_v28 = vmin.f32 %v2069_v44, %v3956_v31  ;;  %v3984_v11 = vpop.f32.mrb[8].mxu1  ;;  %v2007_v51 = vmax.f32 %v2006_v27, %v3958_v8  ;;  %v2091_v59 = vmin.f32 %v2090_v24, %v3958_v8  ;;  %v4012_v45 = vmul.f32 %v3958_v8, %v3958_v8 }
 0x32b   : > { %v1747_v46 = vadd.f32 %v1746_v43, %v1603_v40  ;;  %v1820_v12 = vmul.f32 %v1603_v40, %v1603_v40  ;;  %v1945_v13 = vmax.f32 %v1944_v25, %v1603_v40  ;;  %v2029_v14 = vmin.f32 %v2028_v33, %v1603_v40  ;;  %v1605_v54 = vpop.f32.mrb[9].mxu0  ;;  %v3986_v60 = vpop.f32.mrb[9].mxu1 }
 0x32c   : > { %v1778_v23 = vadd.f32 %v1777_v36, %v1605_v54  ;;  %v1821_v42 = vmul.f32 %v1605_v54, %v1605_v54  ;;  %v1966_v16 = vmax.f32 %v1965_v39, %v1605_v54  ;;  %v2050_v17 = vmin.f32 %v2049_v47, %v1605_v54  ;;  %v1607_v18 = vpop.f32.mrb[10].mxu0  ;;  %v3988_v19 = vpop.f32.mrb[10].mxu1 }
 0x32d   : > { %v1879_v20 = vadd.f32 %v1878_v50, %v1820_v12  ;;  %v1748_v21 = vadd.f32 %v1747_v46, %v1607_v18  ;;  %v1822_v22 = vmul.f32 %v1607_v18, %v1607_v18  ;;  %v1946_v56 = vmax.f32 %v1945_v13, %v1607_v18  ;;  %v1609_v32 = vpop.f32.mrb[11].mxu0  ;;  %v3990_v57 = vpop.f32.mrb[11].mxu1 }
 0x32e   : > { %v1910_v58 = vadd.f32 %v1909_v38, %v1821_v42  ;;  %v2030_v49 = vmin.f32 %v2029_v14, %v1607_v18  ;;  %v1779_v62 = vadd.f32 %v1778_v23, %v1609_v32  ;;  %v1823_v63 = vmul.f32 %v1609_v32, %v1609_v32 }
 0x32f   : > { %v1880_v61 = vadd.f32 %v1879_v20, %v1822_v22  ;;  %v1967_v1 = vmax.f32 %v1966_v16, %v1609_v32  ;;  %v2051_v3 = vmin.f32 %v2050_v17, %v1609_v32  ;;  %v1987_v4 = vmax.f32 %v1986_v9, %v3984_v11 }
 0x330   : > { %v2071_v5 = vmin.f32 %v2070_v28, %v3984_v11  ;;  %v1911_v43 = vadd.f32 %v1910_v58, %v1823_v63  ;;  %v2008_v48 = vmax.f32 %v2007_v51, %v3986_v60  ;;  %v2092_v25 = vmin.f32 %v2091_v59, %v3986_v60 }
 0x331   : > { %v1988_v33 = vmax.f32 %v1987_v4, %v3988_v19  ;;  %v4024_v24 = vmul.f32 %v3984_v11, %v3984_v11  ;;  %v4034_v17 = vmul.f32 %v3986_v60, %v3986_v60  ;;  %v4046_v4 = vmul.f32 %v3990_v57, %v3990_v57 }
 0x332   : > { %v2072_v36 = vmin.f32 %v2071_v5, %v3988_v19  ;;  %v1613_v6 = vpop.f32.mrb[12].mxu0  ;;  %v4016_v50 = vpop.f32.mrb[12].mxu1  ;;  %v2009_v39 = vmax.f32 %v2008_v48, %v3990_v57  ;;  %v2093_v47 = vmin.f32 %v2092_v25, %v3990_v57 }
 0x333   : > { %v1749_v38 = vadd.f32 %v1748_v21, %v1613_v6  ;;  %v1824_v35 = vmul.f32 %v1613_v6, %v1613_v6  ;;  %v1615_v44 = vpop.f32.mrb[13].mxu0  ;;  %v4020_v27 = vpop.f32.mrb[13].mxu1  ;;  %v1947_v40 = vmax.f32 %v1946_v56, %v1613_v6  ;;  %v2031_v9 = vmin.f32 %v2030_v49, %v1613_v6  ;;  %4589 = vst [vmem:[#allocation10_spill] sm:$0xff] %v4046_v4 }
 0x334   : > { %v1989_v28 = vmax.f32 %v1988_v33, %v4016_v50  ;;  %v1617_v46 = vpop.f32.mrb[14].mxu0  ;;  %v4027_v12 = vpop.f32.mrb[14].mxu1  ;;  %v2073_v14 = vmin.f32 %v2072_v36, %v4016_v50  ;;  %v1780_v54 = vadd.f32 %v1779_v62, %v1615_v44  ;;  %v1825_v23 = vmul.f32 %v1615_v44, %v1615_v44 }
 0x335   : > { %v1881_v13 = vadd.f32 %v1880_v61, %v1824_v35  ;;  %v1619_v42 = vpop.f32.mrb[15].mxu0  ;;  %v4030_v16 = vpop.f32.mrb[15].mxu1  ;;  %v1968_v18 = vmax.f32 %v1967_v1, %v1615_v44  ;;  %v2052_v20 = vmin.f32 %v2051_v3, %v1615_v44  ;;  %v2010_v21 = vmax.f32 %v2009_v39, %v4020_v27 }
 0x336   : > { %4588 = vst [vmem:[#allocation9_spill] sm:$0xff] %v4030_v16  ;;  %v1912_v22 = vadd.f32 %v1911_v43, %v1825_v23  ;;  %v2094_v56 = vmin.f32 %v2093_v47, %v4020_v27  ;;  %v1750_v32 = vadd.f32 %v1749_v38, %v1617_v46  ;;  %v1826_v58 = vmul.f32 %v1617_v46, %v1617_v46 }
 0x337   : > { %v4040_v49 = vmul.f32 %v3988_v19, %v3988_v19  ;;  %v1948_v51 = vmax.f32 %v1947_v40, %v1617_v46  ;;  %v2032_v59 = vmin.f32 %v2031_v9, %v1617_v46  ;;  %v1990_v61 = vmax.f32 %v1989_v28, %v4027_v12 }
 0x338   : > { %v1882_v62 = vadd.f32 %v1881_v13, %v1826_v58  ;;  %v2074_v63 = vmin.f32 %v2073_v14, %v4027_v12  ;;  %v1781_v1 = vadd.f32 %v1780_v54, %v1619_v42  ;;  %v1827_v3 = vmul.f32 %v1619_v42, %v1619_v42 }
 0x339   : > { %v1969_v5 = vmax.f32 %v1968_v18, %v1619_v42  ;;  %v2053_v43 = vmin.f32 %v2052_v20, %v1619_v42  ;;  %v2011_v48 = vmax.f32 %v2010_v21, %v4030_v16  ;;  %v2095_v6 = vmin.f32 %v2094_v56, %v4030_v16 }
 0x33a   : > { %v1623_v25 = vpop.f32.mrb[16].mxu0  ;;  %v4049_v33 = vpop.f32.mrb[16].mxu1  ;;  %v1913_v36 = vadd.f32 %v1912_v22, %v1827_v3  ;;  %v4056_v44 = vmul.f32 %v4016_v50, %v4016_v50  ;;  %v4066_v21 = vmul.f32 %v4020_v27, %v4020_v27 }
 0x33b   : > { %4590 = vst [vmem:[#allocation11_spill] sm:$0xff] %v4049_v33  ;;  %v1751_v39 = vadd.f32 %v1750_v32, %v1623_v25  ;;  %v1828_v47 = vmul.f32 %v1623_v25, %v1623_v25  ;;  %v1625_v38 = vpop.f32.mrb[17].mxu0  ;;  %v4052_v35 = vpop.f32.mrb[17].mxu1  ;;  %v1949_v40 = vmax.f32 %v1948_v51, %v1623_v25  ;;  %v2033_v9 = vmin.f32 %v2032_v59, %v1623_v25 }
 0x33c   : > { %4591 = vst [vmem:[#allocation12_spill] sm:$0xff] %v4052_v35  ;;  %v1991_v28 = vmax.f32 %v1990_v61, %v4049_v33  ;;  %v1627_v46 = vpop.f32.mrb[18].mxu0  ;;  %v4059_v13 = vpop.f32.mrb[18].mxu1  ;;  %v2075_v54 = vmin.f32 %v2074_v63, %v4049_v33  ;;  %v1782_v23 = vadd.f32 %v1781_v1, %v1625_v38  ;;  %v1829_v42 = vmul.f32 %v1625_v38, %v1625_v38 }
 0x33d   : > { %4592 = vst [vmem:[#allocation13_spill] sm:$0xff] %v4059_v13  ;;  %v1883_v14 = vadd.f32 %v1882_v62, %v1828_v47  ;;  %v1629_v18 = vpop.f32.mrb[19].mxu0  ;;  %v4062_v20 = vpop.f32.mrb[19].mxu1  ;;  %4594 = vst [vmem:[#allocation15_spill] sm:$0xff] %v4066_v21  ;;  %v1970_v22 = vmax.f32 %v1969_v5, %v1625_v38  ;;  %v2054_v56 = vmin.f32 %v2053_v43, %v1625_v38 }
 0x33e   : > { %4593 = vst [vmem:[#allocation14_spill] sm:$0xff] %v4062_v20  ;;  %v2012_v32 = vmax.f32 %v2011_v48, %v4052_v35  ;;  %v1914_v58 = vadd.f32 %v1913_v36, %v1829_v42  ;;  %v2096_v51 = vmin.f32 %v2095_v6, %v4052_v35  ;;  %v1752_v59 = vadd.f32 %v1751_v39, %v1627_v46 }
 0x33f   : > { %v1830_v61 = vmul.f32 %v1627_v46, %v1627_v46  ;;  %v4072_v62 = vmul.f32 %v4027_v12, %v4027_v12  ;;  %v1950_v63 = vmax.f32 %v1949_v40, %v1627_v46  ;;  %v2034_v1 = vmin.f32 %v2033_v9, %v1627_v46 }
 0x340   : > { %v1992_v3 = vmax.f32 %v1991_v28, %v4059_v13  ;;  %v2076_v47 = vmin.f32 %v2075_v54, %v4059_v13  ;;  %v1783_v5 = vadd.f32 %v1782_v23, %v1629_v18  ;;  %v1831_v43 = vmul.f32 %v1629_v18, %v1629_v18 }
 0x341   : > { %4595 = vst [vmem:[#allocation16_spill] sm:$0xff] %v4072_v62  ;;  %v1884_v25 = vadd.f32 %v1883_v14, %v1830_v61  ;;  %v4078_v48 = vmul.f32 %v4030_v16, %v4030_v16  ;;  %v1971_v36 = vmax.f32 %v1970_v22, %v1629_v18  ;;  %v2055_v6 = vmin.f32 %v2054_v56, %v1629_v18 }
 0x342   : > { %v2013_v39 = vmax.f32 %v2012_v32, %v4062_v20  ;;  %v1633_v38 = vpop.f32.mrb[20].mxu0  ;;  %v4081_v42 = vpop.f32.mrb[20].mxu1  ;;  %v1915_v40 = vadd.f32 %v1914_v58, %v1831_v43  ;;  %v2097_v9 = vmin.f32 %v2096_v51, %v4062_v20  ;;  %v4088_v23 = vmul.f32 %v4049_v33, %v4049_v33 }
 0x343   : > { %4596 = vst [vmem:[#allocation17_spill] sm:$0xff] %v4078_v48  ;;  %4597 = vst [vmem:[#allocation18_spill] sm:$0xff] %v4081_v42  ;;  %v1753_v28 = vadd.f32 %v1752_v59, %v1633_v38  ;;  %v1832_v46 = vmul.f32 %v1633_v38, %v1633_v38  ;;  %v1635_v14 = vpop.f32.mrb[21].mxu0  ;;  %v4084_v54 = vpop.f32.mrb[21].mxu1  ;;  %v1951_v61 = vmax.f32 %v1950_v63, %v1633_v38 }
 0x344   : > { %4598 = vst [vmem:[#allocation19_spill] sm:$0xff] %v4084_v54  ;;  %4599 = vst [vmem:[#allocation20_spill] sm:$0xff] %v4088_v23  ;;  %v2035_v22 = vmin.f32 %v2034_v1, %v1633_v38  ;;  %v1993_v18 = vmax.f32 %v1992_v3, %v4081_v42  ;;  %v1637_v56 = vpop.f32.mrb[22].mxu0  ;;  %v4091_v32 = vpop.f32.mrb[22].mxu1  ;;  %v2077_v58 = vmin.f32 %v2076_v47, %v4081_v42 }
 0x345   : > { %4600 = vst [vmem:[#allocation21_spill] sm:$0xff] %v4091_v32  ;;  %v1885_v53 = vadd.f32 %v1884_v25, %v1832_v46  ;;  %v1784_v51 = vadd.f32 %v1783_v5, %v1635_v14  ;;  %v1833_v59 = vmul.f32 %v1635_v14, %v1635_v14  ;;  %v1639_v43 = vpop.f32.mrb[23].mxu0  ;;  %v4094_v48 = vpop.f32.mrb[23].mxu1  ;;  %v4098_v21 = vmul.f32 %v4052_v35, %v4052_v35 }
 0x346   : > { %4601 = vst [vmem:[#allocation22_spill] sm:$0xff] %v4094_v48  ;;  %v1972_v23 = vmax.f32 %v1971_v36, %v1635_v14  ;;  %v2056_v63 = vmin.f32 %v2055_v6, %v1635_v14  ;;  %v2014_v1 = vmax.f32 %v2013_v39, %v4084_v54  ;;  %v2098_v38 = vmin.f32 %v2097_v9, %v4084_v54 }
 0x347   : > { %4602 = vst [vmem:[#allocation23_spill] sm:$0xff] %v4098_v21  ;;  %v1916_v3 = vadd.f32 %v1915_v40, %v1833_v59  ;;  %v1754_v16 = vadd.f32 %v1753_v28, %v1637_v56  ;;  %v1834_v25 = vmul.f32 %v1637_v56, %v1637_v56  ;;  %v4104_v47 = vmul.f32 %v4059_v13, %v4059_v13 }
 0x348   : > { %v1952_v5 = vmax.f32 %v1951_v61, %v1637_v56  ;;  %v2036_v46 = vmin.f32 %v2035_v22, %v1637_v56  ;;  %v1994_v4 = vmax.f32 %v1993_v18, %v4091_v32  ;;  %v2078_v21 = vmin.f32 %v2077_v58, %v4091_v32 }
 0x349   : > { %4603 = vst [vmem:[#allocation24_spill] sm:$0xff] %v4104_v47  ;;  %v1886_v62 = vadd.f32 %v1885_v53, %v1834_v25  ;;  %v1785_v36 = vadd.f32 %v1784_v51, %v1639_v43  ;;  %v1835_v6 = vmul.f32 %v1639_v43, %v1639_v43  ;;  %v4110_v39 = vmul.f32 %v4062_v20, %v4062_v20 }
 0x34a   : > { %v1973_v40 = vmax.f32 %v1972_v23, %v1639_v43  ;;  %v2057_v9 = vmin.f32 %v2056_v63, %v1639_v43  ;;  %v2015_v28 = vmax.f32 %v2014_v1, %v4094_v48  ;;  %v1643_v14 = vpop.f32.mrb[24].mxu0  ;;  %v4113_v59 = vpop.f32.mrb[24].mxu1  ;;  %v2099_v22 = vmin.f32 %v2098_v38, %v4094_v48 }
 0x34b   : > { %4604 = vst [vmem:[#allocation25_spill] sm:$0xff] %v4110_v39  ;;  %4605 = vst [vmem:[#allocation26_spill] sm:$0xff] %v4113_v59  ;;  %v1917_v61 = vadd.f32 %v1916_v3, %v1835_v6  ;;  %v1755_v18 = vadd.f32 %v1754_v16, %v1643_v14  ;;  %v1836_v53 = vmul.f32 %v1643_v14, %v1643_v14  ;;  %v1645_v56 = vpop.f32.mrb[25].mxu0  ;;  %v4116_v58 = vpop.f32.mrb[25].mxu1 }
 0x34c   : > { %4606 = vst [vmem:[#allocation27_spill] sm:$0xff] %v4116_v58  ;;  %v4120_v51 = vmul.f32 %v4081_v42, %v4081_v42  ;;  %v1953_v25 = vmax.f32 %v1952_v5, %v1643_v14  ;;  %v2037_v23 = vmin.f32 %v2036_v46, %v1643_v14  ;;  %v1995_v43 = vmax.f32 %v1994_v4, %v4113_v59  ;;  %v1647_v63 = vpop.f32.mrb[26].mxu0  ;;  %v4123_v1 = vpop.f32.mrb[26].mxu1 }
 0x34d   : > { %4608 = vst [vmem:[#allocation29_spill] sm:$0xff] %v4123_v1  ;;  %v1887_v39 = vadd.f32 %v1886_v62, %v1836_v53  ;;  %v2079_v3 = vmin.f32 %v2078_v21, %v4113_v59  ;;  %v1786_v38 = vadd.f32 %v1785_v36, %v1645_v56  ;;  %v1837_v16 = vmul.f32 %v1645_v56, %v1645_v56  ;;  %v4126_v6 = vpop.f32.mrb[27].mxu0  ;;  %v4128_v20 = vpop.f32.mrb[27].mxu1 }
 0x34e   : > { %4607 = vst [vmem:[#allocation28_spill] sm:$0xff] %v4120_v51  ;;  %v4132_v47 = vmul.f32 %v4084_v54, %v4084_v54  ;;  %v4134_v5 = vmax.f32 %v1973_v40, %v1645_v56  ;;  %v4136_v46 = vmin.f32 %v2057_v9, %v1645_v56  ;;  %v4139_v4 = vmax.f32 %v2015_v28, %v4116_v58 }
 0x34f   : > { %v1918_v62 = vadd.f32 %v1917_v61, %v1837_v16  ;;  %v4142_v21 = vmin.f32 %v2099_v22, %v4116_v58  ;;  %v1756_v36 = vadd.f32 %v1755_v18, %v1647_v63  ;;  %v1838_v14 = vmul.f32 %v1647_v63, %v1647_v63 }
 0x350   : > { %4609 = vst [vmem:[#allocation30_spill] sm:$0xff] %v4132_v47  ;;  %v4146_v53 = vmul.f32 %v4091_v32, %v4091_v32  ;;  %v1954_v51 = vmax.f32 %v1953_v25, %v1647_v63  ;;  %v2038_v54 = vmin.f32 %v2037_v23, %v1647_v63  ;;  %v1996_v40 = vmax.f32 %v1995_v43, %v4123_v1 }
 0x351   : > { %4610 = vst [vmem:[#allocation31_spill] sm:$0xff] %v4142_v21  ;;  %v1888_v47 = vadd.f32 %v1887_v39, %v1838_v14  ;;  %v2080_v9 = vmin.f32 %v2079_v3, %v4123_v1  ;;  %v1787_v28 = vadd.f32 %v1786_v38, %v4126_v6  ;;  %v1839_v61 = vmul.f32 %v4126_v6, %v4126_v6 }
 0x352   : > { %4611 = vst [vmem:[#allocation32_spill] sm:$0xff] %v4146_v53  ;;  %v4155_v22 = vmul.f32 %v4094_v48, %v4094_v48  ;;  %v1653_v25 = vpop.f32.mrb[28].mxu0  ;;  %v4163_v23 = vpop.f32.mrb[28].mxu1  ;;  %v4173_v18 = vmul.f32 %v4113_v59, %v4113_v59 }
 0x353   : > { %v1919_v43 = vadd.f32 %v1918_v62, %v1839_v61  ;;  %v1757_v3 = vadd.f32 %v1756_v36, %v1653_v25  ;;  %v1840_v38 = vmul.f32 %v1653_v25, %v1653_v25  ;;  %v4167_v16 = vpop.f32.mrb[29].mxu0  ;;  %v4169_v14 = vpop.f32.mrb[29].mxu1  ;;  %v1955_v56 = vmax.f32 %v1954_v51, %v1653_v25 }
 0x354   : > { %4612 = vst [vmem:[#allocation33_spill] sm:$0xff] %v4155_v22  ;;  %4613 = vst [vmem:[#allocation34_spill] sm:$0xff] %v4173_v18  ;;  %v2039_v22 = vmin.f32 %v2038_v54, %v1653_v25  ;;  %v1997_v39 = vmax.f32 %v1996_v40, %v4163_v23  ;;  %v1657_v48 = vpop.f32.mrb[30].mxu0  ;;  %v4176_v53 = vpop.f32.mrb[30].mxu1  ;;  %v4180_v62 = vmul.f32 %v4116_v58, %v4116_v58 }
 0x355   : > { %4614 = vst [vmem:[#allocation35_spill] sm:$0xff] %v4176_v53  ;;  %v4184_v36 = vmul.f32 %v4123_v1, %v4123_v1  ;;  %v1889_v61 = vadd.f32 %v1888_v47, %v1840_v38  ;;  %v2081_v63 = vmin.f32 %v2080_v9, %v4163_v23  ;;  %v4187_v59 = vpop.f32.mrb[31].mxu0  ;;  %v4189_v51 = vpop.f32.mrb[31].mxu1  ;;  %v1758_v54 = vadd.f32 %v1757_v3, %v1657_v48 }
 0x356   : > { %4615 = vst [vmem:[#allocation36_spill] sm:$0xff] %v4180_v62  ;;  %4617 = vst [vmem:[#allocation38_spill] sm:$0xff] %v4189_v51  ;;  %v1842_v40 = vmul.f32 %v1657_v48, %v1657_v48  ;;  %v1956_v25 = vmax.f32 %v1955_v56, %v1657_v48  ;;  %v2040_v18 = vmin.f32 %v2039_v22, %v1657_v48 }
 0x357   : > { %4616 = vst [vmem:[#allocation37_spill] sm:$0xff] %v4184_v36  ;;  %v1841_v32 = vmul.f32 %v4167_v16, %v4167_v16  ;;  %v1998_v62 = vmax.f32 %v1997_v39, %v4176_v53  ;;  %v2082_v58 = vmin.f32 %v2081_v63, %v4176_v53  ;;  %v1788_v36 = vadd.f32 %v1787_v28, %v4167_v16 }
 0x358   : > { %v1759_v47 = vadd.f32 %v1758_v54, %v3936_v26  ;;  %v1890_v9 = vadd.f32 %v1889_v61, %v1842_v40  ;;  %v1957_v38 = vrot.slane %v1956_v25, 4  ;;  %v2041_v1 = vrot.slane %v2040_v18, 4 }
 0x359   : > { %v1999_v42 = vrot.slane %v1998_v62, 4  ;;  %v2083_v35 = vrot.slane %v2082_v58, 4  ;;  %v1789_v3 = vadd.f32 %v1788_v36, %v4187_v59  ;;  %v1843_v48 = vmul.f32 %v4187_v59, %v4187_v59 }
 0x35a   : > { %v1760_v22 = vadd.f32 %v1759_v47, %v3940_v10  ;;  %v1891_v56 = vadd.f32 %v1890_v9, %v3966_v37  ;;  %v1958_v39 = vmax.f32 %v1956_v25, %v1957_v38  ;;  %v2042_v63 = vmin.f32 %v2040_v18, %v2041_v1 }
 0x35b   : > { %v2000_v53 = vmax.f32 %v1998_v62, %v1999_v42  ;;  %v2084_v28 = vmin.f32 %v2082_v58, %v2083_v35  ;;  %v1790_v26 = vadd.f32 %v1789_v3, %v3938_v52  ;;  %v1920_v61 = vadd.f32 %v1919_v43, %v1841_v32 }
 0x35c   : > { %v1761_v54 = vadd.f32 %v1760_v22, %v3952_v34  ;;  %v1892_v40 = vadd.f32 %v1891_v56, %v3976_v30  ;;  %v1959_v13 = vrot.slane %v1958_v39, 2  ;;  %v2043_v36 = vrot.slane %v2042_v63, 2  ;;  %v4624_v56 = vld [vmem:[#allocation11_spill] sm:$0xff] }
 0x35d   : > { %v2001_v33 = vrot.slane %v2000_v53, 2  ;;  %v2085_v21 = vrot.slane %v2084_v28, 2  ;;  %v1791_v51 = vadd.f32 %v1790_v26, %v3942_v15  ;;  %v1921_v10 = vadd.f32 %v1920_v61, %v1843_v48  ;;  %v4626_v26 = vld [vmem:[#allocation10_spill] sm:$0xff] }
 0x35e   : > { %v1762_v37 = vadd.f32 %v1761_v54, %v3956_v31  ;;  %v1893_v1 = vadd.f32 %v1892_v40, %v3996_v2  ;;  %v1960_v42 = vmax.f32 %v1958_v39, %v1959_v13  ;;  %v2044_v35 = vmin.f32 %v2042_v63, %v2043_v36  ;;  %v4628_v40 = vld [vmem:[#allocation13_spill] sm:$0xff] }
 0x35f   : > { %v2002_v58 = vmax.f32 %v2000_v53, %v2001_v33  ;;  %v2086_v52 = vmin.f32 %v2084_v28, %v2085_v21  ;;  %v1792_v32 = vadd.f32 %v1791_v51, %v3954_v0  ;;  %v1922_v34 = vadd.f32 %v1921_v10, %v3970_v41  ;;  %v4629_v10 = vld [vmem:[#allocation20_spill] sm:$0xff] }
 0x360   : > { %v1763_v30 = vadd.f32 %v1762_v37, %v3984_v11  ;;  %v1894_v18 = vadd.f32 %v1893_v1, %v4008_v7  ;;  %v1961_v43 = vrot.slane %v1960_v42, 1  ;;  %v2045_v62 = vrot.slane %v2044_v35, 1 }
 0x361   : > { %v2003_v15 = vrot.slane %v2002_v58, 1  ;;  %v2087_v25 = vrot.slane %v2086_v52, 1  ;;  %v1793_v31 = vadd.f32 %v1792_v32, %v3958_v8  ;;  %v1923_v2 = vadd.f32 %v1922_v34, %v3980_v55 }
 0x362   : > { %v4216_v33 = vmul.f32 %v4163_v23, %v4163_v23  ;;  %v1764_v0 = vadd.f32 %v1763_v30, %v3988_v19  ;;  %v1895_v41 = vadd.f32 %v1894_v18, %v4024_v24  ;;  %v4220_v13 = vmax.f32 %v1960_v42, %v1961_v43  ;;  %v4632_v18 = vld [vmem:[#allocation18_spill] sm:$0xff] }
 0x363   : > { %v4222_v11 = vmin.f32 %v2044_v35, %v2045_v62  ;;  %v4224_v7 = vmax.f32 %v2002_v58, %v2003_v15  ;;  %v1794_v21 = vadd.f32 %v1793_v31, %v3986_v60  ;;  %v1924_v8 = vadd.f32 %v1923_v2, %v4002_v29  ;;  %v4630_v35 = vld [vmem:[#allocation15_spill] sm:$0xff]  ;;  %v4633_v62 = vld [vmem:[#allocation24_spill] sm:$0xff]  ;;  %v4634_v2 = vld [vmem:[#allocation14_spill] sm:$0xff] }
 0x364   : > { %v1765_v55 = vadd.f32 %v1764_v0, %v4016_v50  ;;  %v1896_v53 = vadd.f32 %v1895_v41, %v4040_v49  ;;  %v4618_v19 = vmax.f32 %v4134_v5, %v4126_v6  ;;  %v4619_v24 = vmin.f32 %v4136_v46, %v4126_v6  ;;  %v4635_v41 = vld [vmem:[#allocation17_spill] sm:$0xff] }
 0x365   : > { %v4238_v9 = vmin.f32 %v2086_v52, %v2087_v25  ;;  %v1795_v60 = vadd.f32 %v1794_v21, %v3990_v57  ;;  %v1925_v29 = vadd.f32 %v1924_v8, %v4012_v45  ;;  %v4620_v50 = vmax.f32 %v4139_v4, %v4128_v20  ;;  %v4621_v57 = vld [vmem:[#allocation38_spill] sm:$0xff]  ;;  %v4622_v45 = vld [vmem:[#allocation31_spill] sm:$0xff]  ;;  %v4631_v52 = vld [vmem:[#allocation12_spill] sm:$0xff] }
 0x366   : > { %v1976_v51 = vmax.f32 %v4618_v19, %v4167_v16  ;;  %v2060_v47 = vmin.f32 %v4619_v24, %v4167_v16  ;;  %v1897_v38 = vadd.f32 %v1896_v53, %v4056_v44  ;;  %v1766_v5 = vadd.f32 %v1765_v55, %v4027_v12  ;;  %v4625_v44 = vld [vmem:[#allocation16_spill] sm:$0xff]  ;;  %v4636_v53 = vld [vmem:[#allocation21_spill] sm:$0xff] }
 0x367   : > { %v2018_v49 = vmax.f32 %v4620_v50, %v4169_v14  ;;  %v1796_v46 = vadd.f32 %v1795_v60, %v4020_v27  ;;  %v1926_v16 = vadd.f32 %v1925_v29, %v4034_v17  ;;  %v4623_v22 = vmin.f32 %v4622_v45, %v4128_v20  ;;  %v4638_v29 = vld [vmem:[#allocation19_spill] sm:$0xff] }
 0x368   : > { %v1977_v3 = vmax.f32 %v1976_v51, %v4187_v59  ;;  %v2061_v6 = vmin.f32 %v2060_v47, %v4187_v59  ;;  %v1767_v39 = vadd.f32 %v1766_v5, %v4624_v56  ;;  %v1898_v63 = vadd.f32 %v1897_v38, %v4625_v44  ;;  %v4627_v59 = vld [vmem:[#allocation9_spill] sm:$0xff]  ;;  %v4637_v51 = vld [vmem:[#allocation28_spill] sm:$0xff] }
 0x369   : > { %v2019_v48 = vmax.f32 %v2018_v49, %v4621_v57  ;;  %v2102_v4 = vmin.f32 %v4623_v22, %v4169_v14  ;;  %v1927_v61 = vadd.f32 %v1926_v16, %v4626_v26  ;;  %v1797_v54 = vadd.f32 %v1796_v46, %v4627_v59  ;;  %v4639_v49 = vld [vmem:[#allocation23_spill] sm:$0xff]  ;;  %v4641_v16 = vld [vmem:[#allocation32_spill] sm:$0xff] }
 0x36a   : > { %v1978_v12 = vrot.slane %v1977_v3, 4  ;;  %v2062_v28 = vrot.slane %v2061_v6, 4  ;;  %v1768_v36 = vadd.f32 %v1767_v39, %v4628_v40  ;;  %v1899_v37 = vadd.f32 %v1898_v63, %v4629_v10  ;;  %v4643_v39 = vld [vmem:[#allocation25_spill] sm:$0xff] }
 0x36b   : > { %v2020_v27 = vrot.slane %v2019_v48, 4  ;;  %v2103_v17 = vmin.f32 %v2102_v4, %v4621_v57  ;;  %v1928_v58 = vadd.f32 %v1927_v61, %v4630_v35  ;;  %v1798_v32 = vadd.f32 %v1797_v54, %v4631_v52  ;;  %v4642_v4 = vld [vmem:[#allocation22_spill] sm:$0xff]  ;;  %v4648_v35 = vld [vmem:[#allocation37_spill] sm:$0xff] }
 0x36c   : > { %v1979_v1 = vmax.f32 %v1977_v3, %v1978_v12  ;;  %v2063_v42 = vmin.f32 %v2061_v6, %v2062_v28  ;;  %v1769_v43 = vadd.f32 %v1768_v36, %v4632_v18  ;;  %v1900_v15 = vadd.f32 %v1899_v37, %v4633_v62  ;;  %v4640_v6 = vld [vmem:[#allocation26_spill] sm:$0xff]  ;;  %v4644_v28 = vld [vmem:[#allocation29_spill] sm:$0xff] }
 0x36d   : > { %v2021_v34 = vmax.f32 %v2019_v48, %v2020_v27  ;;  %v2104_v30 = vrot.slane %v2103_v17, 4  ;;  %v1799_v0 = vadd.f32 %v1798_v32, %v4634_v2  ;;  %v1929_v21 = vadd.f32 %v1928_v58, %v4635_v41  ;;  %v4645_v61 = vld [vmem:[#allocation34_spill] sm:$0xff]  ;;  %v4649_v18 = vld [vmem:[#allocation33_spill] sm:$0xff]  ;;  %v4651_v41 = vld [vmem:[#allocation36_spill] sm:$0xff] }
 0x36e   : > { %v1980_v25 = vrot.slane %v1979_v1, 2  ;;  %v2064_v31 = vrot.slane %v2063_v42, 2  ;;  %v1770_v19 = vadd.f32 %v1769_v43, %v4636_v53  ;;  %v1901_v24 = vadd.f32 %v1900_v15, %v4637_v51  ;;  %v4647_v36 = vld [vmem:[#allocation30_spill] sm:$0xff] }
 0x36f   : > { %v2022_v8 = vrot.slane %v2021_v34, 2  ;;  %v2105_v55 = vmin.f32 %v2103_v17, %v2104_v30  ;;  %v1800_v50 = vadd.f32 %v1799_v0, %v4638_v29  ;;  %v1930_v38 = vadd.f32 %v1929_v21, %v4639_v49  ;;  %v4646_v17 = vld [vmem:[#allocation27_spill] sm:$0xff]  ;;  %v1810_v0 = vld [vmem:[#allocation5] sm:$0xff] }
 0x370   : > { %v1981_v47 = vmax.f32 %v1979_v1, %v1980_v25  ;;  %v2065_v60 = vmin.f32 %v2063_v42, %v2064_v31  ;;  %v1771_v46 = vadd.f32 %v1770_v19, %v4640_v6  ;;  %v1902_v48 = vadd.f32 %v1901_v24, %v4641_v16  ;;  %v4650_v31 = vld [vmem:[#allocation35_spill] sm:$0xff]  ;;  %v1743_v24 = vld [vmem:[#allocation4 + $0x8] sm:$0xff]  ;;  %v1811_v6 = vld [vmem:[#allocation5 + $0x8] sm:$0xff] }
 0x371   : > { %v2023_v5 = vmax.f32 %v2021_v34, %v2022_v8  ;;  %v2106_v3 = vrot.slane %v2105_v55, 2  ;;  %v1801_v56 = vadd.f32 %v1800_v50, %v4642_v4  ;;  %v1931_v44 = vadd.f32 %v1930_v38, %v4643_v39  ;;  %v1742_v34 = vld [vmem:[#allocation4] sm:$0xff]  ;;  %v4652_v8 = vld [vmem:[#allocation8_spill] sm:$0xff] }
 0x372   : > { %v1982_v45 = vrot.slane %v1981_v47, 1  ;;  %v2066_v22 = vrot.slane %v2065_v60, 1  ;;  %v1772_v26 = vadd.f32 %v1771_v46, %v4644_v28  ;;  %v1903_v59 = vadd.f32 %v1902_v48, %v4645_v61 }
 0x373   : > { %v2024_v63 = vrot.slane %v2023_v5, 1  ;;  %v2107_v12 = vmin.f32 %v2105_v55, %v2106_v3  ;;  %v1802_v40 = vadd.f32 %v1801_v56, %v4646_v17  ;;  %v1932_v10 = vadd.f32 %v1931_v44, %v4647_v36 }
 0x374   : > { %v1983_v54 = vmax.f32 %v1981_v47, %v1982_v45  ;;  %v2067_v27 = vmin.f32 %v2065_v60, %v2066_v22  ;;  %v1773_v42 = vadd.f32 %v1772_v26, %v4163_v23  ;;  %v1904_v58 = vadd.f32 %v1903_v59, %v4648_v35 }
 0x375   : > { %v2025_v37 = vmax.f32 %v2023_v5, %v2024_v63  ;;  %v2108_v1 = vrot.slane %v2107_v12, 1  ;;  %v1803_v30 = vadd.f32 %v1802_v40, %v4128_v20  ;;  %v1933_v43 = vadd.f32 %v1932_v10, %v4649_v18 }
 0x376   : > { %v2114_v52 = vcombine.low %v4220_v13, %v1983_v54  ;;  %v2149_v32 = vcombine.low %v4222_v11, %v2067_v27  ;;  %v1871_v25 = vmul.f32 %v4128_v20, %v4128_v20  ;;  %v1774_v2 = vadd.f32 %v1773_v42, %v4650_v31 }
 0x377   : > { %v2109_v62 = vmin.f32 %v2107_v12, %v2108_v1  ;;  %v2122_v15 = vcombine.low %v4224_v7, %v2025_v37  ;;  %v1874_v23 = vmul.f32 %v4650_v31, %v4650_v31  ;;  %v1905_v13 = vadd.f32 %v1904_v58, %v4216_v33 }
 0x378   : > { %v1804_v11 = vadd.f32 %v1803_v30, %v4169_v14  ;;  %v1934_v21 = vadd.f32 %v1933_v43, %v4651_v41  ;;  %v1873_v7 = vmul.f32 %v4169_v14, %v4169_v14  ;;  %v1806_v20 = vadd.f32 %v1774_v2, %v1742_v34 }
 0x379   : > { %v2129_v55 = vrot.slane %v2122_v15, %v4652_v8  ;;  %v2157_v53 = vcombine.low %v4238_v9, %v2109_v62  ;;  %v1906_v19 = vadd.f32 %v1905_v13, %v1874_v23  ;;  %v2121_v51 = vrot.slane %v2114_v52, %v4652_v8 }
 0x37a   : > { %v1805_v47 = vadd.f32 %v1804_v11, %v4621_v57  ;;  %v1935_v33 = vadd.f32 %v1934_v21, %v1871_v25  ;;  %1808 = vst [vmem:[#allocation4] sm:$0xff] %v1806_v20  ;;  %v2156_v49 = vrot.slane %v2149_v32, %v4652_v8  ;;  %v1875_v9 = vmul.f32 %v4621_v57, %v4621_v57 }
 0x37b   : > { %v2134_v60 = vrot.slane %v2129_v55, 7  ;;  %v2164_v29 = vrot.slane %v2157_v53, %v4652_v8  ;;  %v1938_v50 = vadd.f32 %v1906_v19, %v1810_v0 }
 0x37c   : > { %v1807_v14 = vadd.f32 %v1805_v47, %v1743_v24  ;;  %v1936_v38 = vadd.f32 %v1935_v33, %v1873_v7 }
 0x37d   : > { %v2136_v5 = vsel %vm2135_vm3, %v2134_v60, %v2121_v51  ;;  %v2167_v3 = vrot.slane %v2164_v29, 7  ;;  %1940 = vst [vmem:[#allocation5] sm:$0xff] %v1938_v50 }
 0x37e   : > { %v2138_v46 = vsel %vm2137_vm4, %v2134_v60, %v2136_v5  ;;  %1809 = vst [vmem:[#allocation4 + $0x8] sm:$0xff] %v1807_v14  ;;  %v1937_v16 = vadd.f32 %v1936_v38, %v1875_v9 }
 0x37f   : > { %v2140_v48 = vsel %vm2139_vm5, %v2134_v60, %v2138_v46  ;;  %v2168_v45 = vsel %vm2135_vm3, %v2167_v3, %v2156_v49 }
 0x380   : > { %v2142_v22 = vsel %vm2141_vm6, %v2134_v60, %v2140_v48  ;;  %v2169_v57 = vsel %vm2137_vm4, %v2167_v3, %v2168_v45  ;;  %v1939_v4 = vadd.f32 %v1937_v16, %v1811_v6 }
 0x381   : > { %2144 = vst [vmem:[#allocation6] sm:$0xf] %v2142_v22  ;;  %v2170_v56 = vsel %vm2139_vm5, %v2167_v3, %v2169_v57 }
 0x382   : > { %v2171_v39 = vsel %vm2141_vm6, %v2167_v3, %v2170_v56  ;;  %1941 = vst [vmem:[#allocation5 + $0x8] sm:$0xff] %v1939_v4 }
 0x383   : > { %2173 = vst [vmem:[#allocation7] sm:$0xf] %v2171_v39 }
 0x384 PF: > { %2177 = sbr.rel (!%p1239_p6) target bundleno = 1437 (0x59d), region = 92  ;;  %v3157_v44 = vld [vmem:[%s4564_s9 + $0x4] ss:$8 sps:$4 sm:$0xff] (%p1239_p6)   ;;  %v3159_v63 = vld [vmem:[%s4564_s9] ss:$8 sps:$4 sm:$0xff] (%p1239_p6)   ;;  %v2178_v52 = vld [vmem:[#allocation4] sm:$0xff] (%p1239_p6)  ;;  %v2224_v2 = vlaneseq (%p1239_p6) }
 0x385   : > { %2484 = vmatprep.subr.bf16.mxu0 (%p1239_p6), %v3157_v44  ;;  %v3160_v12 = vld [vmem:[%s4564_s9 + $0x14] ss:$8 sps:$4 sm:$0xff] (%p1239_p6)   ;;  %v3162_v28 = vld [vmem:[%s4564_s9 + $0x10] ss:$8 sps:$4 sm:$0xff] (%p1239_p6)   ;;  %v3163_v26 = vld [vmem:[%s4564_s9 + $0x24] ss:$8 sps:$4 sm:$0xff] (%p1239_p6)  }
 0x386   : > { %2485 = vmatpush1.bf16.msra.mxu0 (%p1239_p6), %v3159_v63  ;;  %v3165_v61 = vld [vmem:[%s4564_s9 + $0x20] ss:$8 sps:$4 sm:$0xff] (%p1239_p6)   ;;  %v3166_v59 = vld [vmem:[%s4564_s9 + $0x34] ss:$8 sps:$4 sm:$0xff] (%p1239_p6)   ;;  %v3168_v54 = vld [vmem:[%s4564_s9 + $0x30] ss:$8 sps:$4 sm:$0xff] (%p1239_p6)  }
 0x387   : > { %2486 = vmatprep.subr.bf16.mxu0 (%p1239_p6), %v3160_v12  ;;  %v3169_v27 = vld [vmem:[%s4564_s9 + $0x44] ss:$8 sps:$4 sm:$0xff] (%p1239_p6)   ;;  %v3171_v17 = vld [vmem:[%s4564_s9 + $0x40] ss:$8 sps:$4 sm:$0xff] (%p1239_p6)   ;;  %v3172_v40 = vld [vmem:[%s4564_s9 + $0x54] ss:$8 sps:$4 sm:$0xff] (%p1239_p6)  }
 0x388   : > { %v3174_v36 = vld [vmem:[%s4564_s9 + $0x50] ss:$8 sps:$4 sm:$0xff] (%p1239_p6)   ;;  %v3175_v10 = vld [vmem:[%s4564_s9 + $0x64] ss:$8 sps:$4 sm:$0xff] (%p1239_p6)   ;;  %v3177_v58 = vld [vmem:[%s4564_s9 + $0x60] ss:$8 sps:$4 sm:$0xff] (%p1239_p6)  }
 0x389   : > { %v2179_v37 = vld [vmem:[#allocation4 + $0x8] sm:$0xff] (%p1239_p6)  ;;  %v2195_v1 = vld [vmem:[#allocation5 + $0x8] sm:$0xff] (%p1239_p6)  ;;  %v2194_v18 = vld [vmem:[#allocation5] sm:$0xff] (%p1239_p6)  ;;  %v2180_v43 = vrot.slane (%p1239_p6), %v2178_v52, 4  ;;  %v2225_v19 = vshrl.u32 (%p1239_p6), %v2224_v2, 7  ;;  %v3240_v46 = vmov (%p1239_p6), 0  }
 0x38a   : > { %2487 = vmatpush1.bf16.msra.mxu0 (%p1239_p6), %v3162_v28  ;;  %v2186_v42 = vrot.slane (%p1239_p6), %v2179_v37, 4  ;;  %v2202_v35 = vrot.slane (%p1239_p6), %v2195_v1, 4  ;;  %v3178_v32 = vld [vmem:[%s4564_s9 + $0x74] ss:$8 sps:$4 sm:$0xff] (%p1239_p6)   ;;  %v2196_v25 = vrot.slane (%p1239_p6), %v2194_v18, 4  ;;  %vm2525_vm10 = vcmask (%p1239_p6), 1041408  }
 0x38b   : > { %2488 = vmatprep.subr.bf16.mxu0 %v3163_v26  ;;  %v3180_v31 = vld [vmem:[%s4564_s9 + $0x70] ss:$8 sps:$4 sm:$0xff]   ;;  %v2181_v23 = vadd.f32 %v2180_v43, %v2178_v52  ;;  %v3181_v13 = vld [vmem:[%s4564_s9 + $0x84] ss:$8 sps:$4 sm:$0xff]   ;;  %v4371_v53 = vld [vmem:[%s4562_s7] sm:$0x3] }
 0x38c   : > { %v2187_v34 = vadd.f32 %v2186_v42, %v2179_v37  ;;  %v2203_v30 = vadd.f32 %v2202_v35, %v2195_v1  ;;  %v2197_v41 = vadd.f32 %v2196_v25, %v2194_v18  ;;  %v3183_v20 = vld [vmem:[%s4564_s9 + $0x80] ss:$8 sps:$4 sm:$0xff]   ;;  %v3184_v24 = vld [vmem:[%s4564_s9 + $0x94] ss:$8 sps:$4 sm:$0xff]   ;;  %vm2220_vm7 = vcmp.ge.f32.partialorder %v4371_v53, 0.0 }
 0x38d   : > { %v2182_v21 = vrot.slane %v2181_v23, 2  ;;  %v3186_v14 = vld [vmem:[%s4564_s9 + $0x90] ss:$8 sps:$4 sm:$0xff]   ;;  %v4383_v38 = vsub.s32 1, %v2225_v19  ;;  %v3187_v3 = vld [vmem:[%s4564_s9 + $0xa4] ss:$8 sps:$4 sm:$0xff]  }
 0x38e   : > { %2489 = vmatpush1.bf16.msra.mxu0 %v3165_v61  ;;  %v2188_v62 = vrot.slane %v2187_v34, 2  ;;  %v2204_v15 = vrot.slane %v2203_v30, 2  ;;  %v2198_v7 = vrot.slane %v2197_v41, 2  ;;  %v2223_v16 = vsel %vm2220_vm7, 1, %v3240_v46  ;;  %v3189_v39 = vld [vmem:[%s4564_s9 + $0xa0] ss:$8 sps:$4 sm:$0xff]  }
 0x38f   : > { %2490 = vmatprep.subr.bf16.mxu0 %v3166_v59  ;;  %v2183_v51 = vadd.f32 %v2182_v21, %v2181_v23  ;;  %v2834_v57 = vld.sshfl [vmem:[#allocation6] sm:$0x33 pattern:$0x76325410]  ;;  %v4388_v4 = vsub.s32 0, %v2225_v19  ;;  %v2231_v63 = vrot.slane %v2223_v16, %v4383_v38  ;;  %v2619_v19 = vld [vmem:[%s4567_s12 + $0x80] sm:$0xff] }
 0x390   : > { %v2189_v0 = vadd.f32 %v2188_v62, %v2187_v34  ;;  %v2205_v11 = vadd.f32 %v2204_v15, %v2203_v30  ;;  %v2199_v60 = vadd.f32 %v2198_v7, %v2197_v41  ;;  %v2835_v44 = vld.sshfl [vmem:[#allocation7] sm:$0x33 pattern:$0x76325410]  ;;  %v3195_v37 = vld [vmem:[%s4564_s9 + $0xc0] ss:$8 sps:$4 sm:$0xff]  }
 0x391   : > { %v2184_v29 = vrot.slane %v2183_v51, 1  ;;  %v3190_v28 = vld [vmem:[%s4564_s9 + $0xb4] ss:$8 sps:$4 sm:$0xff]   ;;  %v2227_v59 = vrot.slane %v2223_v16, %v4388_v4  ;;  %vm2233_vm8 = vcmp.eq.s32.totalorder %v2231_v63, 1  ;;  %v3198_v52 = vld [vmem:[%s4564_s9 + $0xd0] ss:$8 sps:$4 sm:$0xff]   ;;  %v2266_v15 = vrot.slane %v4371_v53, %v4388_v4 }
 0x392   : > { %2491 = vmatpush1.bf16.msra.mxu0 %v3168_v54  ;;  %v2190_v8 = vrot.slane %v2189_v0, 1  ;;  %v2206_v55 = vrot.slane %v2205_v11, 1  ;;  %v2200_v9 = vrot.slane %v2199_v60, 1  ;;  %v2242_v54 = vcombine.high %v2834_v57, %v2834_v57  ;;  %v3196_v1 = vld [vmem:[%s4564_s9 + $0xd4] ss:$8 sps:$4 sm:$0xff]   ;;  %v2607_v16 = vld [vmem:[%s4567_s12 + $0x20] sm:$0xff] }
 0x393   : > { %2492 = vmatprep.subr.bf16.mxu0 %v3169_v27  ;;  %v2185_v5 = vadd.f32 %v2184_v29, %v2183_v51  ;;  %v2253_v27 = vcombine.high %v2835_v44, %v2835_v44  ;;  %vm2232_vm9 = vcmp.eq.s32.totalorder %v2227_v59, 1  ;;  %v3199_v30 = vld [vmem:[%s4564_s9 + $0xe4] ss:$8 sps:$4 sm:$0xff]   ;;  %v3202_v23 = vld [vmem:[%s4564_s9 + $0xf4] ss:$8 sps:$4 sm:$0xff]   ;;  %vm2712_vm11 = vcmask 123904  }
 0x394   : > { %v2191_v47 = vadd.f32 %v2190_v8, %v2189_v0  ;;  %v2207_v33 = vadd.f32 %v2206_v55, %v2205_v11  ;;  %v2201_v48 = vadd.f32 %v2200_v9, %v2199_v60  ;;  %v2256_v35 = vsel %vm2232_vm9, %v2834_v57, %v2835_v44  ;;  %v3204_v21 = vld [vmem:[%s4564_s9 + $0xf0] ss:$8 sps:$4 sm:$0xff]   ;;  %v2620_v51 = vld [vmem:[%s4567_s12 + $0x88] sm:$0xff] }
 0x395   : > { %v2192_v45 = vmul.f32 0.00390625, %v2185_v5  ;;  %v2621_v29 = vld [vmem:[%s4567_s12 + $0x90] sm:$0xff]  ;;  %v2626_v57 = vld [vmem:[%s4567_s12 + $0xb8] sm:$0xff]  ;;  %v2612_v59 = vld [vmem:[%s4567_s12 + $0x48] sm:$0xff] }
 0x396   : > { %2493 = vmatpush1.bf16.msra.mxu0 %v3171_v17  ;;  %v2193_v50 = vmul.f32 0.00390625, %v2191_v47  ;;  %v2209_v49 = vmul.f32 0.00390625, %v2207_v33  ;;  %v2208_v56 = vmul.f32 0.00390625, %v2201_v48  ;;  %v3192_v17 = vld [vmem:[%s4564_s9 + $0xb0] ss:$8 sps:$4 sm:$0xff]   ;;  %v2603_v47 = vld [vmem:[%s4567_s12] sm:$0xff] }
 0x397   : > { %2494 = vmatprep.subr.bf16.mxu0 %v3172_v40  ;;  %v2210_v12 = vmul.f32 %v2192_v45, %v2192_v45  ;;  %v2258_v18 = vsub.f32 %v2256_v35, %v2192_v45  ;;  %v2604_v33 = vld [vmem:[%s4567_s12 + $0x8] sm:$0xff]  ;;  %v2605_v9 = vld [vmem:[%s4567_s12 + $0x10] sm:$0xff]  ;;  %v2610_v44 = vld [vmem:[%s4567_s12 + $0x38] sm:$0xff] }
 0x398   : > { %v2211_v6 = vmul.f32 %v2193_v50, %v2193_v50  ;;  %v3053_v60 = vpack.c.bf16 %v2604_v33, %v2603_v47  ;;  %v2608_v48 = vld [vmem:[%s4567_s12 + $0x28] sm:$0xff] }
 0x399   : > { %v2212_v61 = vsub.f32 %v2208_v56, %v2210_v12  ;;  %v3061_v45 = vpack.c.bf16 %v2608_v48, %v2607_v16  ;;  %v2627_v12 = vld [vmem:[%s4567_s12 + $0xc0] sm:$0xff] }
 0x39a   : > { %2495 = vmatpush1.bf16.msra.mxu0 %v3174_v36  ;;  %v2213_v22 = vsub.f32 %v2209_v49, %v2211_v6  ;;  %v3193_v36 = vld [vmem:[%s4564_s9 + $0xc4] ss:$8 sps:$4 sm:$0xff]  }
 0x39b   : > { %2496 = vmatprep.subr.bf16.mxu0 %v3175_v10  ;;  %v2214_v40 = vadd.f32 1e-05, %v2212_v61  ;;  %v2257_v10 = vsel %vm2233_vm8, %v2242_v54, %v2253_v27  ;;  %v2624_v6 = vld [vmem:[%s4567_s12 + $0xa8] sm:$0xff]  ;;  %v2611_v61 = vld [vmem:[%s4567_s12 + $0x40] sm:$0xff]  ;;  %v2629_v27 = vld [vmem:[%s4567_s12 + $0xd0] sm:$0xff] }
 0x39c   : > { %v2215_v26 = vadd.f32 1e-05, %v2213_v22  ;;  %v2259_v42 = vsub.f32 %v2257_v10, %v2193_v50  ;;  %v2622_v50 = vld [vmem:[%s4567_s12 + $0x98] sm:$0xff]  ;;  %v2625_v22 = vld [vmem:[%s4567_s12 + $0xb0] sm:$0xff]  ;;  %v3069_v54 = vpack.c.bf16 %v2612_v59, %v2611_v61 }
 0x39d   : > { %v3055_v49 = vpack.c.bf16 %v2622_v50, %v2621_v29  ;;  %v3063_v56 = vpack.c.bf16 %v2626_v57, %v2625_v22  ;;  %v2614_v10 = vld [vmem:[%s4567_s12 + $0x58] sm:$0xff] }
 0x39e   : > { %2497 = vmatpush1.bf16.msra.mxu0 %v3177_v58  ;;  %3205 = vrsqrt.f32 %v2215_v26  ;;  %v2219_v58 = vld [vmem:[%s4563_s8] sm:$0x3] }
 0x39f   : > { %2498 = vmatprep.subr.bf16.mxu0 %v3178_v32  ;;  %3207 = vrsqrt.f32 %v2214_v40  ;;  %v2270_v32 = vrot.slane %v4371_v53, %v4383_v38  ;;  %v2283_v62 = vrot.slane %v2219_v58, %v4383_v38 }
 0x3a2   : > { %2499 = vmatpush1.bf16.msra.mxu0 %v3180_v31  ;;  %v3201_v31 = vld [vmem:[%s4564_s9 + $0xe0] ss:$8 sps:$4 sm:$0xff]  }
 0x3a3   : > { %2500 = vmatprep.subr.bf16.mxu0 %v3181_v13  ;;  %v2279_v13 = vrot.slane %v2219_v58, %v4388_v4  ;;  %v2615_v58 = vld [vmem:[%s4567_s12 + $0x60] sm:$0xff] }
 0x3a6   : > { %2501 = vmatpush1.bf16.msra.mxu0 %v3183_v20 }
 0x3a7   : > { %2502 = vmatprep.subr.bf16.mxu0 %v3184_v24  ;;  %v3051_v24 = vpack.c.bf16 %v2620_v51, %v2619_v19 }
 0x3a8   : > { %v3206_v34 = vpop.eup %3205 }
 0x3a9   : > { %v2261_v43 = vmul.f32 %v3206_v34, %v2259_v42  ;;  %v3208_v25 = vpop.eup %3207  ;;  %3052 = vmatprep.subr.bf16.mxu1 %v3051_v24  ;;  %v2632_v42 = vld [vmem:[%s4567_s12 + $0xe8] sm:$0xff] }
 0x3aa   : > { %2503 = vmatpush1.bf16.msra.mxu0 %v3186_v14  ;;  %v2260_v0 = vmul.f32 %v3208_v25, %v2258_v18  ;;  %3054 = vmatpush3.bf16.msra.mxu1 %v3053_v60  ;;  %v2606_v14 = vld [vmem:[%s4567_s12 + $0x18] sm:$0xff]  ;;  %v2617_v18 = vld [vmem:[%s4567_s12 + $0x70] sm:$0xff] }
 0x3ab   : > { %2504 = vmatprep.subr.bf16.mxu0 %v3187_v3  ;;  %v2274_v2 = vmul.f32 %v2270_v32, %v2261_v43  ;;  %v3057_v5 = vpack.c.bf16 %v2606_v14, %v2605_v9  ;;  %3056 = vmatprep.subr.bf16.mxu1 %v3055_v49  ;;  %v2623_v3 = vld [vmem:[%s4567_s12 + $0xa0] sm:$0xff]  ;;  %v2633_v32 = vld [vmem:[%s4567_s12 + $0xf0] sm:$0xff]  ;;  %v2618_v43 = vld [vmem:[%s4567_s12 + $0x78] sm:$0xff] }
 0x3ac   : > { %v2273_v41 = vmul.f32 %v2266_v15, %v2260_v0  ;;  %v3059_v46 = vpack.c.bf16 %v2624_v6, %v2623_v3  ;;  %v3081_v15 = vpack.c.bf16 %v2618_v43, %v2617_v18 }
 0x3ad   : > { %v2287_v11 = vadd.f32 %v2283_v62, %v2274_v2 }
 0x3ae   : > { %2505 = vmatpush1.bf16.msra.mxu0 %v3189_v39  ;;  %v2286_v55 = vadd.f32 %v2279_v13, %v2273_v41  ;;  %3058 = vmatpush3.bf16.msra.mxu1 %v3057_v5  ;;  %v2609_v39 = vld [vmem:[%s4567_s12 + $0x30] sm:$0xff] }
 0x3af   : > { %2506 = vmatprep.subr.bf16.mxu0 %v3190_v28  ;;  %v2289_v8 = vmax.f32 %v2287_v11, 0.0  ;;  %3060 = vmatprep.subr.bf16.mxu1 %v3059_v46  ;;  %v3065_v63 = vpack.c.bf16 %v2610_v44, %v2609_v39  ;;  %v2628_v28 = vld [vmem:[%s4567_s12 + $0xc8] sm:$0xff] }
 0x3b0   : > { %v2288_v7 = vmax.f32 %v2286_v55, 0.0  ;;  %v3067_v26 = vpack.c.bf16 %v2628_v28, %v2627_v12 }
 0x3b1   : > { %v2291_v53 = vpack.c.bf16 %v2289_v8, %v2289_v8 }
 0x3b2   : > { %2507 = vmatpush1.bf16.msra.mxu0 %v3192_v17  ;;  %v2290_v20 = vpack.c.bf16 %v2288_v7, %v2288_v7  ;;  %3062 = vmatpush3.bf16.msra.mxu1 %v3061_v45  ;;  %v2630_v17 = vld [vmem:[%s4567_s12 + $0xd8] sm:$0xff] }
 0x3b3   : > { %2508 = vmatprep.subr.bf16.mxu0 %v3193_v36  ;;  %2516 = vmatprep.mubr.bf16.mxu0 %v2291_v53  ;;  %v3071_v40 = vpack.c.bf16 %v2630_v17, %v2629_v27  ;;  %v2613_v36 = vld [vmem:[%s4567_s12 + $0x50] sm:$0xff]  ;;  %v2573_v27 = vld [vmem:[%s4565_s10] sm:$0x3] }
 0x3b4   : > { %3064 = vmatprep.subr.bf16.mxu1 %v3063_v56  ;;  %v2587_v17 = vld [vmem:[%s4566_s11] sm:$0x3] }
 0x3b6   : > { %2509 = vmatpush1.bf16.msra.mxu0 %v3195_v37  ;;  %3066 = vmatpush3.bf16.msra.mxu1 %v3065_v63  ;;  %v3073_v37 = vpack.c.bf16 %v2614_v10, %v2613_v36  ;;  %v2578_v36 = vrot.slane %v2573_v27, %v4388_v4 }
 0x3b7   : > { %2510 = vmatprep.subr.bf16.mxu0 %v3196_v1  ;;  %3068 = vmatprep.subr.bf16.mxu1 %v3067_v26  ;;  %v2631_v1 = vld [vmem:[%s4567_s12 + $0xe0] sm:$0xff] }
 0x3b8   : > { %v3075_v35 = vpack.c.bf16 %v2632_v42, %v2631_v1  ;;  %v2582_v1 = vrot.slane %v2573_v27, %v4383_v38 }
 0x3ba   : > { %2511 = vmatpush1.bf16.msra.mxu0 %v3198_v52  ;;  %3070 = vmatpush3.bf16.msra.mxu1 %v3069_v54  ;;  %v2616_v52 = vld [vmem:[%s4567_s12 + $0x68] sm:$0xff] }
 0x3bb   : > { %2512 = vmatprep.subr.bf16.mxu0 %v3199_v30  ;;  %3072 = vmatprep.subr.bf16.mxu1 %v3071_v40  ;;  %v3077_v34 = vpack.c.bf16 %v2616_v52, %v2615_v58  ;;  %v2634_v30 = vld [vmem:[%s4567_s12 + $0xf8] sm:$0xff]  ;;  %v2592_v58 = vrot.slane %v2587_v17, %v4388_v4 }
 0x3bc   : > { %v3079_v62 = vpack.c.bf16 %v2634_v30, %v2633_v32  ;;  %v2596_v32 = vrot.slane %v2587_v17, %v4383_v38 }
 0x3be   : > { %2513 = vmatpush1.bf16.msra.mxu0 %v3201_v31  ;;  %3074 = vmatpush3.bf16.msra.mxu1 %v3073_v37 }
 0x3bf   : > { %2514 = vmatprep.subr.bf16.mxu0 %v3202_v23  ;;  %3076 = vmatprep.subr.bf16.mxu1 %v3075_v35 }
 0x3c2   : > { %2515 = vmatpush1.bf16.msra.mxu0 %v3204_v21  ;;  %3078 = vmatpush3.bf16.msra.mxu1 %v3077_v34 }
 0x3c3   : > { %3080 = vmatprep.subr.bf16.mxu1 %v3079_v62 }
 0x3c5   : > { %2517 = vmatmul.mubr.bf16.vlgmr.msra.gmra.mrb[0].mxu0 %v2290_v20 }
 0x3c6   : > { %3082 = vmatpush3.bf16.msra.mxu1 %v3081_v15 }
 0x498   : > { %v2518_v25 = vpop.f32.mrb[0].mxu0 }
 0x499   : > { %v2526_v31 = vsel %vm2525_vm10, %v2518_v25, 0.0  ;;  %v2543_v2 = vmul.f32 %v2518_v25, %v2518_v25  ;;  %v2520_v23 = vpop.f32.mrb[1].mxu0 }
 0x49a   : > { %v2527_v13 = vrot.slane %v2526_v31, 4  ;;  %v2533_v0 = vsel %vm2525_vm10, %v2520_v23, 0.0  ;;  %v2544_v11 = vmul.f32 %v2520_v23, %v2520_v23  ;;  %v2522_v41 = vpop.f32.mrb[2].mxu0 }
 0x49b   : > { %v2545_v21 = vsel %vm2525_vm10, %v2543_v2, 0.0  ;;  %v2534_v8 = vrot.slane %v2533_v0, 4  ;;  %v2523_v55 = vpop.f32.mrb[3].mxu0 }
 0x49c   : > { %v2528_v53 = vadd.f32 %v2527_v13, %v2526_v31  ;;  %v2546_v7 = vrot.slane %v2545_v21, 4  ;;  %v2552_v20 = vsel %vm2525_vm10, %v2544_v11, 0.0  ;;  %v2868_v31 = vld [vmem:[%s4568_s13] ss:$0 sm:$0xff] }
 0x49d   : > { %v2535_v19 = vadd.f32 %v2534_v8, %v2533_v0  ;;  %v2553_v51 = vrot.slane %v2552_v20, 4 }
 0x49e   : > { %v2529_v24 = vrot.slane %v2528_v53, 2  ;;  %v2547_v47 = vadd.f32 %v2546_v7, %v2545_v21 }
 0x49f   : > { %v2536_v33 = vrot.slane %v2535_v19, 2  ;;  %v2554_v60 = vadd.f32 %v2553_v51, %v2552_v20 }
 0x4a0   : > { %v2530_v29 = vadd.f32 %v2529_v24, %v2528_v53  ;;  %v2548_v50 = vrot.slane %v2547_v47, 2 }
 0x4a1   : > { %v2537_v49 = vadd.f32 %v2536_v33, %v2535_v19  ;;  %v2555_v9 = vrot.slane %v2554_v60, 2 }
 0x4a2   : > { %v2531_v14 = vrot.slane %v2530_v29, 1  ;;  %v2549_v5 = vadd.f32 %v2548_v50, %v2547_v47 }
 0x4a3   : > { %v2538_v3 = vrot.slane %v2537_v49, 1  ;;  %v2556_v6 = vadd.f32 %v2555_v9, %v2554_v60 }
 0x4a4   : > { %v2532_v46 = vadd.f32 %v2531_v14, %v2530_v29  ;;  %v2550_v16 = vrot.slane %v2549_v5, 1 }
 0x4a5   : > { %v2539_v48 = vadd.f32 %v2538_v3, %v2537_v49  ;;  %v2557_v45 = vrot.slane %v2556_v6, 1 }
 0x4a6   : > { %v2541_v22 = vmul.f32 0.5, %v2532_v46  ;;  %v2551_v57 = vadd.f32 %v2550_v16, %v2549_v5 }
 0x4a7   : > { %v2542_v56 = vmul.f32 0.5, %v2539_v48  ;;  %v2558_v39 = vadd.f32 %v2557_v45, %v2556_v6 }
 0x4a8   : > { %v2559_v44 = vmul.f32 0.5, %v2551_v57  ;;  %v2561_v63 = vmul.f32 %v2541_v22, %v2541_v22  ;;  %v2565_v40 = vsub.f32 %v2518_v25, %v2541_v22 }
 0x4a9   : > { %v2560_v12 = vmul.f32 0.5, %v2558_v39  ;;  %v2562_v28 = vmul.f32 %v2542_v56, %v2542_v56  ;;  %v2566_v37 = vsub.f32 %v2520_v23, %v2542_v56 }
 0x4aa   : > { %v2563_v26 = vsub.f32 %v2559_v44, %v2561_v63 }
 0x4ab   : > { %v2564_v61 = vsub.f32 %v2560_v12, %v2562_v28 }
 0x4ac   : > { %v2567_v59 = vadd.f32 1e-05, %v2563_v26 }
 0x4ad   : > { %v2568_v54 = vadd.f32 1e-05, %v2564_v61 }
 0x4ae   : > { %3209 = vrsqrt.f32 %v2567_v59 }
 0x4af   : > { %3211 = vrsqrt.f32 %v2568_v54 }
 0x4b8   : > { %v3210_v10 = vpop.eup %3209 }
 0x4b9   : > { %v3212_v42 = vpop.eup %3211  ;;  %v2571_v35 = vmul.f32 %v3210_v10, %v2565_v40 }
 0x4ba   : > { %v2572_v52 = vmul.f32 %v3212_v42, %v2566_v37 }
 0x4bb   : > { %v2585_v34 = vmul.f32 %v2578_v36, %v2571_v35 }
 0x4bc   : > { %v2586_v30 = vmul.f32 %v2582_v1, %v2572_v52 }
 0x4bd   : > { %v2599_v18 = vadd.f32 %v2592_v58, %v2585_v34 }
 0x4be   : > { %v2600_v43 = vadd.f32 %v2596_v32, %v2586_v30 }
 0x4bf   : > { %v2601_v15 = vmax.f32 %v2599_v18, 0.0 }
 0x4c0   : > { %v2602_v62 = vmax.f32 %v2600_v43, 0.0 }
 0x4c2   : > { %2706 = vmatprep.mubr.f32.mxu1 %v2602_v62 }
 0x4c3   : > { %2707 = vmatmul.mubr.f32.vlgmr.msra.gmra.mrb[0].mxu1 %v2601_v15 }
 0x596   : > { %v2958_v25 = vpop.f32.mrb[0].mxu1 }
 0x597   : > { %v2959_v2 = vpop.f32.mrb[1].mxu1 }
 0x598   : > { %v2960_v23 = vadd.f32 %v2959_v2, %v2958_v25 }
 0x59a   : > { %v2709_v4 = vadd.f32 %v2960_v23, %v2868_v31 }
 0x59c   : > { %2713 = vst.msk [vmem:[%s4569_s14] sm:$0x3] %vm2712_vm11, %v2709_v4 }
 0x59d PF: > { %s24_s15 = sadd.s32 1, %s3235_s15   ;;  %s4653_s29 = smov %s3231_s30 }
 0x59e   : > { %p21_p8 = scmp.ge.s32.totalorder %s24_s15, 4   ;;  %s4654_s30 = smov %s4656_s16 }
 0x5a0   :  { %23 = sbr.rel (!%p21_p8) target bundleno = 2 (0x2), region = 118 }

// kernel: custom-call.16
= control target key start
LH: loop header
LB: loop body
LE: loop exit
PB: predicated region body
PF: predicated region fallthrough
CT: control target
= control target key end

     0   :  { %s653_s9 = smov 0   ;;  %s655_s10 = smov 0   ;;  %s799_s0 = inlined_call_operand.vmem [shape: f32[2,3,3], index: 0, kind: input, shape index: {}]   ;;  %s800_s1 = inlined_call_operand.vmem [shape: f32[2,3,3], index: 1, kind: output, shape index: {0}]   ;;  %s801_s2 = inlined_call_operand.vmem [shape: f32[2,3], index: 2, kind: output, shape index: {1}]  }
   0x1   :  { %s657_s11 = smov 0   ;;  %s659_s12 = smov 0  }
   0x2   :  { %s661_s13 = smov 0  }
   0x3 LB: > { %s28_s14 = sadd.s32 1, %s626_s12  ;;  %s508_s15 = sadd.s32 4294967295, %s630_s13   ;;  %s630_s13 = sphi %s661_s13, %s9_s13   ;;  %s626_s12 = sphi %s659_s12, %s808_s12   ;;  %s622_s11 = sphi %s657_s11, %s807_s11   ;;  %s618_s10 = sphi %s655_s10, %s806_s10   ;;  %s614_s9 = sphi %s653_s9, %s805_s9  }
   0x4   : > { %p30_p0 = scmp.ge.s32.totalorder %s28_s14, 2  ;;  %s33_s16 = ssub.s32 0, %s626_s12 }
   0x5   : > { %s510_s17 = smin.u32 %s626_s12, %s33_s16  ;;  %p57_p1 = scmp.ne.s32.totalorder %s618_s10, %s614_s9 }
   0x6   : > { %s810_s14 = smov (%p30_p0, %s28_s14), 0  ;;  %s35_s18 = sshrl.u32 %s510_s17, 3 }
   0x7   : > { %s39_s19 = ssub.s32 0, %s810_s14  ;;  %p58_p2 = scmp.eq.s32.totalorder %s508_s15, 1 }
   0x8   : > { %s511_s20 = smin.u32 %s39_s19, %s810_s14  ;;  %s47_s24 = sadd.s32 1, %s618_s10 }
   0x9   : > { %s41_s21 = sshrl.u32 %s511_s20, 3  ;;  %p688_p3 = por %p58_p2, %p57_p1 }
   0xa   : > { %s44_s23 = ssub.s32 %s35_s18, %s41_s21  ;;  %p513_p5 = scmp.ge.s32.totalorder %s630_s13, 2 }
   0xb   : > { %p45_p4 = scmp.eq.s32.totalorder %s44_s23, 0  ;;  %s82_s26 = sand.u32 (!%p513_p5), 1, %s630_s13  }
   0xc   : > { %80 = sbr.rel (%p513_p5) target bundleno = 19 (0x13), region = 16  ;;  %s515_s27 = sshll.u32 (!%p513_p5), %s626_s12, 2 }
   0xd   : > { %s694_s25 = scalar_select %p45_p4, %s618_s10, %s47_s24  }
   0xe   : > { %s514_s28 = sshll.u32 (!%p513_p5), %s82_s26, 2  ;;  %s88_s3 = scalar_lea.vmem (!%p513_p5), %s799_s0, %s515_s27 }
   0xf   : > { %v104_v0 = vld [vmem:[%s88_s3] sm:$0xf] (!%p513_p5)  ;;  %s84_s4 = scalar_lea.vmem (!%p513_p5), [#allocation1], %s514_s28 }
  0x10   : > { %105 = vst [vmem:[%s84_s4] sm:$0xf] (!%p513_p5), %v104_v0 }
  0x13 PF: > { %p516_p6 = scmp.ge.s32.totalorder %s630_s13, 1  ;;  %p121_p7 = scmp.lt.s32.totalorder %s630_s13, 3 }
  0x15   : > { %p122_p8 = pnand %p516_p6, %p121_p7 }
  0x17   : > { %125 = sbr.rel (%p122_p8) target bundleno = 346 (0x15a), region = 50 }
  0x1e   : > { %s132_s5 = sand.u32 1, %s508_s15   ;;  %s142_s6 = sand.u32 1, %s614_s9   ;;  %v636_v2 = vmov 0.0  }
  0x1f   : > { %s517_s7 = sshll.u32 %s132_s5, 2  ;;  %s705_s8 = sshll.u32 %s142_s6, 1 }
  0x20   : > { %s134_s16 = scalar_lea.vmem [#allocation1], %s517_s7  ;;  %s155_s17 = sand.u32 7, %s622_s11  }
  0x21   : > { %v147_v1 = vld [vmem:[%s134_s16] sm:$0xf]  ;;  %s708_s18 = scalar_lea.vmem [#allocation4], %s155_s17  ;;  %s711_s19 = scalar_lea.vmem [#allocation3], %s517_s7 }
  0x22   : > { %148 = vst [vmem:[#allocation0] sm:$0xf] %v147_v1  ;;  %159 = vst [vmem:[%s708_s18] sm:$0x1] %v636_v2  ;;  %s144_s15 = scalar_lea.vmem [#allocation5], %s705_s8  ;;  %s714_s20 = smov 0  }
  0x29   : > { %v157_v3 = vld [vmem:[#allocation0] sm:$0xff] }
  0x2a   : > { %158 = vst [vmem:[#allocation2] sm:$0xff] %v157_v3 }
  0x2b LB: >> { %v167_v4 = vlaneseq  ;;  %v723_v6 = vstv %s634_s20  ;;  %s194_s9 = scalar_lea.vmem [#allocation2], %s634_s20  ;;  %s230_s21 = smov [#allocation2]  ;;  %v637_v60 = vmov 1.0   ;;  %v265_v61 = vld [vmem:[%s708_s18] ss:$0 sm:$0xff]  ;;  %s634_s20 = sphi %s714_s20, %s165_s20  }
  0x2c   : >> { %s252_s23 = scalar_lea.vmem [#allocation6], %s634_s20  ;;  %s268_s24 = smov [#allocation2] }
  0x2d   : >> { %v720_v5 = vshrl.u32 %v167_v4, 7  ;;  %v246_v49 = vand.u32 127, %v167_v4  ;;  %s269_s26 = smov [#allocation6] }
  0x2f   : >> { %vm171_vm0 = vcmp.gt.s32.totalorder %v720_v5, %v723_v6  ;;  %vm172_vm1 = vcmp.lt.s32.totalorder %v720_v5, 3  ;;  %v233_v5 = vmov %v720_v5  ;;  %vm738_vm12 = vcmp.eq.s32.totalorder %v246_v49, %v723_v6 }
  0x30   : >> { %vm173_vm2 = vmand %vm171_vm0, %vm172_vm1  ;;  %vm237_vm9 = vcmp.gt.s32.totalorder %v233_v5, %v723_v6  ;;  %vm238_vm10 = vcmp.lt.s32.totalorder %v233_v5, 3  ;;  %v272_v5 = vmov %v720_v5  ;;  %vm298_vm15 = vcmp.gt.s32.totalorder %v246_v49, %v723_v6 }
  0x31   : >> { %v166_v7 = vld [vmem:[#allocation2] sm:$0xff]  ;;  %v195_v16 = vld [vmem:[%s194_s9] ss:$0 sm:$0xff]  ;;  %vm239_vm11 = vmand %vm237_vm9, %vm238_vm10  ;;  %vm277_vm13 = vcmp.lt.s32.totalorder %v272_v5, 3  ;;  %v289_v5 = vmov %v720_v5 }
  0x32   : >> { %v174_v8 = vsel %vm173_vm2, %v166_v7, 0.0  ;;  %v196_v17 = vand.u32 2147483647, %v195_v16  ;;  %vm221_vm8 = vcmp.lt.f32.partialorder %v195_v16, 0.0  ;;  %v234_v46 = vld [vmem:[%s230_s21] sm:$0xff]  ;;  %vm306_vm14 = vcmp.ge.s32.totalorder %v289_v5, %v723_v6 }
  0x33   : >> { %v175_v9 = vmul.f32 %v174_v8, %v174_v8  ;;  %v240_v50 = vsel %vm239_vm11, %v234_v46, 0.0  ;;  %v275_v0 = vld [vmem:[%s268_s24] sm:$0xff]  ;;  %s285_s24 = smov %s268_s24  ;;  %vm307_vm0 = vmand %vm738_vm12, %vm306_vm14 }
  0x34   : >> { %v197_v22 = vmax.f32 %v196_v17, 0.0  ;;  %s310_s27 = scalar_lea.vmem %s285_s24, %s634_s20  ;;  %s165_s20 = sadd.s32 1, %s634_s20  }
  0x35   : >> { %v176_v10 = vrot.slane %v175_v9, 4  ;;  %p162_p9 = scmp.ge.s32.totalorder %s165_s20, 3  }
  0x36   : > { %s523_s28 = sshll.u32 (%p162_p9), %s622_s11, 2 }
  0x37   : >> { %v177_v11 = vadd.f32 %v176_v10, %v175_v9  ;;  %s341_s3 = scalar_lea.vmem (%p162_p9), %s800_s1, %s523_s28 }
  0x39   : >> { %v178_v12 = vrot.slane %v177_v11, 2 }
  0x3b   : >> { %v179_v13 = vadd.f32 %v178_v12, %v177_v11 }
  0x3d   : >> { %v180_v14 = vrot.slane %v179_v13, 1 }
  0x3f   : >> { %v181_v15 = vadd.f32 %v180_v14, %v179_v13  ;;  %v296_v14 = vld [vmem:[%s285_s24] sm:$0xff] }
  0x41   : >> { %578 = vrsqrt.f32 %v181_v15  ;;  %vm184_vm3 = vcmp.eq.f32.partialorder %v181_v15, inf  ;;  %v187_v19 = vand.u32 2147483648, %v181_v15  ;;  %vm186_vm4 = vcmp.eq.f32.partialorder %v181_v15, 0.0 }
  0x4b   : >> { %v579_v18 = vpop.eup %578 }
  0x4c   : >> { %v183_v20 = vmul.f32 %v579_v18, %v181_v15 }
  0x4e   : >> { %v185_v21 = vsel %vm184_vm3, %v181_v15, %v183_v20 }
  0x4f   : >> { %v188_v23 = vsel %vm186_vm4, %v187_v19, %v185_v21 }
  0x50   : >> { %v198_v24 = vand.u32 2147483647, %v188_v23 }
  0x52   : >> { %v199_v25 = vmax.f32 %v197_v22, %v198_v24 }
  0x54   : >> { %580 = vrcp.f32 %v199_v25  ;;  %vm211_vm7 = vcmp.eq.f32.partialorder %v199_v25, 0.0 }
  0x5e   : >> { %v581_v26 = vpop.eup %580 }
  0x5f   : >> { %v201_v27 = vmul.f32 %v581_v26, %v196_v17  ;;  %v204_v28 = vmul.f32 0.0, %v581_v26  ;;  %v208_v29 = vmul.f32 %v581_v26, %v198_v24 }
  0x61   : >> { %v202_v30 = vmul.f32 %v201_v27, %v201_v27  ;;  %v205_v31 = vmul.f32 %v204_v28, %v204_v28  ;;  %v209_v32 = vmul.f32 %v208_v29, %v208_v29 }
  0x63   : >> { %v206_v33 = vadd.f32 %v205_v31, %v202_v30 }
  0x65   : >> { %v210_v34 = vadd.f32 %v209_v32, %v206_v33 }
  0x67   : >> { %582 = vrsqrt.f32 %v210_v34  ;;  %vm214_vm5 = vcmp.eq.f32.partialorder %v210_v34, inf  ;;  %v217_v36 = vand.u32 2147483648, %v210_v34  ;;  %vm216_vm6 = vcmp.eq.f32.partialorder %v210_v34, 0.0 }
  0x71   : >> { %v583_v35 = vpop.eup %582 }
  0x72   : >> { %v213_v37 = vmul.f32 %v583_v35, %v210_v34 }
  0x74   : >> { %v215_v38 = vsel %vm214_vm5, %v210_v34, %v213_v37 }
  0x75   : >> { %v218_v39 = vsel %vm216_vm6, %v217_v36, %v215_v38 }
  0x76   : >> { %v219_v40 = vmul.f32 %v218_v39, %v199_v25 }
  0x78   : >> { %v220_v41 = vsel %vm211_vm7, 0.0, %v219_v40 }
  0x79   : >> { %v222_v42 = vxor.u32 2147483648, %v220_v41 }
  0x7b   : >> { %v223_v43 = vsel %vm221_vm8, %v220_v41, %v222_v42 }
  0x7c   : >> { %v731_v44 = vsel %vm186_vm4, %v195_v16, %v223_v43  ;;  %584 = vrcp.f32 %v223_v43  ;;  %v224_v47 = vsub.f32 %v223_v43, %v195_v16 }
  0x7d   : >> { %v229_v45 = vsub.f32 %v195_v16, %v731_v44 }
  0x7f   : >> { %586 = vrcp.f32 %v229_v45 }
  0x86   : >> { %v585_v48 = vpop.eup %584 }
  0x87   : >> { %v226_v51 = vmul.f32 %v585_v48, %v224_v47 }
  0x89   : >> { %v587_v52 = vpop.eup %586  ;;  %v228_v56 = vsel %vm186_vm4, 0.0, %v226_v51 }
  0x8a   : >> { %v242_v53 = vmul.f32 %v587_v52, %v240_v50  ;;  %v258_v58 = vsel %vm738_vm12, %v228_v56, 0.0 }
  0x8c   : >> { %v243_v55 = vsel %vm186_vm4, 0.0, %v242_v53 }
  0x8d   : >> { %v248_v57 = vsel %vm738_vm12, %v243_v55, 0.0 }
  0x8e   : >> { %249 = vadd.xlane.f32.xlu0 %v248_v57 }
  0x92   : >> { %259 = vadd.xlane.f32.xlu0 %v258_v58 }
 0x11b   : >> { %v250_v59 = vpop.xlane.xlu0 %249 }
 0x11c   : >> { %251 = vst [vmem:[#allocation6] sm:$0xff] %v250_v59 }
 0x11d   : >> { %253 = vst [vmem:[%s252_s23] sm:$0x1] %v637_v60 }
 0x11f   : >> { %v260_v62 = vpop.xlane.xlu0 %259 }
 0x120   : >> { %v266_v63 = vsel %vm738_vm12, %v260_v62, %v265_v61 }
 0x121   : >> { %267 = vst [vmem:[%s708_s18] sm:$0x1] %v266_v63 }
 0x124   : >> { %v274_v1 = vld [vmem:[%s269_s26] sm:$0xff]  ;;  %s286_s26 = smov %s269_s26 }
 0x125   : >> { %v276_v2 = vmul.f32 %v275_v0, %v274_v1  ;;  %v294_v13 = vld [vmem:[%s286_s26] sm:$0xff] }
 0x127   : >> { %v278_v3 = vsel %vm277_vm13, %v276_v2, 0.0 }
 0x128   : >> { %v279_v4 = vrot.slane %v278_v3, 4  ;;  %v327_v6 = vld [vmem:[#allocation4] sm:$0x3] (%p162_p9) }
 0x129   : > { %329 = vst [vmem:[%s144_s15] sm:$0x3] (%p162_p9), %v327_v6 }
 0x12a   : >> { %v280_v7 = vadd.f32 %v279_v4, %v278_v3 }
 0x12c   : >> { %v281_v8 = vrot.slane %v280_v7, 2 }
 0x12e   : >> { %v282_v9 = vadd.f32 %v281_v8, %v280_v7 }
 0x130   : >> { %v283_v10 = vrot.slane %v282_v9, 1 }
 0x132   : >> { %v284_v11 = vadd.f32 %v283_v10, %v282_v9 }
 0x134   : >> { %v290_v12 = vmul.f32 %v284_v11, %v260_v62 }
 0x136   : >> { %v295_v15 = vmul.f32 %v294_v13, %v290_v12 }
 0x138   : >> { %v299_v16 = vsub.f32 %v296_v14, %v295_v15 }
 0x13a   : >> { %v300_v17 = vsel %vm298_vm15, %v299_v16, %v296_v14 }
 0x13b   : >> { %v308_v18 = vsel %vm307_vm0, %v294_v13, %v300_v17 }
 0x13c   : >> { %309 = vst [vmem:[%s285_s24] sm:$0xff] %v308_v18 }
 0x13f   : > { %164 = sbr.rel (!%p162_p9) target bundleno = 43 (0x2b), region = 167 }
 0x143   : >> { %v311_v19 = vld [vmem:[%s310_s27] ss:$0 sm:$0xff] }
 0x144   : >> { %v316_v20 = vsel %vm738_vm12, %v731_v44, %v311_v19 }
 0x145   : >> { %317 = vst [vmem:[%s310_s27] sm:$0x1] %v316_v20 }
 0x146   : > { %p376_p10 = scmp.lt.s32.totalorder (%p688_p3), %s622_s11, 0  ;;  %s377_s4 = ssub.s32 (%p688_p3), 0, %s622_s11  ;;  %v399_v22 = vld [vmem:[%s144_s15] sm:$0x3] (%p688_p3) }
 0x147   : > { %s524_s5 = smin.u32 (%p688_p3), %s622_s11, %s377_s4 }
 0x148   : > { %s379_s6 = sshrl.u32 (%p688_p3), %s524_s5, 3 }
 0x149   : > { %s380_s7 = ssub.s32 (%p688_p3), 0, %s379_s6 }
 0x14c   : > { %v321_v5 = vld [vmem:[#allocation2] sm:$0xf] }
 0x14d   : > { %323 = vst [vmem:[%s711_s19] sm:$0xf] %v321_v5 }
 0x14f   : > { %375 = sbr.rel (!%p688_p3) target bundleno = 346 (0x15a), region = 91 }
 0x154   : > { %v357_v21 = vld [vmem:[%s711_s19] sm:$0xf] }
 0x155   : > { %358 = vst [vmem:[%s341_s3] sm:$0xf] %v357_v21 }
 0x156   : > { %s812_s7 = smov (!%p376_p10, %s380_s7), %s379_s6 }
 0x157   : > { %s525_s16 = sshll.u32 %s812_s7, 1 }
 0x158   : > { %s383_s19 = scalar_lea.vmem %s801_s2, %s525_s16 }
 0x159   : > { %400 = vst [vmem:[%s383_s19] sm:$0x3] %v399_v22 }
 0x15a PF: > { %s9_s13 = sadd.s32 1, %s630_s13   ;;  %s805_s9 = smov %s618_s10 }
 0x15b   : > { %p6_p11 = scmp.ge.s32.totalorder %s9_s13, 4   ;;  %s806_s10 = smov %s694_s25 }
 0x15c   : > { %s807_s11 = smov %s626_s12  ;;  %s808_s12 = smov %s810_s14 }
 0x15d   :  { %8 = sbr.rel (!%p6_p11) target bundleno = 3 (0x3), region = 178 }

</bundles_post_ra>
